<compile_context>
chip_gen: v7x
topology: tpu7x:2x2x1
jax: 0.10.0
libtpu: 0.0.40
codegen_flags: <defaults>
</compile_context>

<pallas_src>
import functools

import jax
import jax.numpy as jnp
from jax import lax
from jax.experimental import pallas as pl
from jax.experimental.pallas import tpu as pltpu


def _margin_loss_kernel(anc_ref, pos_ref, neg_ref, beta_ref, out_ref,
                        loss_acc, cnt_acc, beta_acc, *,
                        margin, n_rows, tile_n, num_inner, block_off):
    """One grid step processes one (tile_n, D) row-tile of triplets.

    anc/pos/neg_ref : (tile_n, D) f32
    beta_ref        : (tile_n, 1) f32  -- per-anchor class-specific beta
    out_ref         : (1, 8, 128) f32  -- per-core partials (row0=loss, row1=cnt, row2=|beta|)
    loss/cnt/beta_acc : (tile_n, 1) f32 VMEM vector accumulators
    """
    c = pl.program_id(0)     # core-split half ("parallel")
    i = pl.program_id(1)     # sequential reduction axis ("arbitrary")

    @pl.when(i == 0)
    def _init():
        loss_acc[...] = jnp.zeros_like(loss_acc)
        cnt_acc[...] = jnp.zeros_like(cnt_acc)
        beta_acc[...] = jnp.zeros_like(beta_acc)

    anc = anc_ref[...]
    pos = pos_ref[...]
    neg = neg_ref[...]
    beta = beta_ref[...]                      # (tile_n, 1)

    dp = pos - anc
    dn = neg - anc
    d_ap = jnp.sqrt(jnp.sum(dp * dp, axis=1, keepdims=True) + 1e-8)   # (tile_n, 1)
    d_an = jnp.sqrt(jnp.sum(dn * dn, axis=1, keepdims=True) + 1e-8)

    pos_loss = jnp.maximum(d_ap - beta + margin, 0.0)   # F.relu
    neg_loss = jnp.maximum(beta - d_an + margin, 0.0)

    loss_vec = pos_loss + neg_loss
    cnt_vec = ((pos_loss > 0.0).astype(jnp.float32)
               + (neg_loss > 0.0).astype(jnp.float32))
    beta_vec = jnp.abs(beta)

    # Tile geometry (affine: matches the in_spec index_map exactly).
    blk = i + c * block_off              # actual block index that was DMA'd
    row0 = blk * tile_n                  # first global row of this block
    lower = c * (num_inner * tile_n)     # ownership lower bound for this half

    is_full = jnp.logical_and(row0 >= lower, row0 + tile_n <= n_rows)

    @pl.when(is_full)
    def _acc_full():                     # interior tile: no mask work
        loss_acc[...] += loss_vec
        cnt_acc[...] += cnt_vec
        beta_acc[...] += beta_vec

    @pl.when(jnp.logical_not(is_full))
    def _acc_masked():                   # boundary / overlap tile
        local = lax.broadcasted_iota(jnp.int32, (tile_n, 1), 0)
        grow = row0 + local
        valid = jnp.logical_and(grow >= lower, grow < n_rows)
        zero = jnp.zeros_like(loss_vec)
        # jnp.where (select), not multiply: garbage/NaN in the unread tail of
        # a partial block cannot leak into the sums.
        loss_acc[...] += jnp.where(valid, loss_vec, zero)
        cnt_acc[...] += jnp.where(valid, cnt_vec, zero)
        beta_acc[...] += jnp.where(valid, beta_vec, zero)

    @pl.when(i == num_inner - 1)
    def _finalize():
        loss_sum = jnp.sum(loss_acc[...], keepdims=True)   # (1, 1)
        pair_cnt = jnp.sum(cnt_acc[...], keepdims=True)
        beta_l1 = jnp.sum(beta_acc[...], keepdims=True)
        row = lax.broadcasted_iota(jnp.int32, (1, 8, 128), 1)
        out_ref[...] = jnp.where(row == 0, loss_sum,
                       jnp.where(row == 1, pair_cnt,
                       jnp.where(row == 2, beta_l1, jnp.float32(0.0))))


def margin_loss_pallas(anchors, positives, negatives, beta_anchor, *,
                       margin=0.2, nu=0.0, tile_n=None):
    """anchors/positives/negatives: (N, D) f32; beta_anchor: (N,) f32.

    Returns scalar float32 loss, matching MarginLoss.forward after sampling.
    """
    anchors = anchors.astype(jnp.float32)      # no-op when already f32
    positives = positives.astype(jnp.float32)
    negatives = negatives.astype(jnp.float32)
    beta_col = beta_anchor.astype(jnp.float32).reshape(-1, 1)

    N, D = anchors.shape

    # ---- tile size (perf item 2) -------------------------------------------
    if tile_n is None:
        tile_n = 4096 if D <= 64 else 2048
    tile_n = max(8, (int(tile_n) // 8) * 8)

    # ---- per-generation VMEM budget (perf item 4) --------------------------
    try:
        vmem_cap = int(getattr(pltpu.get_tpu_info(), "vmem_capacity_bytes",
                               64 * 1024 * 1024))
    except Exception:
        vmem_cap = 64 * 1024 * 1024
    budget = (vmem_cap * 3) // 4            # leave headroom (v7x has 64 MiB/TC)

    def vmem_need(tn):
        stream = 2 * (3 * D * tn + tn) * 4  # double-buffered input blocks
        scratch = 3 * tn * 128 * 4          # (tn,1) accumulators pad to 128 lanes
        return stream + scratch + (2 << 20)

    while tile_n > 512 and vmem_need(tile_n) > budget:
        tile_n //= 2                        # stays a multiple of 8

    # Block must not exceed the array: multiple of 8 rows, or the full extent.
    if N >= 8:
        tile_n = min(tile_n, (N // 8) * 8)
    else:
        tile_n = N

    num_tiles = -(-N // tile_n)
    num_inner = (num_tiles + 1) // 2        # tiles handled per core-split half
    block_off = num_tiles - num_inner       # first block index of half 1

    kernel = functools.partial(
        _margin_loss_kernel,
        margin=float(margin), n_rows=N, tile_n=tile_n,
        num_inner=num_inner, block_off=block_off)

    vmem_limit = int(min(max(vmem_need(tile_n), 8 * 1024 * 1024), budget))

    cost = pl.CostEstimate(
        flops=int(N) * (6 * D + 24),
        transcendentals=2 * int(N),
        bytes_accessed=(3 * N * D + N) * 4 + 2 * 8 * 128 * 4,
    )

    emb_spec = pl.BlockSpec((tile_n, D), lambda c, i: (i + c * block_off, 0))
    beta_spec = pl.BlockSpec((tile_n, 1), lambda c, i: (i + c * block_off, 0))

    partials = pl.pallas_call(
        kernel,
        grid=(2, num_inner),
        out_shape=jax.ShapeDtypeStruct((2, 8, 128), jnp.float32),
        in_specs=[emb_spec, emb_spec, emb_spec, beta_spec],
        out_specs=pl.BlockSpec((1, 8, 128), lambda c, i: (c, 0, 0)),
        scratch_shapes=[pltpu.VMEM((tile_n, 1), jnp.float32)] * 3,
        compiler_params=pltpu.CompilerParams(
            dimension_semantics=("parallel", "arbitrary"),
            vmem_limit_bytes=vmem_limit,
        ),
        cost_estimate=cost,
    )(anchors, positives, negatives, beta_col)

    # Reduce the per-core partials in JAX (trivial amount of data).
    loss_sum = partials[0, 0, 0] + partials[1, 0, 0]
    pair_cnt = partials[0, 1, 0] + partials[1, 1, 0]   # f32 count, as in torch
    beta_l1 = partials[0, 2, 0] + partials[1, 2, 0]
    beta_reg = beta_l1 * jnp.float32(nu)               # torch.norm(beta, p=1) * nu
    # torch: only normalizes (and adds the regularizer) when pair_cnt > 0.
    return jnp.where(pair_cnt > 0.0, (loss_sum + beta_reg) / pair_cnt, loss_sum)


def margin_loss_reference(anchors, positives, negatives, beta_anchor, *,
                          margin=0.2, nu=0.0):
    d_ap = jnp.sqrt(jnp.sum((positives - anchors) ** 2, axis=1) + 1e-8)
    d_an = jnp.sqrt(jnp.sum((negatives - anchors) ** 2, axis=1) + 1e-8)
    b = beta_anchor
    pos_loss = jax.nn.relu(d_ap - b + margin)
    neg_loss = jax.nn.relu(b - d_an + margin)
    pair_cnt = jnp.sum((pos_loss > 0).astype(jnp.float32) +
                       (neg_loss > 0).astype(jnp.float32))
    loss = jnp.sum(pos_loss + neg_loss)
    beta_reg = jnp.sum(jnp.abs(b)) * nu
    return jnp.where(pair_cnt > 0, (loss + beta_reg) / pair_cnt, loss)


if __name__ == "__main__":
    # ---- deterministic setup ------------------------------------------------
    key = jax.random.PRNGKey(0)
    N = 200          # number of sampled triplets (not a multiple of most tiles)
    D = 32           # embedding dim
    nb_classes = 4
    beta_init = 1.2
    margin = 0.2
    nu = 0.1

    # class_specific_beta=True -> per-class beta parameter, initialized to 1.2
    beta_param = jnp.ones((nb_classes,), dtype=jnp.float32) * beta_init

    embeddings = jax.random.normal(key, (N, D), dtype=jnp.float32)
    labels = jnp.repeat(jnp.arange(nb_classes, dtype=jnp.int32), N // nb_classes)

    # ---- deterministic triplet "sampler" (replaces self.sampler) -------------
    # TODO(synk): the original module uses an external distance-weighted sampler.
    anchor_idxs = jnp.arange(N, dtype=jnp.int32)
    pos_idxs = anchor_idxs ^ 1                 # same-class partner
    neg_idxs = (anchor_idxs + 2) % N           # some other sample

    anchors = embeddings[anchor_idxs]
    positives = embeddings[pos_idxs]
    negatives = embeddings[neg_idxs]
    anchor_classes = labels[anchor_idxs]
    beta_anchor = beta_param[anchor_classes]   # (N,) class-specific beta

    ref = margin_loss_reference(anchors, positives, negatives, beta_anchor,
                                margin=margin, nu=nu)

    # Default (single big tile), even multi-tile with partial tail (64),
    # and odd multi-tile that exercises the overlap/ownership masking (72).
    for tn in (None, 64, 72):
        loss = margin_loss_pallas(anchors, positives, negatives, beta_anchor,
                                  margin=margin, nu=nu, tile_n=tn)
        loss = jax.block_until_ready(loss)
        assert jnp.allclose(loss, ref, rtol=1e-5, atol=1e-5), (tn, loss, ref)

    print("KERNEL_OK")
</pallas_src>

<mosaic_0001>
module attributes {stable_mosaic.version = 11 : i64} {
  func.func @_margin_loss_kernel(%arg0: i32, %arg1: i32, %arg2: memref<200x32xf32, #tpu.memory_space<vmem>>, %arg3: memref<200x32xf32, #tpu.memory_space<vmem>>, %arg4: memref<200x32xf32, #tpu.memory_space<vmem>>, %arg5: memref<200x1xf32, #tpu.memory_space<vmem>>, %arg6: memref<1x8x128xf32, #tpu.memory_space<vmem>>, %arg7: memref<200x1xf32, #tpu.memory_space<vmem>>, %arg8: memref<200x1xf32, #tpu.memory_space<vmem>>, %arg9: memref<200x1xf32, #tpu.memory_space<vmem>>) attributes {dimension_semantics = [#tpu.dimension_semantics<parallel>, #tpu.dimension_semantics<arbitrary>], iteration_bounds = array<i64: 2, 1>, scalar_prefetch = 0 : i64, scratch_operands = 3 : i64, tpu.core_type = #tpu.core_type<tc>, window_params = [{transform_indices = @transform_0, window_bounds = array<i64: 200, 32>}, {transform_indices = @transform_1, window_bounds = array<i64: 200, 32>}, {transform_indices = @transform_2, window_bounds = array<i64: 200, 32>}, {transform_indices = @transform_3, window_bounds = array<i64: 200, 1>}, {transform_indices = @transform_4, window_bounds = array<i64: 1, 8, 128>}]} {
    %c0_i32 = arith.constant 0 : i32
    %0 = arith.cmpi eq, %arg1, %c0_i32 : i32
    %1 = arith.extui %0 : i1 to i32
    %c0_i32_0 = arith.constant 0 : i32
    %2 = arith.cmpi ne, %1, %c0_i32_0 : i32
    scf.if %2 {
      %cst_25 = arith.constant 0.000000e+00 : f32
      %58 = vector.broadcast %cst_25 : f32 to vector<200x1xf32>
      %c0_26 = arith.constant 0 : index
      %c0_27 = arith.constant 0 : index
      %59 = vector.load %arg7[%c0_26, %c0_27] : memref<200x1xf32, #tpu.memory_space<vmem>>, vector<200x1xf32>
      tpu.vector_store %arg7[%c0_26, %c0_27], %58 {strides = array<i32>} : memref<200x1xf32, #tpu.memory_space<vmem>>, vector<200x1xf32>,
      %cst_28 = arith.constant 0.000000e+00 : f32
      %60 = vector.broadcast %cst_28 : f32 to vector<200x1xf32>
      %c0_29 = arith.constant 0 : index
      %c0_30 = arith.constant 0 : index
      %61 = vector.load %arg8[%c0_29, %c0_30] : memref<200x1xf32, #tpu.memory_space<vmem>>, vector<200x1xf32>
      tpu.vector_store %arg8[%c0_29, %c0_30], %60 {strides = array<i32>} : memref<200x1xf32, #tpu.memory_space<vmem>>, vector<200x1xf32>,
      %cst_31 = arith.constant 0.000000e+00 : f32
      %62 = vector.broadcast %cst_31 : f32 to vector<200x1xf32>
      %c0_32 = arith.constant 0 : index
      %c0_33 = arith.constant 0 : index
      %63 = vector.load %arg9[%c0_32, %c0_33] : memref<200x1xf32, #tpu.memory_space<vmem>>, vector<200x1xf32>
      tpu.vector_store %arg9[%c0_32, %c0_33], %62 {strides = array<i32>} : memref<200x1xf32, #tpu.memory_space<vmem>>, vector<200x1xf32>,
    } else {
    }
    %c0 = arith.constant 0 : index
    %c0_1 = arith.constant 0 : index
    %3 = vector.load %arg2[%c0, %c0_1] : memref<200x32xf32, #tpu.memory_space<vmem>>, vector<200x32xf32>
    %c0_2 = arith.constant 0 : index
    %c0_3 = arith.constant 0 : index
    %4 = vector.load %arg3[%c0_2, %c0_3] : memref<200x32xf32, #tpu.memory_space<vmem>>, vector<200x32xf32>
    %c0_4 = arith.constant 0 : index
    %c0_5 = arith.constant 0 : index
    %5 = vector.load %arg4[%c0_4, %c0_5] : memref<200x32xf32, #tpu.memory_space<vmem>>, vector<200x32xf32>
    %c0_6 = arith.constant 0 : index
    %c0_7 = arith.constant 0 : index
    %6 = vector.load %arg5[%c0_6, %c0_7] : memref<200x1xf32, #tpu.memory_space<vmem>>, vector<200x1xf32>
    %7 = arith.subf %4, %3 : vector<200x32xf32>
    %8 = arith.subf %5, %3 : vector<200x32xf32>
    %9 = arith.mulf %7, %7 : vector<200x32xf32>
    %cst = arith.constant dense<0.000000e+00> : vector<200xf32>
    %10 = vector.multi_reduction <add>, %9, %cst [1] : vector<200x32xf32> to vector<200xf32>
    %11 = vector.shape_cast %10 : vector<200xf32> to vector<200x1xf32>
    %cst_8 = arith.constant 9.99999993E-9 : f32
    %12 = vector.broadcast %cst_8 : f32 to vector<200x1xf32>
    %13 = arith.addf %11, %12 : vector<200x1xf32>
    %14 = math.sqrt %13 : vector<200x1xf32>
    %15 = arith.mulf %8, %8 : vector<200x32xf32>
    %cst_9 = arith.constant dense<0.000000e+00> : vector<200xf32>
    %16 = vector.multi_reduction <add>, %15, %cst_9 [1] : vector<200x32xf32> to vector<200xf32>
    %17 = vector.shape_cast %16 : vector<200xf32> to vector<200x1xf32>
    %cst_10 = arith.constant 9.99999993E-9 : f32
    %18 = vector.broadcast %cst_10 : f32 to vector<200x1xf32>
    %19 = arith.addf %17, %18 : vector<200x1xf32>
    %20 = math.sqrt %19 : vector<200x1xf32>
    %21 = arith.subf %14, %6 : vector<200x1xf32>
    %cst_11 = arith.constant 2.000000e-01 : f32
    %22 = vector.broadcast %cst_11 : f32 to vector<200x1xf32>
    %23 = arith.addf %21, %22 : vector<200x1xf32>
    %cst_12 = arith.constant 0.000000e+00 : f32
    %24 = vector.broadcast %cst_12 : f32 to vector<200x1xf32>
    %25 = arith.maximumf %23, %24 : vector<200x1xf32>
    %26 = arith.subf %6, %20 : vector<200x1xf32>
    %cst_13 = arith.constant 2.000000e-01 : f32
    %27 = vector.broadcast %cst_13 : f32 to vector<200x1xf32>
    %28 = arith.addf %26, %27 : vector<200x1xf32>
    %cst_14 = arith.constant 0.000000e+00 : f32
    %29 = vector.broadcast %cst_14 : f32 to vector<200x1xf32>
    %30 = arith.maximumf %28, %29 : vector<200x1xf32>
    %31 = arith.addf %25, %30 : vector<200x1xf32>
    %cst_15 = arith.constant 0.000000e+00 : f32
    %32 = vector.broadcast %cst_15 : f32 to vector<200x1xf32>
    %33 = arith.cmpf ogt, %25, %32 : vector<200x1xf32>
    %34 = arith.extui %33 : vector<200x1xi1> to vector<200x1xi32>
    %35 = arith.sitofp %34 : vector<200x1xi32> to vector<200x1xf32>
    %cst_16 = arith.constant 0.000000e+00 : f32
    %36 = vector.broadcast %cst_16 : f32 to vector<200x1xf32>
    %37 = arith.cmpf ogt, %30, %36 : vector<200x1xf32>
    %38 = arith.extui %37 : vector<200x1xi1> to vector<200x1xi32>
    %39 = arith.sitofp %38 : vector<200x1xi32> to vector<200x1xf32>
    %40 = arith.addf %35, %39 : vector<200x1xf32>
    %41 = math.absf %6 : vector<200x1xf32>
    %c0_i32_17 = arith.constant 0 : i32
    %42 = arith.muli %arg0, %c0_i32_17 : i32
    %43 = arith.addi %arg1, %42 : i32
    %c200_i32 = arith.constant 200 : i32
    %44 = arith.muli %43, %c200_i32 : i32
    %c200_i32_18 = arith.constant 200 : i32
    %45 = arith.muli %arg0, %c200_i32_18 : i32
    %46 = arith.cmpi sge, %44, %45 : i32
    %c200_i32_19 = arith.constant 200 : i32
    %47 = arith.addi %44, %c200_i32_19 : i32
    %c200_i32_20 = arith.constant 200 : i32
    %48 = arith.cmpi sle, %47, %c200_i32_20 : i32
    %49 = arith.andi %46, %48 : i1
    %50 = arith.extui %49 : i1 to i32
    %c0_i32_21 = arith.constant 0 : i32
    %51 = arith.cmpi ne, %50, %c0_i32_21 : i32
    scf.if %51 {
      %c0_25 = arith.constant 0 : index
      %c0_26 = arith.constant 0 : index
      %58 = vector.load %arg7[%c0_25, %c0_26] : memref<200x1xf32, #tpu.memory_space<vmem>>, vector<200x1xf32>
      %59 = arith.addf %58, %31 : vector<200x1xf32>
      %c0_27 = arith.constant 0 : index
      %c0_28 = arith.constant 0 : index
      %60 = vector.load %arg7[%c0_27, %c0_28] : memref<200x1xf32, #tpu.memory_space<vmem>>, vector<200x1xf32>
      tpu.vector_store %arg7[%c0_27, %c0_28], %59 {strides = array<i32>} : memref<200x1xf32, #tpu.memory_space<vmem>>, vector<200x1xf32>,
      %c0_29 = arith.constant 0 : index
      %c0_30 = arith.constant 0 : index
      %61 = vector.load %arg8[%c0_29, %c0_30] : memref<200x1xf32, #tpu.memory_space<vmem>>, vector<200x1xf32>
      %62 = arith.addf %61, %40 : vector<200x1xf32>
      %c0_31 = arith.constant 0 : index
      %c0_32 = arith.constant 0 : index
      %63 = vector.load %arg8[%c0_31, %c0_32] : memref<200x1xf32, #tpu.memory_space<vmem>>, vector<200x1xf32>
      tpu.vector_store %arg8[%c0_31, %c0_32], %62 {strides = array<i32>} : memref<200x1xf32, #tpu.memory_space<vmem>>, vector<200x1xf32>,
      %c0_33 = arith.constant 0 : index
      %c0_34 = arith.constant 0 : index
      %64 = vector.load %arg9[%c0_33, %c0_34] : memref<200x1xf32, #tpu.memory_space<vmem>>, vector<200x1xf32>
      %65 = arith.addf %64, %41 : vector<200x1xf32>
      %c0_35 = arith.constant 0 : index
      %c0_36 = arith.constant 0 : index
      %66 = vector.load %arg9[%c0_35, %c0_36] : memref<200x1xf32, #tpu.memory_space<vmem>>, vector<200x1xf32>
      tpu.vector_store %arg9[%c0_35, %c0_36], %65 {strides = array<i32>} : memref<200x1xf32, #tpu.memory_space<vmem>>, vector<200x1xf32>,
    } else {
    }
    %true = arith.constant true
    %52 = arith.xori %49, %true : i1
    %53 = arith.extui %52 : i1 to i32
    %c0_i32_22 = arith.constant 0 : i32
    %54 = arith.cmpi ne, %53, %c0_i32_22 : i32
    scf.if %54 {
      %58 = tpu.iota {dimensions = array<i32: 0>} : vector<200x1xi32>
      %59 = vector.broadcast %44 : i32 to vector<200x1xi32>
      %60 = arith.addi %59, %58 : vector<200x1xi32>
      %61 = vector.broadcast %45 : i32 to vector<200x1xi32>
      %62 = arith.cmpi sge, %60, %61 : vector<200x1xi32>
      %c200_i32_25 = arith.constant 200 : i32
      %63 = vector.broadcast %c200_i32_25 : i32 to vector<200x1xi32>
      %64 = arith.cmpi slt, %60, %63 : vector<200x1xi32>
      %65 = arith.andi %62, %64 : vector<200x1xi1>
      %cst_26 = arith.constant 0.000000e+00 : f32
      %66 = vector.broadcast %cst_26 : f32 to vector<200x1xf32>
      %c0_27 = arith.constant 0 : index
      %c0_28 = arith.constant 0 : index
      %67 = vector.load %arg7[%c0_27, %c0_28] : memref<200x1xf32, #tpu.memory_space<vmem>>, vector<200x1xf32>
      %68 = arith.select %65, %31, %66 : vector<200x1xi1>, vector<200x1xf32>
      %69 = arith.addf %67, %68 : vector<200x1xf32>
      %c0_29 = arith.constant 0 : index
      %c0_30 = arith.constant 0 : index
      %70 = vector.load %arg7[%c0_29, %c0_30] : memref<200x1xf32, #tpu.memory_space<vmem>>, vector<200x1xf32>
      tpu.vector_store %arg7[%c0_29, %c0_30], %69 {strides = array<i32>} : memref<200x1xf32, #tpu.memory_space<vmem>>, vector<200x1xf32>,
      %c0_31 = arith.constant 0 : index
      %c0_32 = arith.constant 0 : index
      %71 = vector.load %arg8[%c0_31, %c0_32] : memref<200x1xf32, #tpu.memory_space<vmem>>, vector<200x1xf32>
      %72 = arith.select %65, %40, %66 : vector<200x1xi1>, vector<200x1xf32>
      %73 = arith.addf %71, %72 : vector<200x1xf32>
      %c0_33 = arith.constant 0 : index
      %c0_34 = arith.constant 0 : index
      %74 = vector.load %arg8[%c0_33, %c0_34] : memref<200x1xf32, #tpu.memory_space<vmem>>, vector<200x1xf32>
      tpu.vector_store %arg8[%c0_33, %c0_34], %73 {strides = array<i32>} : memref<200x1xf32, #tpu.memory_space<vmem>>, vector<200x1xf32>,
      %c0_35 = arith.constant 0 : index
      %c0_36 = arith.constant 0 : index
      %75 = vector.load %arg9[%c0_35, %c0_36] : memref<200x1xf32, #tpu.memory_space<vmem>>, vector<200x1xf32>
      %76 = arith.select %65, %41, %66 : vector<200x1xi1>, vector<200x1xf32>
      %77 = arith.addf %75, %76 : vector<200x1xf32>
      %c0_37 = arith.constant 0 : index
      %c0_38 = arith.constant 0 : index
      %78 = vector.load %arg9[%c0_37, %c0_38] : memref<200x1xf32, #tpu.memory_space<vmem>>, vector<200x1xf32>
      tpu.vector_store %arg9[%c0_37, %c0_38], %77 {strides = array<i32>} : memref<200x1xf32, #tpu.memory_space<vmem>>, vector<200x1xf32>,
    } else {
    }
    %c0_i32_23 = arith.constant 0 : i32
    %55 = arith.cmpi eq, %arg1, %c0_i32_23 : i32
    %56 = arith.extui %55 : i1 to i32
    %c0_i32_24 = arith.constant 0 : i32
    %57 = arith.cmpi ne, %56, %c0_i32_24 : i32
    scf.if %57 {
      %c0_25 = arith.constant 0 : index
      %c0_26 = arith.constant 0 : index
      %58 = vector.load %arg7[%c0_25, %c0_26] : memref<200x1xf32, #tpu.memory_space<vmem>>, vector<200x1xf32>
      %59 = vector.shape_cast %58 : vector<200x1xf32> to vector<1x200x1xf32>
      %cst_27 = arith.constant dense<0.000000e+00> : vector<1xf32>
      %60 = vector.multi_reduction <add>, %59, %cst_27 [1, 2] : vector<1x200x1xf32> to vector<1xf32>
      %61 = vector.shape_cast %60 : vector<1xf32> to vector<1x1x1xf32>
      %62 = vector.extract %61[0, 0, 0] : f32 from vector<1x1x1xf32>
      %63 = vector.broadcast %62 : f32 to vector<1x1xf32>
      %c0_28 = arith.constant 0 : index
      %c0_29 = arith.constant 0 : index
      %64 = vector.load %arg8[%c0_28, %c0_29] : memref<200x1xf32, #tpu.memory_space<vmem>>, vector<200x1xf32>
      %65 = vector.shape_cast %64 : vector<200x1xf32> to vector<1x200x1xf32>
      %cst_30 = arith.constant dense<0.000000e+00> : vector<1xf32>
      %66 = vector.multi_reduction <add>, %65, %cst_30 [1, 2] : vector<1x200x1xf32> to vector<1xf32>
      %67 = vector.shape_cast %66 : vector<1xf32> to vector<1x1x1xf32>
      %68 = vector.extract %67[0, 0, 0] : f32 from vector<1x1x1xf32>
      %69 = vector.broadcast %68 : f32 to vector<1x1xf32>
      %c0_31 = arith.constant 0 : index
      %c0_32 = arith.constant 0 : index
      %70 = vector.load %arg9[%c0_31, %c0_32] : memref<200x1xf32, #tpu.memory_space<vmem>>, vector<200x1xf32>
      %71 = vector.shape_cast %70 : vector<200x1xf32> to vector<1x200x1xf32>
      %cst_33 = arith.constant dense<0.000000e+00> : vector<1xf32>
      %72 = vector.multi_reduction <add>, %71, %cst_33 [1, 2] : vector<1x200x1xf32> to vector<1xf32>
      %73 = vector.shape_cast %72 : vector<1xf32> to vector<1x1x1xf32>
      %74 = vector.extract %73[0, 0, 0] : f32 from vector<1x1x1xf32>
      %75 = vector.broadcast %74 : f32 to vector<1x1xf32>
      %76 = tpu.iota {dimensions = array<i32: 1>} : vector<1x8x128xi32>
      %c0_i32_34 = arith.constant 0 : i32
      %77 = vector.broadcast %c0_i32_34 : i32 to vector<1x8x128xi32>
      %78 = arith.cmpi eq, %76, %77 : vector<1x8x128xi32>
      %c1_i32 = arith.constant 1 : i32
      %79 = vector.broadcast %c1_i32 : i32 to vector<1x8x128xi32>
      %80 = arith.cmpi eq, %76, %79 : vector<1x8x128xi32>
      %c2_i32 = arith.constant 2 : i32
      %81 = vector.broadcast %c2_i32 : i32 to vector<1x8x128xi32>
      %82 = arith.cmpi eq, %76, %81 : vector<1x8x128xi32>
      %cst_35 = arith.constant 0.000000e+00 : f32
      %83 = vector.shape_cast %75 : vector<1x1xf32> to vector<1x1x1xf32>
      %84 = vector.broadcast %83 : vector<1x1x1xf32> to vector<1x8x128xf32>
      %85 = vector.broadcast %cst_35 : f32 to vector<1x8x128xf32>
      %86 = arith.select %82, %84, %85 : vector<1x8x128xi1>, vector<1x8x128xf32>
      %87 = vector.shape_cast %69 : vector<1x1xf32> to vector<1x1x1xf32>
      %88 = vector.broadcast %87 : vector<1x1x1xf32> to vector<1x8x128xf32>
      %89 = arith.select %80, %88, %86 : vector<1x8x128xi1>, vector<1x8x128xf32>
      %90 = vector.shape_cast %63 : vector<1x1xf32> to vector<1x1x1xf32>
      %91 = vector.broadcast %90 : vector<1x1x1xf32> to vector<1x8x128xf32>
      %92 = arith.select %78, %91, %89 : vector<1x8x128xi1>, vector<1x8x128xf32>
      %c0_36 = arith.constant 0 : index
      %c0_37 = arith.constant 0 : index
      %c0_38 = arith.constant 0 : index
      %93 = vector.load %arg6[%c0_36, %c0_37, %c0_38] : memref<1x8x128xf32, #tpu.memory_space<vmem>>, vector<1x8x128xf32>
      tpu.vector_store %arg6[%c0_36, %c0_37, %c0_38], %92 {strides = array<i32>} : memref<1x8x128xf32, #tpu.memory_space<vmem>>, vector<1x8x128xf32>,
    } else {
    }
    return
  }
  func.func @transform_0(%arg0: i32, %arg1: i32) -> (i32, i32) {
    %c0_i32 = arith.constant 0 : i32
    %0 = arith.muli %arg0, %c0_i32 : i32
    %1 = arith.addi %arg1, %0 : i32
    %c0_i32_0 = arith.constant 0 : i32
    %c0_i32_1 = arith.constant 0 : i32
    return %1, %c0_i32_0 : i32, i32
  }
  func.func @transform_1(%arg0: i32, %arg1: i32) -> (i32, i32) {
    %c0_i32 = arith.constant 0 : i32
    %0 = arith.muli %arg0, %c0_i32 : i32
    %1 = arith.addi %arg1, %0 : i32
    %c0_i32_0 = arith.constant 0 : i32
    %c0_i32_1 = arith.constant 0 : i32
    return %1, %c0_i32_0 : i32, i32
  }
  func.func @transform_2(%arg0: i32, %arg1: i32) -> (i32, i32) {
    %c0_i32 = arith.constant 0 : i32
    %0 = arith.muli %arg0, %c0_i32 : i32
    %1 = arith.addi %arg1, %0 : i32
    %c0_i32_0 = arith.constant 0 : i32
    %c0_i32_1 = arith.constant 0 : i32
    return %1, %c0_i32_0 : i32, i32
  }
  func.func @transform_3(%arg0: i32, %arg1: i32) -> (i32, i32) {
    %c0_i32 = arith.constant 0 : i32
    %0 = arith.muli %arg0, %c0_i32 : i32
    %1 = arith.addi %arg1, %0 : i32
    %c0_i32_0 = arith.constant 0 : i32
    %c0_i32_1 = arith.constant 0 : i32
    return %1, %c0_i32_0 : i32, i32
  }
  func.func @transform_4(%arg0: i32, %arg1: i32) -> (i32, i32, i32) {
    %c0_i32 = arith.constant 0 : i32
    %c0_i32_0 = arith.constant 0 : i32
    %c0_i32_1 = arith.constant 0 : i32
    return %arg0, %c0_i32, %c0_i32_0 : i32, i32, i32
  }
}

</mosaic_0001>

<bundles_post_ra>
// kernel: tpu_custom_call.1
= control target key start
LH: loop header
LB: loop body
LE: loop exit
PB: predicated region body
PF: predicated region fallthrough
CT: control target
= control target key end

     0   :  { %9 = vsyncpa [#allocation6], 0  ;;  %s5616_s0 = inlined_call_operand.vmem [shape: f32[200,32], index: 0, kind: input, shape index: {}]   ;;  %s5617_s1 = inlined_call_operand.vmem [shape: f32[200,32], index: 1, kind: input, shape index: {}]   ;;  %s5618_s2 = inlined_call_operand.vmem [shape: f32[200,32], index: 2, kind: input, shape index: {}]   ;;  %s5619_s3 = inlined_call_operand.vmem [shape: f32[200,1], index: 3, kind: input, shape index: {}]   ;;  %s5620_s4 = inlined_call_operand.hbm [shape: f32[2,8,128], index: 4, kind: output, shape index: {}]  }
   0x1   :  { %11 = vsyncpa [#allocation6 + $0x1], 0  ;;  %s2903_s15 = smov 0   ;;  %s2905_s16 = smov 0  }
   0x2   :  { %s2907_s17 = smov 0   ;;  %s2909_s18 = smov 0  }
   0x3   :  { %s2911_s19 = smov 0   ;;  %s2913_s20 = smov 0  }
   0x4 LB: > { %s2543_s21 = sadd.s32 4294967295, %s2874_s20   ;;  %s2544_s22 = sadd.s32 4294967294, %s2874_s20   ;;  %s2874_s20 = sphi %s2913_s20, %s17_s20   ;;  %s2870_s19 = sphi %s2911_s19, %s5951_s19   ;;  %s2866_s18 = sphi %s2909_s18, %s5950_s18   ;;  %s2862_s17 = sphi %s2907_s17, %s5949_s17   ;;  %s2858_s16 = sphi %s2905_s16, %s5948_s16   ;;  %s2854_s15 = sphi %s2903_s15, %s5947_s15  }
   0x5   : > { %s29_s23 = sadd.s32 1, %s2870_s19  ;;  %s140_s24 = sadd.s32 1, %s2862_s17 }
   0x6   : > { %p31_p0 = scmp.ge.s32.totalorder %s29_s23, 2  ;;  %p150_p1 = scmp.ne.s32.totalorder %s2862_s17, %s2858_s16 }
   0x7   : > { %p151_p2 = scmp.eq.s32.totalorder %s2543_s21, 1  ;;  %p156_p3 = scmp.ne.s32.totalorder %s2858_s16, %s2854_s15 }
   0x8   : > { %s5953_s23 = smov (%p31_p0, %s29_s23), 0  ;;  %p157_p5 = scmp.eq.s32.totalorder %s2544_s22, 1 }
   0x9   : > { %p2943_p4 = por %p151_p2, %p150_p1  ;;  %s137_s26 = ssub.s32 %s2870_s19, %s5953_s23 }
   0xa   : > { %p2550_p6 = scmp.ge.s32.totalorder %s2874_s20, 1  ;;  %p138_p7 = scmp.eq.s32.totalorder %s137_s26, 0 }
   0xb   : > { %p2950_p8 = por %p157_p5, %p156_p3  ;;  %p211_p9 = scmp.lt.s32.totalorder %s2874_s20, 3 }
   0xc   : > { %s2956_s28 = scalar_select %p138_p7, %s2862_s17, %s140_s24  }
   0xd   : > { %p212_p10 = pnand %p2550_p6, %p211_p9 }
   0xf   : > { %215 = sbr.rel (%p212_p10) target bundleno = 785 (0x311), region = 36 }
  0x16   : > { %v2961_v0 = vld [vmem:[%s5616_s0 + $0x10] sm:$0xff]  ;;  %v2969_v2 = vld [vmem:[%s5616_s0] sm:$0xff]  ;;  %v2978_v5 = vld [vmem:[%s5616_s0 + $0x18] sm:$0xff]  ;;  %vm531_vm0 = vcmask 261120   ;;  %s249_s11 = sand.u32 1, %s2858_s16   ;;  %s1483_s12 = smul.u32 200, %s2866_s18 }
  0x17   : > { %v383_v1 = vld [vmem:[%s5617_s1 + $0x10] sm:$0xff]  ;;  %v381_v4 = vld [vmem:[%s5617_s1] sm:$0xff]  ;;  %v384_v6 = vld [vmem:[%s5617_s1 + $0x18] sm:$0xff]  ;;  %s3718_s13 = sshll.u32 %s249_s11, 3 }
  0x18   : > { %v458_v3 = vsub.f32 %v383_v1, %v2961_v0  ;;  %v456_v7 = vsub.f32 %v381_v4, %v2969_v2  ;;  %v459_v8 = vsub.f32 %v384_v6, %v2978_v5  ;;  %v2988_v9 = vld [vmem:[%s5616_s0 + $0x8] sm:$0xff]  ;;  %v3005_v15 = vld [vmem:[%s5616_s0 + $0x20] sm:$0xff]  ;;  %v3015_v21 = vld [vmem:[%s5616_s0 + $0x38] sm:$0xff]  ;;  %p3728_p11 = scmp.le.s32.totalorder %s1483_s12, 0  ;;  %s251_s24 = scalar_lea.vmem [#allocation5], %s3718_s13 }
  0x19   : > { %v382_v10 = vld [vmem:[%s5617_s1 + $0x8] sm:$0xff]  ;;  %v385_v16 = vld [vmem:[%s5617_s1 + $0x20] sm:$0xff]  ;;  %v388_v22 = vld [vmem:[%s5617_s1 + $0x38] sm:$0xff] }
  0x1a   : > { %v2996_v11 = vld [vmem:[%s5616_s0 + $0x28] sm:$0xff]  ;;  %v508_v12 = vmul.f32 %v458_v3, %v458_v3  ;;  %v457_v13 = vsub.f32 %v382_v10, %v2988_v9  ;;  %v506_v17 = vmul.f32 %v456_v7, %v456_v7  ;;  %v509_v18 = vmul.f32 %v459_v8, %v459_v8  ;;  %v3024_v25 = vld [vmem:[%s5616_s0 + $0x30] sm:$0xff]  ;;  %v3045_v36 = vld [vmem:[%s5616_s0 + $0x40] sm:$0xff] }
  0x1b   : > { %v386_v14 = vld [vmem:[%s5617_s1 + $0x28] sm:$0xff]  ;;  %v460_v20 = vsub.f32 %v385_v16, %v3005_v15  ;;  %v387_v26 = vld [vmem:[%s5617_s1 + $0x30] sm:$0xff]  ;;  %v463_v30 = vsub.f32 %v388_v22, %v3015_v21  ;;  %v389_v37 = vld [vmem:[%s5617_s1 + $0x40] sm:$0xff] }
  0x1c   : > { %v461_v19 = vsub.f32 %v386_v14, %v2996_v11  ;;  %v538_v23 = vsel %vm531_vm0, %v508_v12, 0.0  ;;  %v507_v24 = vmul.f32 %v457_v13, %v457_v13  ;;  %v532_v27 = vsel %vm531_vm0, %v506_v17, 0.0  ;;  %v3037_v34 = vld [vmem:[%s5616_s0 + $0x48] sm:$0xff]  ;;  %v3057_v44 = vld [vmem:[%s5616_s0 + $0x58] sm:$0xff]  ;;  %v3065_v46 = vld [vmem:[%s5616_s0 + $0x50] sm:$0xff] }
  0x1d   : > { %539 = vadd.xlane.f32.xlu1 %v538_v23  ;;  %533 = vadd.xlane.f32.xlu0 %v532_v27  ;;  %v541_v28 = vsel %vm531_vm0, %v509_v18, 0.0  ;;  %v510_v32 = vmul.f32 %v460_v20, %v460_v20  ;;  %v462_v33 = vsub.f32 %v387_v26, %v3024_v25  ;;  %v390_v35 = vld [vmem:[%s5617_s1 + $0x48] sm:$0xff]  ;;  %v513_v39 = vmul.f32 %v463_v30, %v463_v30  ;;  %v392_v45 = vld [vmem:[%s5617_s1 + $0x58] sm:$0xff]  ;;  %v391_v47 = vld [vmem:[%s5617_s1 + $0x50] sm:$0xff] }
  0x1e   : > { %v511_v29 = vmul.f32 %v461_v19, %v461_v19  ;;  %v535_v31 = vsel %vm531_vm0, %v507_v24, 0.0  ;;  %v465_v40 = vsub.f32 %v390_v35, %v3037_v34  ;;  %v464_v43 = vsub.f32 %v389_v37, %v3045_v36  ;;  %v3077_v54 = vld [vmem:[%s5616_s0 + $0x68] sm:$0xff]  ;;  %v3085_v56 = vld [vmem:[%s5616_s0 + $0x60] sm:$0xff]  ;;  %v3097_v1 = vld [vmem:[%s5616_s0 + $0x78] sm:$0xff] }
  0x1f   : > { %v544_v41 = vsel %vm531_vm0, %v510_v32, 0.0  ;;  %v512_v42 = vmul.f32 %v462_v33, %v462_v33  ;;  %v553_v48 = vsel %vm531_vm0, %v513_v39, 0.0  ;;  %v467_v50 = vsub.f32 %v392_v45, %v3057_v44  ;;  %v394_v55 = vld [vmem:[%s5617_s1 + $0x68] sm:$0xff]  ;;  %v393_v57 = vld [vmem:[%s5617_s1 + $0x60] sm:$0xff]  ;;  %v396_v3 = vld [vmem:[%s5617_s1 + $0x78] sm:$0xff] }
  0x20   : > { %v547_v38 = vsel %vm531_vm0, %v511_v29, 0.0  ;;  %v515_v49 = vmul.f32 %v465_v40, %v465_v40  ;;  %v514_v52 = vmul.f32 %v464_v43, %v464_v43  ;;  %v466_v53 = vsub.f32 %v391_v47, %v3065_v46  ;;  %v3105_v4 = vld [vmem:[%s5616_s0 + $0x70] sm:$0xff]  ;;  %v3117_v16 = vld [vmem:[%s5616_s0 + $0x88] sm:$0xff]  ;;  %v3125_v18 = vld [vmem:[%s5616_s0 + $0x80] sm:$0xff] }
  0x21   : > { %542 = vadd.xlane.f32.xlu1 %v541_v28  ;;  %536 = vadd.xlane.f32.xlu0 %v535_v31  ;;  %v550_v51 = vsel %vm531_vm0, %v512_v42, 0.0  ;;  %v517_v59 = vmul.f32 %v467_v50, %v467_v50  ;;  %v469_v60 = vsub.f32 %v394_v55, %v3077_v54  ;;  %v468_v63 = vsub.f32 %v393_v57, %v3085_v56  ;;  %v395_v6 = vld [vmem:[%s5617_s1 + $0x70] sm:$0xff]  ;;  %v398_v17 = vld [vmem:[%s5617_s1 + $0x88] sm:$0xff]  ;;  %v397_v19 = vld [vmem:[%s5617_s1 + $0x80] sm:$0xff] }
  0x22   : > { %v559_v58 = vsel %vm531_vm0, %v515_v49, 0.0  ;;  %v556_v61 = vsel %vm531_vm0, %v514_v52, 0.0  ;;  %v516_v62 = vmul.f32 %v466_v53, %v466_v53  ;;  %v471_v10 = vsub.f32 %v396_v3, %v3097_v1  ;;  %v3137_v28 = vld [vmem:[%s5616_s0 + $0x98] sm:$0xff]  ;;  %v3145_v30 = vld [vmem:[%s5616_s0 + $0x90] sm:$0xff]  ;;  %v3157_v40 = vld [vmem:[%s5616_s0 + $0xa8] sm:$0xff] }
  0x23   : > { %v565_v7 = vsel %vm531_vm0, %v517_v59, 0.0  ;;  %v519_v8 = vmul.f32 %v469_v60, %v469_v60  ;;  %v518_v13 = vmul.f32 %v468_v63, %v468_v63  ;;  %v470_v14 = vsub.f32 %v395_v6, %v3105_v4  ;;  %v400_v29 = vld [vmem:[%s5617_s1 + $0x98] sm:$0xff]  ;;  %v399_v31 = vld [vmem:[%s5617_s1 + $0x90] sm:$0xff]  ;;  %v3165_v42 = vld [vmem:[%s5616_s0 + $0xa0] sm:$0xff] }
  0x24   : > { %v562_v12 = vsel %vm531_vm0, %v516_v62, 0.0  ;;  %v521_v22 = vmul.f32 %v471_v10, %v471_v10  ;;  %v473_v23 = vsub.f32 %v398_v17, %v3117_v16  ;;  %v472_v27 = vsub.f32 %v397_v19, %v3125_v18  ;;  %v401_v43 = vld [vmem:[%s5617_s1 + $0xa0] sm:$0xff]  ;;  %v3177_v52 = vld [vmem:[%s5616_s0 + $0xb8] sm:$0xff]  ;;  %v3185_v55 = vld [vmem:[%s5616_s0 + $0xb0] sm:$0xff] }
  0x25   : > { %548 = vadd.xlane.f32.xlu1 %v547_v38  ;;  %545 = vadd.xlane.f32.xlu0 %v544_v41  ;;  %v571_v20 = vsel %vm531_vm0, %v519_v8, 0.0  ;;  %v568_v24 = vsel %vm531_vm0, %v518_v13, 0.0  ;;  %v520_v26 = vmul.f32 %v470_v14, %v470_v14  ;;  %v475_v35 = vsub.f32 %v400_v29, %v3137_v28  ;;  %v402_v41 = vld [vmem:[%s5617_s1 + $0xa8] sm:$0xff]  ;;  %v404_v53 = vld [vmem:[%s5617_s1 + $0xb8] sm:$0xff]  ;;  %v403_v57 = vld [vmem:[%s5617_s1 + $0xb0] sm:$0xff] }
  0x26   : > { %v577_v32 = vsel %vm531_vm0, %v521_v22, 0.0  ;;  %v523_v33 = vmul.f32 %v473_v23, %v473_v23  ;;  %v522_v38 = vmul.f32 %v472_v27, %v472_v27  ;;  %v474_v39 = vsub.f32 %v399_v31, %v3145_v30  ;;  %v3206_v8 = vld [vmem:[%s5616_s0 + $0xc0] sm:$0xff]  ;;  %v408_v23 = vld [vmem:[%s5618_s2 + $0x10] sm:$0xff] }
  0x27   : > { %v574_v37 = vsel %vm531_vm0, %v520_v26, 0.0  ;;  %v525_v47 = vmul.f32 %v475_v35, %v475_v35  ;;  %v479_v62 = vsub.f32 %v404_v53, %v3177_v52  ;;  %v478_v6 = vsub.f32 %v403_v57, %v3185_v55  ;;  %v405_v10 = vld [vmem:[%s5617_s1 + $0xc0] sm:$0xff]  ;;  %v407_v26 = vld [vmem:[%s5618_s2 + $0x8] sm:$0xff]  ;;  %v412_v57 = vld [vmem:[%s5618_s2 + $0x30] sm:$0xff] }
  0x28   : > { %v583_v45 = vsel %vm531_vm0, %v523_v33, 0.0  ;;  %v580_v49 = vsel %vm531_vm0, %v522_v38, 0.0  ;;  %v524_v50 = vmul.f32 %v474_v39, %v474_v39  ;;  %v3216_v17 = vld [vmem:[%s5619_s3] sm:$0xff]  ;;  %v480_v22 = vsub.f32 %v405_v10, %v3206_v8  ;;  %v3238_v33 = vld [vmem:[%s5619_s3 + $0x8] sm:$0xff] }
  0x29   : > { %554 = vadd.xlane.f32.xlu1 %v553_v48  ;;  %551 = vadd.xlane.f32.xlu0 %v550_v51  ;;  %v477_v48 = vsub.f32 %v402_v41, %v3157_v40  ;;  %v476_v51 = vsub.f32 %v401_v43, %v3165_v42  ;;  %v589_v60 = vsel %vm531_vm0, %v525_v47, 0.0  ;;  %v529_v13 = vmul.f32 %v479_v62, %v479_v62  ;;  %v410_v39 = vld [vmem:[%s5618_s2 + $0x20] sm:$0xff]  ;;  %v409_v43 = vld [vmem:[%s5618_s2 + $0x18] sm:$0xff] }
  0x2a   : > { %v586_v63 = vsel %vm531_vm0, %v524_v50, 0.0  ;;  %5678 = vst [vmem:[#allocation9_spill] sm:$0xff] %v3216_v17  ;;  %5680 = vst [vmem:[#allocation11_spill] sm:$0xff] %v3238_v33  ;;  %v482_v38 = vsub.f32 %v407_v26, %v2988_v9  ;;  %v484_v53 = vsub.f32 %v409_v43, %v2978_v5 }
  0x2b   : > { %v526_v3 = vmul.f32 %v476_v51, %v476_v51  ;;  %v601_v29 = vsel %vm531_vm0, %v529_v13, 0.0  ;;  %v3287_v13 = vld [vmem:[%s5619_s3 + $0x30] sm:$0xff] }
  0x2c   : > { %v808_v51 = vmul.f32 %v482_v38, %v482_v38  ;;  %5684 = vst [vmem:[#allocation15_spill] sm:$0xff] %v3287_v13 }
  0x2d   : > { %560 = vadd.xlane.f32.xlu1 %v559_v58  ;;  %557 = vadd.xlane.f32.xlu0 %v556_v61  ;;  %v3193_v58 = vld [vmem:[%s5619_s3 + $0x10] sm:$0xff]  ;;  %v527_v61 = vmul.f32 %v477_v48, %v477_v48  ;;  %v592_v19 = vsel %vm531_vm0, %v526_v3, 0.0  ;;  %v485_v48 = vsub.f32 %v410_v39, %v3005_v15  ;;  %v411_v15 = vld [vmem:[%s5618_s2 + $0x28] sm:$0xff]  ;;  %v487_v3 = vsub.f32 %v412_v57, %v3024_v25 }
  0x2e   : > { %5677 = vst [vmem:[#allocation8_spill] sm:$0xff] %v3193_v58  ;;  %v486_v10 = vsub.f32 %v411_v15, %v2996_v11 }
  0x31   : > { %566 = vadd.xlane.f32.xlu1 %v565_v7  ;;  %563 = vadd.xlane.f32.xlu0 %v562_v12  ;;  %v406_v7 = vld [vmem:[%s5618_s2] sm:$0xff]  ;;  %v595_v12 = vsel %vm531_vm0, %v527_v61, 0.0  ;;  %v3274_v61 = vld [vmem:[%s5619_s3 + $0x38] sm:$0xff] }
  0x32   : > { %v481_v14 = vsub.f32 %v406_v7, %v2969_v2  ;;  %v3227_v2 = vld [vmem:[%s5619_s3 + $0x18] sm:$0xff]  ;;  %5683 = vst [vmem:[#allocation14_spill] sm:$0xff] %v3274_v61  ;;  %v810_v7 = vmul.f32 %v484_v53, %v484_v53 }
  0x33   : > { %5679 = vst [vmem:[#allocation10_spill] sm:$0xff] %v3227_v2 }
  0x34   : > { %v807_v31 = vmul.f32 %v481_v14, %v481_v14  ;;  %v413_v14 = vld [vmem:[%s5618_s2 + $0x38] sm:$0xff]  ;;  %v841_v26 = vsel %vm531_vm0, %v810_v7, 0.0 }
  0x35   : > { %572 = vadd.xlane.f32.xlu1 %v571_v20  ;;  %569 = vadd.xlane.f32.xlu0 %v568_v24  ;;  %v528_v20 = vmul.f32 %v478_v6, %v478_v6  ;;  %v835_v6 = vsel %vm531_vm0, %v808_v51, 0.0  ;;  %v3328_v51 = vld [vmem:[%s5619_s3 + $0x58] sm:$0xff] }
  0x36   : > { %v832_v9 = vsel %vm531_vm0, %v807_v31, 0.0  ;;  %v488_v31 = vsub.f32 %v413_v14, %v3015_v21  ;;  %5687 = vst [vmem:[#allocation18_spill] sm:$0xff] %v3328_v51 }
  0x37   : > { %v598_v35 = vsel %vm531_vm0, %v528_v20, 0.0 }
  0x39   : > { %578 = vadd.xlane.f32.xlu1 %v577_v32  ;;  %575 = vadd.xlane.f32.xlu0 %v574_v37  ;;  %v483_v32 = vsub.f32 %v408_v23, %v2961_v0  ;;  %v530_v37 = vmul.f32 %v480_v22, %v480_v22  ;;  %v3249_v0 = vld [vmem:[%s5619_s3 + $0x28] sm:$0xff]  ;;  %v813_v22 = vmul.f32 %v487_v3, %v487_v3  ;;  %v420_v3 = vld [vmem:[%s5618_s2 + $0x70] sm:$0xff] }
  0x3a   : > { %5681 = vst [vmem:[#allocation12_spill] sm:$0xff] %v3249_v0 }
  0x3b   : > { %v809_v47 = vmul.f32 %v483_v32, %v483_v32  ;;  %v604_v50 = vsel %vm531_vm0, %v530_v37, 0.0  ;;  %v416_v32 = vld [vmem:[%s5618_s2 + $0x50] sm:$0xff]  ;;  %v415_v37 = vld [vmem:[%s5618_s2 + $0x48] sm:$0xff]  ;;  %v850_v38 = vsel %vm531_vm0, %v813_v22, 0.0  ;;  %v421_v22 = vld [vmem:[%s5618_s2 + $0x78] sm:$0xff] }
  0x3c   : > { %v491_v39 = vsub.f32 %v416_v32, %v3065_v46  ;;  %v424_v32 = vld [vmem:[%s5618_s2 + $0x90] sm:$0xff] }
  0x3d   : > { %584 = vadd.xlane.f32.xlu1 %v583_v45  ;;  %581 = vadd.xlane.f32.xlu0 %v580_v49  ;;  %v3260_v49 = vld [vmem:[%s5619_s3 + $0x20] sm:$0xff]  ;;  %v838_v5 = vsel %vm531_vm0, %v809_v47, 0.0  ;;  %v490_v47 = vsub.f32 %v415_v37, %v3037_v34  ;;  %v3361_v37 = vld [vmem:[%s5619_s3 + $0x50] sm:$0xff] }
  0x3e   : > { %5682 = vst [vmem:[#allocation13_spill] sm:$0xff] %v3260_v49  ;;  %v817_v34 = vmul.f32 %v491_v39, %v491_v39  ;;  %5688 = vst [vmem:[#allocation19_spill] sm:$0xff] %v3361_v37 }
  0x40   : > { %v862_v7 = vsel %vm531_vm0, %v817_v34, 0.0  ;;  %v425_v34 = vld [vmem:[%s5618_s2 + $0x98] sm:$0xff] }
  0x41   : > { %590 = vadd.xlane.f32.xlu1 %v589_v60  ;;  %587 = vadd.xlane.f32.xlu0 %v586_v63  ;;  %v811_v63 = vmul.f32 %v485_v48, %v485_v48  ;;  %v418_v48 = vld [vmem:[%s5618_s2 + $0x60] sm:$0xff]  ;;  %v5627_v60 = vmov 0.0  }
  0x42   : > { %v493_v57 = vsub.f32 %v418_v48, %v3085_v56  ;;  %v495_v56 = vsub.f32 %v420_v3, %v3105_v4 }
  0x43   : > { %v844_v20 = vsel %vm531_vm0, %v811_v63, 0.0 }
  0x45   : > { %596 = vadd.xlane.f32.xlu1 %v595_v12  ;;  %593 = vadd.xlane.f32.xlu0 %v592_v19  ;;  %v414_v12 = vld [vmem:[%s5618_s2 + $0x40] sm:$0xff]  ;;  %v3296_v19 = vld [vmem:[%s5619_s3 + $0x48] sm:$0xff] }
  0x46   : > { %5685 = vst [vmem:[#allocation16_spill] sm:$0xff] %v3296_v19  ;;  %v489_v23 = vsub.f32 %v414_v12, %v3045_v36 }
  0x48   : > { %v815_v21 = vmul.f32 %v489_v23, %v489_v23 }
  0x49   : > { %602 = vadd.xlane.f32.xlu1 %v601_v29  ;;  %599 = vadd.xlane.f32.xlu0 %v598_v35  ;;  %v812_v29 = vmul.f32 %v486_v10, %v486_v10  ;;  %v3309_v35 = vld [vmem:[%s5619_s3 + $0x40] sm:$0xff]  ;;  %v819_v10 = vmul.f32 %v493_v57, %v493_v57 }
  0x4a   : > { %5686 = vst [vmem:[#allocation17_spill] sm:$0xff] %v3309_v35  ;;  %v856_v53 = vsel %vm531_vm0, %v815_v21, 0.0 }
  0x4b   : > { %v847_v43 = vsel %vm531_vm0, %v812_v29, 0.0  ;;  %v868_v23 = vsel %vm531_vm0, %v819_v10, 0.0  ;;  %v428_v10 = vld [vmem:[%s5618_s2 + $0xb0] sm:$0xff] }
  0x4d   : > { %833 = vadd.xlane.f32.xlu1 %v832_v9  ;;  %605 = vadd.xlane.f32.xlu0 %v604_v50  ;;  %v814_v9 = vmul.f32 %v488_v31, %v488_v31  ;;  %v417_v50 = vld [vmem:[%s5618_s2 + $0x58] sm:$0xff] }
  0x4e   : > { %v492_v63 = vsub.f32 %v417_v50, %v3057_v44 }
  0x4f   : > { %v853_v15 = vsel %vm531_vm0, %v814_v9, 0.0 }
  0x50   : > { %v818_v14 = vmul.f32 %v492_v63, %v492_v63  ;;  %v3394_v63 = vld [vmem:[%s5619_s3 + $0x78] sm:$0xff] }
  0x51   : > { %839 = vadd.xlane.f32.xlu1 %v838_v5  ;;  %836 = vadd.xlane.f32.xlu0 %v835_v6  ;;  %v816_v5 = vmul.f32 %v490_v47, %v490_v47  ;;  %v419_v6 = vld [vmem:[%s5618_s2 + $0x68] sm:$0xff]  ;;  %5691 = vst [vmem:[#allocation22_spill] sm:$0xff] %v3394_v63 }
  0x52   : > { %v494_v44 = vsub.f32 %v419_v6, %v3077_v54  ;;  %v865_v29 = vsel %vm531_vm0, %v818_v14, 0.0  ;;  %v496_v54 = vsub.f32 %v421_v22, %v3097_v1  ;;  %v3370_v1 = vld [vmem:[%s5619_s3 + $0x68] sm:$0xff] }
  0x53   : > { %v859_v12 = vsel %vm531_vm0, %v816_v5, 0.0  ;;  %5689 = vst [vmem:[#allocation20_spill] sm:$0xff] %v3370_v1  ;;  %v3416_v22 = vld [vmem:[%s5619_s3 + $0x88] sm:$0xff] }
  0x54   : > { %v820_v31 = vmul.f32 %v494_v44, %v494_v44  ;;  %v822_v48 = vmul.f32 %v496_v54, %v496_v54  ;;  %5693 = vst [vmem:[#allocation24_spill] sm:$0xff] %v3416_v22  ;;  %v429_v54 = vld [vmem:[%s5618_s2 + $0xb8] sm:$0xff] }
  0x55   : > { %845 = vadd.xlane.f32.xlu1 %v844_v20  ;;  %842 = vadd.xlane.f32.xlu0 %v841_v26  ;;  %v422_v20 = vld [vmem:[%s5618_s2 + $0x80] sm:$0xff]  ;;  %v821_v26 = vmul.f32 %v495_v56, %v495_v56 }
  0x56   : > { %v497_v4 = vsub.f32 %v422_v20, %v3125_v18  ;;  %v871_v47 = vsel %vm531_vm0, %v820_v31, 0.0  ;;  %v877_v3 = vsel %vm531_vm0, %v822_v48, 0.0  ;;  %v503_v20 = vsub.f32 %v428_v10, %v3185_v55  ;;  %v3427_v55 = vld [vmem:[%s5619_s3 + $0x80] sm:$0xff] }
  0x57   : > { %v874_v21 = vsel %vm531_vm0, %v821_v26, 0.0  ;;  %5694 = vst [vmem:[#allocation25_spill] sm:$0xff] %v3427_v55  ;;  %v504_v48 = vsub.f32 %v429_v54, %v3177_v52  ;;  %v3454_v52 = vld [vmem:[%s5619_s3 + $0xa8] sm:$0xff]  ;;  %v3462_v10 = vld [vmem:[%s5619_s3 + $0xa0] sm:$0xff] }
  0x58   : > { %v823_v39 = vmul.f32 %v497_v4, %v497_v4  ;;  %5697 = vst [vmem:[#allocation28_spill] sm:$0xff] %v3454_v52  ;;  %5698 = vst [vmem:[#allocation29_spill] sm:$0xff] %v3462_v10 }
  0x59   : > { %851 = vadd.xlane.f32.xlu1 %v850_v38  ;;  %848 = vadd.xlane.f32.xlu0 %v847_v43  ;;  %v423_v38 = vld [vmem:[%s5618_s2 + $0x88] sm:$0xff]  ;;  %v499_v43 = vsub.f32 %v424_v32, %v3145_v30  ;;  %v3386_v30 = vld [vmem:[%s5619_s3 + $0x60] sm:$0xff] }
  0x5a   : > { %v498_v50 = vsub.f32 %v423_v38, %v3117_v16  ;;  %5690 = vst [vmem:[#allocation21_spill] sm:$0xff] %v3386_v30  ;;  %v880_v57 = vsel %vm531_vm0, %v823_v39, 0.0  ;;  %v829_v38 = vmul.f32 %v503_v20, %v503_v20  ;;  %v3438_v39 = vld [vmem:[%s5619_s3 + $0x98] sm:$0xff]  ;;  %v3474_v20 = vld [vmem:[%s5619_s3 + $0xb0] sm:$0xff] }
  0x5b   : > { %5695 = vst [vmem:[#allocation26_spill] sm:$0xff] %v3438_v39  ;;  %5700 = vst [vmem:[#allocation31_spill] sm:$0xff] %v3474_v20 }
  0x5c   : > { %v824_v6 = vmul.f32 %v498_v50, %v498_v50 }
  0x5d   : > { %857 = vadd.xlane.f32.xlu1 %v856_v53  ;;  %854 = vadd.xlane.f32.xlu0 %v853_v15  ;;  %v426_v53 = vld [vmem:[%s5618_s2 + $0xa0] sm:$0xff]  ;;  %v825_v15 = vmul.f32 %v499_v43, %v499_v43 }
  0x5e   : > { %v501_v16 = vsub.f32 %v426_v53, %v3165_v42  ;;  %v427_v42 = vld [vmem:[%s5618_s2 + $0xa8] sm:$0xff]  ;;  %v3446_v53 = vld [vmem:[%s5619_s3 + $0x90] sm:$0xff] }
  0x5f   : > { %v502_v4 = vsub.f32 %v427_v42, %v3157_v40  ;;  %5696 = vst [vmem:[#allocation27_spill] sm:$0xff] %v3446_v53 }
  0x60   : > { %v827_v44 = vmul.f32 %v501_v16, %v501_v16  ;;  %v830_v16 = vmul.f32 %v504_v48, %v504_v48 }
  0x61   : > { %863 = vadd.xlane.f32.xlu1 %v862_v7  ;;  %860 = vadd.xlane.f32.xlu0 %v859_v12  ;;  %v500_v7 = vsub.f32 %v425_v34, %v3137_v28  ;;  %v3408_v12 = vld [vmem:[%s5619_s3 + $0x70] sm:$0xff]  ;;  %v886_v28 = vsel %vm531_vm0, %v825_v15, 0.0 }
  0x62   : > { %5692 = vst [vmem:[#allocation23_spill] sm:$0xff] %v3408_v12  ;;  %v892_v40 = vsel %vm531_vm0, %v827_v44, 0.0 }
  0x63   : > { %v826_v26 = vmul.f32 %v500_v7, %v500_v7  ;;  %v901_v7 = vsel %vm531_vm0, %v830_v16, 0.0 }
  0x65   : > { %869 = vadd.xlane.f32.xlu1 %v868_v23  ;;  %866 = vadd.xlane.f32.xlu0 %v865_v29  ;;  %v883_v23 = vsel %vm531_vm0, %v824_v6, 0.0  ;;  %v430_v29 = vld [vmem:[%s5618_s2 + $0xc0] sm:$0xff]  ;;  %v889_v43 = vsel %vm531_vm0, %v826_v26, 0.0 }
  0x66   : > { %v3480_v26 = vld [vmem:[%s5619_s3 + $0xc0] sm:$0xff] }
  0x67   : > { %5701 = vst [vmem:[#allocation32_spill] sm:$0xff] %v3480_v26 }
  0x69   : > { %875 = vadd.xlane.f32.xlu1 %v874_v21  ;;  %872 = vadd.xlane.f32.xlu0 %v871_v47  ;;  %v505_v21 = vsub.f32 %v430_v29, %v3206_v8  ;;  %v828_v47 = vmul.f32 %v502_v4, %v502_v4  ;;  %v898_v8 = vsel %vm531_vm0, %v829_v38, 0.0 }
  0x6b   : > { %v831_v34 = vmul.f32 %v505_v21, %v505_v21  ;;  %v895_v15 = vsel %vm531_vm0, %v828_v47, 0.0 }
  0x6d   : > { %881 = vadd.xlane.f32.xlu1 %v880_v57  ;;  %878 = vadd.xlane.f32.xlu0 %v877_v3  ;;  %v904_v6 = vsel %vm531_vm0, %v831_v34, 0.0 }
  0x71   : > { %887 = vadd.xlane.f32.xlu1 %v886_v28  ;;  %884 = vadd.xlane.f32.xlu0 %v883_v23  ;;  %v3468_v28 = vld [vmem:[%s5619_s3 + $0xb8] sm:$0xff] }
  0x72   : > { %5699 = vst [vmem:[#allocation30_spill] sm:$0xff] %v3468_v28 }
  0x75   : > { %893 = vadd.xlane.f32.xlu1 %v892_v40  ;;  %890 = vadd.xlane.f32.xlu0 %v889_v43 }
  0x79   : > { %899 = vadd.xlane.f32.xlu1 %v898_v8  ;;  %896 = vadd.xlane.f32.xlu0 %v895_v15 }
  0x7d   : > { %905 = vadd.xlane.f32.xlu1 %v904_v6  ;;  %902 = vadd.xlane.f32.xlu0 %v901_v7 }
  0xaa   : > { %v540_v29 = vpop.xlane.xlu1 %539  ;;  %v534_v54 = vpop.xlane.xlu0 %533 }
  0xab   : > { %v609_v40 = vadd.f32 1e-08, %v540_v29  ;;  %v607_v38 = vadd.f32 1e-08, %v534_v54 }
  0xad   : > { %2671 = vrsqrt.f32 %v609_v40  ;;  %vm648_vm1 = vcmp.eq.f32.partialorder %v609_v40, inf  ;;  %vm650_vm2 = vcmp.eq.f32.partialorder %v609_v40, 0.0  ;;  %vm634_vm3 = vcmp.eq.f32.partialorder %v607_v38, inf }
  0xae   : > { %v543_v21 = vpop.xlane.xlu1 %542  ;;  %v537_v47 = vpop.xlane.xlu0 %536  ;;  %2673 = vrsqrt.f32 %v607_v38  ;;  %v637_v32 = vand.u32 2147483648, %v607_v38  ;;  %vm636_vm6 = vcmp.eq.f32.partialorder %v607_v38, 0.0 }
  0xaf   : > { %v610_v43 = vadd.f32 1e-08, %v543_v21  ;;  %v608_v48 = vadd.f32 1e-08, %v537_v47 }
  0xb1   : > { %2675 = vrsqrt.f32 %v610_v43  ;;  %vm655_vm4 = vcmp.eq.f32.partialorder %v610_v43, inf  ;;  %vm641_vm5 = vcmp.eq.f32.partialorder %v608_v48, inf  ;;  %vm657_vm7 = vcmp.eq.f32.partialorder %v610_v43, 0.0 }
  0xb2   : > { %v549_v8 = vpop.xlane.xlu1 %548  ;;  %2677 = vrsqrt.f32 %v608_v48  ;;  %v546_v15 = vpop.xlane.xlu0 %545  ;;  %vm643_vm9 = vcmp.eq.f32.partialorder %v608_v48, 0.0 }
  0xb3   : > { %v3483_v34 = vadd.f32 1e-08, %v549_v8  ;;  %v3485_v16 = vadd.f32 1e-08, %v546_v15 }
  0xb5   : > { %2679 = vrsqrt.f32 %v3483_v34  ;;  %vm669_vm8 = vcmp.eq.f32.partialorder %v3483_v34, inf  ;;  %vm662_vm10 = vcmp.eq.f32.partialorder %v3485_v16, inf  ;;  %vm671_vm11 = vcmp.eq.f32.partialorder %v3483_v34, 0.0 }
  0xb6   : > { %2681 = vrsqrt.f32 %v3485_v16  ;;  %v555_v6 = vpop.xlane.xlu1 %554  ;;  %v552_v7 = vpop.xlane.xlu0 %551  ;;  %vm664_vm12 = vcmp.eq.f32.partialorder %v3485_v16, 0.0 }
  0xb7   : > { %v3489_v29 = vadd.f32 1e-08, %v555_v6  ;;  %v2672_v54 = vpop.eup %2671  ;;  %v3491_v21 = vadd.f32 1e-08, %v552_v7 }
  0xb8   : > { %v2674_v4 = vpop.eup %2673  ;;  %v647_v15 = vmul.f32 %v2672_v54, %v609_v40 }
  0xb9   : > { %2683 = vrsqrt.f32 %v3489_v29  ;;  %v633_v42 = vmul.f32 %v2674_v4, %v607_v38  ;;  %vm683_vm13 = vcmp.eq.f32.partialorder %v3489_v29, inf  ;;  %vm685_vm14 = vcmp.eq.f32.partialorder %v3489_v29, 0.0 }
  0xba   : > { %v561_v47 = vpop.xlane.xlu1 %560  ;;  %v558_v8 = vpop.xlane.xlu0 %557  ;;  %2685 = vrsqrt.f32 %v3491_v21  ;;  %v649_v56 = vsel %vm648_vm1, %v609_v40, %v647_v15  ;;  %v644_v15 = vand.u32 2147483648, %v608_v48  ;;  %vm676_vm15 = vcmp.eq.f32.partialorder %v3491_v21, inf }
  0xbb   : > { %v2676_v44 = vpop.eup %2675  ;;  %v3493_v23 = vadd.f32 1e-08, %v561_v47  ;;  %v3497_v6 = vadd.f32 1e-08, %v558_v8  ;;  %v651_v47 = vand.u32 2147483648, %v609_v40  ;;  %v635_v14 = vsel %vm634_vm3, %v607_v38, %v633_v42 }
  0xbc   : > { %v2678_v3 = vpop.eup %2677  ;;  %v654_v57 = vmul.f32 %v2676_v44, %v610_v43  ;;  %v638_v18 = vsel %vm636_vm6, %v637_v32, %v635_v14  ;;  %v672_v38 = vand.u32 2147483648, %v3483_v34  ;;  %v665_v14 = vand.u32 2147483648, %v3485_v16 }
  0xbd   : > { %v640_v7 = vmul.f32 %v2678_v3, %v608_v48  ;;  %2687 = vrsqrt.f32 %v3493_v23  ;;  %v658_v3 = vand.u32 2147483648, %v610_v43  ;;  %v652_v46 = vsel %vm650_vm2, %v651_v47, %v649_v56 }
  0xbe   : > { %v656_v54 = vsel %vm655_vm4, %v610_v43, %v654_v57  ;;  %2689 = vrsqrt.f32 %v3497_v6  ;;  %v567_v8 = vpop.xlane.xlu1 %566  ;;  %v564_v5 = vpop.xlane.xlu0 %563  ;;  %v1109_v40 = vsub.f32 %v652_v46, %v3193_v58  ;;  %v1107_v56 = vsub.f32 %v638_v18, %v3216_v17 }
  0xbf   : > { %v2680_v50 = vpop.eup %2679  ;;  %v642_v9 = vsel %vm641_vm5, %v608_v48, %v640_v7  ;;  %v659_v42 = vsel %vm657_vm7, %v658_v3, %v656_v54  ;;  %v3521_v3 = vadd.f32 1e-08, %v567_v8  ;;  %vm678_vm0 = vcmp.eq.f32.partialorder %v3491_v21, 0.0 }
  0xc0   : > { %v2682_v31 = vpop.eup %2681  ;;  %v668_v4 = vmul.f32 %v2680_v50, %v3483_v34  ;;  %v645_v57 = vsel %vm643_vm9, %v644_v15, %v642_v9  ;;  %v1110_v32 = vsub.f32 %v659_v42, %v3227_v2  ;;  %v3523_v15 = vadd.f32 0.2, %v1109_v40 }
  0xc1   : > { %v661_v44 = vmul.f32 %v2682_v31, %v3485_v16  ;;  %v679_v8 = vand.u32 2147483648, %v3491_v21  ;;  %vm697_vm1 = vcmp.eq.f32.partialorder %v3493_v23, inf  ;;  %vm699_vm2 = vcmp.eq.f32.partialorder %v3493_v23, 0.0 }
  0xc2   : > { %v670_v50 = vsel %vm669_vm8, %v3483_v34, %v668_v4  ;;  %v573_v47 = vpop.xlane.xlu1 %572  ;;  %v1108_v4 = vsub.f32 %v645_v57, %v3238_v33  ;;  %v570_v46 = vpop.xlane.xlu0 %569  ;;  %v686_v34 = vand.u32 2147483648, %v3489_v29  ;;  %v3529_v57 = vadd.f32 0.2, %v1110_v32 }
  0xc3   : > { %v2684_v31 = vpop.eup %2683  ;;  %v663_v43 = vsel %vm662_vm10, %v3485_v16, %v661_v44  ;;  %v673_v48 = vsel %vm671_vm11, %v672_v38, %v670_v50  ;;  %v3525_v16 = vadd.f32 0.2, %v1107_v56  ;;  %2691 = vrsqrt.f32 %v3521_v3 }
  0xc4   : > { %v2686_v7 = vpop.eup %2685  ;;  %v666_v54 = vsel %vm664_vm12, %v665_v14, %v663_v43  ;;  %v682_v18 = vmul.f32 %v2684_v31, %v3489_v29  ;;  %v1112_v42 = vsub.f32 %v673_v48, %v3249_v0  ;;  %v3534_v43 = vadd.f32 0.2, %v1108_v4 }
  0xc5   : > { %v675_v44 = vmul.f32 %v2686_v7, %v3491_v21  ;;  %v1111_v38 = vsub.f32 %v666_v54, %v3260_v49  ;;  %v3544_v56 = vadd.f32 1e-08, %v564_v5  ;;  %v5625_v32 = vmax.f32 %v3523_v15, 0.0 }
  0xc6   : > { %v684_v7 = vsel %vm683_vm13, %v3489_v29, %v682_v18  ;;  %v579_v14 = vpop.xlane.xlu1 %578  ;;  %v5626_v48 = vmax.f32 %v3525_v16, 0.0  ;;  %v576_v54 = vpop.xlane.xlu0 %575  ;;  %v5622_v11 = vmax.f32 %v3529_v57, 0.0  ;;  %v3560_v25 = vadd.f32 1e-08, %v573_v47 }
  0xc7   : > { %v2688_v9 = vpop.eup %2687  ;;  %v677_v40 = vsel %vm676_vm15, %v3491_v21, %v675_v44  ;;  %v3552_v36 = vadd.f32 0.2, %v1111_v38  ;;  %v700_v44 = vand.u32 2147483648, %v3493_v23  ;;  %v687_v5 = vsel %vm685_vm14, %v686_v34, %v684_v7 }
  0xc8   : > { %v2690_v50 = vpop.eup %2689  ;;  %v696_v31 = vmul.f32 %v2688_v9, %v3493_v23  ;;  %v3548_v9 = vadd.f32 0.2, %v1112_v42  ;;  %v680_v62 = vsel %vm678_vm0, %v679_v8, %v677_v40  ;;  %v3562_v42 = vadd.f32 1e-08, %v570_v46 }
  0xc9   : > { %v689_v4 = vmul.f32 %v2690_v50, %v3497_v6  ;;  %v5624_v50 = vmax.f32 %v3534_v43, 0.0  ;;  %vm690_vm3 = vcmp.eq.f32.partialorder %v3497_v6, inf  ;;  %2693 = vrsqrt.f32 %v3544_v56 }
  0xca   : > { %v698_v18 = vsel %vm697_vm1, %v3493_v23, %v696_v31  ;;  %v3567_v38 = vadd.f32 1e-08, %v579_v14  ;;  %v5621_v31 = vmax.f32 %v3548_v9, 0.0  ;;  %2695 = vrsqrt.f32 %v3560_v25  ;;  %v585_v8 = vpop.xlane.xlu1 %584  ;;  %v582_v23 = vpop.xlane.xlu0 %581 }
  0xcb   : > { %v701_v29 = vsel %vm699_vm2, %v700_v44, %v698_v18  ;;  %v691_v21 = vsel %vm690_vm3, %v3497_v6, %v689_v4  ;;  %v1114_v47 = vsub.f32 %v687_v5, %v3274_v61  ;;  %v1113_v46 = vsub.f32 %v680_v62, %v3287_v13 }
  0xcc   : > { %v693_v34 = vand.u32 2147483648, %v3497_v6  ;;  %2697 = vrsqrt.f32 %v3562_v42  ;;  %v5623_v7 = vmax.f32 %v3552_v36, 0.0  ;;  %vm692_vm4 = vcmp.eq.f32.partialorder %v3497_v6, 0.0 }
  0xcd   : > { %2699 = vrsqrt.f32 %v3567_v38  ;;  %vm3583_vm5 = vcmp.gt.f32.partialorder %v5625_v32, 0.0  ;;  %v1116_v62 = vsub.f32 %v701_v29, %v3296_v19  ;;  %v3588_v4 = vadd.f32 1e-08, %v576_v54  ;;  %v2692_v5 = vpop.eup %2691 }
  0xce   : > { %v694_v14 = vsel %vm692_vm4, %v693_v34, %v691_v21  ;;  %vm3592_vm6 = vcmp.gt.f32.partialorder %v5626_v48, 0.0  ;;  %vm3598_vm7 = vcmp.gt.f32.partialorder %v5622_v11, 0.0  ;;  %vm3604_vm8 = vcmp.gt.f32.partialorder %v5624_v50, 0.0 }
  0xcf   : > { %v3608_v54 = vadd.f32 1e-08, %v585_v8  ;;  %vm3612_vm9 = vcmp.gt.f32.partialorder %v5621_v31, 0.0  ;;  %v3616_v21 = vadd.f32 0.2, %v1114_v47  ;;  %2701 = vrsqrt.f32 %v3588_v4 }
  0xd0   : > { %v3618_v34 = vadd.f32 0.2, %v1113_v46  ;;  %vm1286_vm10 = vcmp.gt.f32.partialorder %v5623_v7, 0.0  ;;  %v1115_v45 = vsub.f32 %v694_v14, %v3309_v35  ;;  %v3625_v8 = vadd.f32 1e-08, %v582_v23  ;;  %v591_v46 = vpop.xlane.xlu1 %590 }
  0xd1   : > { %2703 = vrsqrt.f32 %v3608_v54  ;;  %v3630_v27 = vsel %vm3583_vm5, 1.0, %v5627_v60  ;;  %v3632_v47 = vadd.f32 0.2, %v1116_v62  ;;  %v3637_v59 = vsel %vm3592_vm6, 1.0, %v5627_v60  ;;  %v588_v62 = vpop.xlane.xlu0 %587 }
  0xd2   : > { %v3642_v14 = vsel %vm3598_vm7, 1.0, %v5627_v60  ;;  %v3647_v23 = vsel %vm3604_vm8, 1.0, %v5627_v60  ;;  %v710_v40 = vmul.f32 %v2692_v5, %v3521_v3  ;;  %v3653_v18 = vsel %vm3612_vm9, 1.0, %v5627_v60 }
  0xd3   : > { %v2694_v41 = vpop.eup %2693  ;;  %v3656_v24 = vsel %vm1286_vm10, 1.0, %v5627_v60  ;;  %v5629_v6 = vmax.f32 %v3616_v21, 0.0  ;;  %v3660_v44 = vadd.f32 0.2, %v1115_v45  ;;  %vm711_vm11 = vcmp.eq.f32.partialorder %v3521_v3, inf }
  0xd4   : > { %v2696_v11 = vpop.eup %2695  ;;  %2705 = vrsqrt.f32 %v3625_v8  ;;  %v3664_v5 = vadd.f32 1e-08, %v591_v46  ;;  %vm713_vm12 = vcmp.eq.f32.partialorder %v3521_v3, 0.0  ;;  %v714_v50 = vand.u32 2147483648, %v3521_v3 }
  0xd5   : > { %v3669_v32 = vadd.f32 1e-08, %v588_v62  ;;  %v712_v60 = vsel %vm711_vm11, %v3521_v3, %v710_v40  ;;  %v703_v45 = vmul.f32 %v2694_v41, %v3544_v56  ;;  %vm704_vm13 = vcmp.eq.f32.partialorder %v3544_v56, inf  ;;  %v597_v40 = vpop.xlane.xlu1 %596  ;;  %v594_v35 = vpop.xlane.xlu0 %593 }
  0xd6   : > { %v2698_v7 = vpop.eup %2697  ;;  %v724_v31 = vmul.f32 %v2696_v11, %v3560_v25  ;;  %vm3677_vm14 = vcmp.gt.f32.partialorder %v5629_v6, 0.0  ;;  %v5714_v29 = vmax.f32 %v3618_v34, 0.0  ;;  %vm706_vm0 = vcmp.eq.f32.partialorder %v3544_v56, 0.0 }
  0xd7   : > { %v2700_v48 = vpop.eup %2699  ;;  %v707_v41 = vand.u32 2147483648, %v3544_v56  ;;  %vm725_vm1 = vcmp.eq.f32.partialorder %v3560_v25, inf  ;;  %v717_v11 = vmul.f32 %v2698_v7, %v3562_v42  ;;  %vm727_vm2 = vcmp.eq.f32.partialorder %v3560_v25, 0.0 }
  0xd8   : > { %vm3683_vm15 = vcmp.gt.f32.partialorder %v5714_v29, 0.0  ;;  %v738_v26 = vmul.f32 %v2700_v48, %v3567_v38  ;;  %2707 = vrsqrt.f32 %v3664_v5  ;;  %v715_v20 = vsel %vm713_vm12, %v714_v50, %v712_v60 }
  0xd9   : > { %v2702_v29 = vpop.eup %2701  ;;  %v728_v19 = vand.u32 2147483648, %v3560_v25  ;;  %vm718_vm3 = vcmp.eq.f32.partialorder %v3562_v42, inf  ;;  %2709 = vrsqrt.f32 %v3669_v32  ;;  %v705_v48 = vsel %vm704_vm13, %v3544_v56, %v703_v45 }
  0xda   : > { %v726_v6 = vsel %vm725_vm1, %v3560_v25, %v724_v31  ;;  %vm720_vm4 = vcmp.eq.f32.partialorder %v3562_v42, 0.0  ;;  %v731_v3 = vmul.f32 %v2702_v29, %v3588_v4  ;;  %v719_v60 = vsel %vm718_vm3, %v3562_v42, %v717_v11 }
  0xdb   : > { %v2704_v7 = vpop.eup %2703  ;;  %v721_v50 = vand.u32 2147483648, %v3562_v42  ;;  %vm739_vm5 = vcmp.eq.f32.partialorder %v3567_v38, inf  ;;  %v1118_v45 = vsub.f32 %v715_v20, %v3328_v51  ;;  %v742_v13 = vand.u32 2147483648, %v3567_v38  ;;  %v603_v20 = vpop.xlane.xlu1 %602 }
  0xdc   : > { %v752_v61 = vmul.f32 %v2704_v7, %v3608_v54  ;;  %v740_v31 = vsel %vm739_vm5, %v3567_v38, %v738_v26  ;;  %vm732_vm6 = vcmp.eq.f32.partialorder %v3588_v4, inf  ;;  %v708_v11 = vsel %vm706_vm0, %v707_v41, %v705_v48 }
  0xdd   : > { %v729_v29 = vsel %vm727_vm2, %v728_v19, %v726_v6  ;;  %v733_v7 = vsel %vm732_vm6, %v3588_v4, %v731_v3  ;;  %vm753_vm7 = vcmp.eq.f32.partialorder %v3608_v54, inf  ;;  %v722_v51 = vsel %vm720_vm4, %v721_v50, %v719_v60  ;;  %v3744_v60 = vpop.xlane.xlu0 %599 }
  0xde   : > { %v2706_v26 = vpop.eup %2705  ;;  %vm741_vm8 = vcmp.eq.f32.partialorder %v3567_v38, 0.0  ;;  %v735_v56 = vand.u32 2147483648, %v3588_v4  ;;  %v754_v25 = vsel %vm753_vm7, %v3608_v54, %v752_v61  ;;  %vm734_vm9 = vcmp.eq.f32.partialorder %v3588_v4, 0.0 }
  0xdf   : > { %v743_v19 = vsel %vm741_vm8, %v742_v13, %v740_v31  ;;  %vm755_vm10 = vcmp.eq.f32.partialorder %v3608_v54, 0.0  ;;  %v756_v6 = vand.u32 2147483648, %v3608_v54  ;;  %v3740_v41 = vadd.f32 0.2, %v1118_v45  ;;  %v834_v62 = vpop.xlane.xlu1 %833 }
  0xe0   : > { %v1117_v48 = vsub.f32 %v708_v11, %v3361_v37  ;;  %v1120_v42 = vsub.f32 %v729_v29, %v3370_v1  ;;  %v736_v3 = vsel %vm734_vm9, %v735_v56, %v733_v7  ;;  %v1119_v38 = vsub.f32 %v722_v51, %v3386_v30 }
  0xe1   : > { %v757_v50 = vsel %vm755_vm10, %v756_v6, %v754_v25  ;;  %v745_v61 = vmul.f32 %v2706_v26, %v3625_v8  ;;  %v3748_v13 = vadd.f32 1e-08, %v597_v40  ;;  %v5718_v31 = vmov 0.0  }
  0xe2   : > { %v2708_v4 = vpop.eup %2707  ;;  %v3753_v54 = vsel %vm3677_vm14, 1.0, %v5718_v31  ;;  %v3758_v45 = vsel %vm3683_vm15, 1.0, %v5718_v31  ;;  %v5719_v11 = vmax.f32 %v3632_v47, 0.0  ;;  %v1122_v40 = vsub.f32 %v743_v19, %v3394_v63 }
  0xe3   : > { %v2710_v29 = vpop.eup %2709  ;;  %v1121_v7 = vsub.f32 %v736_v3, %v3408_v12  ;;  %vm746_vm12 = vcmp.eq.f32.partialorder %v3625_v8, inf  ;;  %vm748_vm13 = vcmp.eq.f32.partialorder %v3625_v8, 0.0  ;;  %v749_v46 = vand.u32 2147483648, %v3625_v8 }
  0xe4   : > { %vm3762_vm11 = vcmp.gt.f32.partialorder %v5719_v11, 0.0  ;;  %v5722_v26 = vmax.f32 %v3660_v44, 0.0  ;;  %v3778_v6 = vadd.f32 0.2, %v1117_v48  ;;  %v3780_v19 = vadd.f32 0.2, %v1120_v42  ;;  %v3795_v42 = vpop.xlane.xlu0 %605 }
  0xe5   : > { %v1124_v3 = vsub.f32 %v757_v50, %v3416_v22  ;;  %v3783_v11 = vadd.f32 0.2, %v1119_v38  ;;  %v747_v63 = vsel %vm746_vm12, %v3625_v8, %v745_v61  ;;  %v766_v12 = vmul.f32 %v2708_v4, %v3664_v5 }
  0xe6   : > { %vm3773_vm14 = vcmp.gt.f32.partialorder %v5722_v26, 0.0  ;;  %2711 = vrsqrt.f32 %v3748_v13  ;;  %v3788_v26 = vadd.f32 0.2, %v1122_v40  ;;  %v759_v1 = vmul.f32 %v2710_v29, %v3669_v32 }
  0xe7   : > { %v3791_v30 = vadd.f32 1e-08, %v594_v35  ;;  %v3793_v48 = vadd.f32 1e-08, %v603_v20  ;;  %v3797_v25 = vadd.f32 0.2, %v1121_v7  ;;  %v3812_v20 = vsel %vm748_vm13, %v749_v46, %v747_v63 }
  0xe8   : > { %5725 = vst [vmem:[#allocation33_spill] sm:$0xff] %v3788_v26  ;;  %vm767_vm15 = vcmp.eq.f32.partialorder %v3664_v5, inf  ;;  %vm769_vm0 = vcmp.eq.f32.partialorder %v3664_v5, 0.0  ;;  %v770_v38 = vand.u32 2147483648, %v3664_v5  ;;  %v5726_v50 = vmax.f32 %v3740_v41, 0.0  ;;  %v3836_v29 = vpop.xlane.xlu0 %836 }
  0xe9   : > { %v3808_v35 = vadd.f32 0.2, %v1124_v3  ;;  %vm760_vm2 = vcmp.eq.f32.partialorder %v3669_v32, inf  ;;  %v5643_v4 = vmax.f32 %v3778_v6, 0.0  ;;  %v768_v7 = vsel %vm767_vm15, %v3664_v5, %v766_v12 }
  0xea   : > { %vm3804_vm1 = vcmp.gt.f32.partialorder %v5726_v50, 0.0  ;;  %v840_v50 = vpop.xlane.xlu1 %839  ;;  %v761_v3 = vsel %vm760_vm2, %v3669_v32, %v759_v1  ;;  %vm762_vm3 = vcmp.eq.f32.partialorder %v3669_v32, 0.0  ;;  %2713 = vrsqrt.f32 %v3791_v30 }
  0xeb   : > { %5729 = vst [vmem:[#allocation34_spill] sm:$0xff] %v3808_v35  ;;  %v1123_v8 = vsub.f32 %v3812_v20, %v3427_v55  ;;  %v763_v46 = vand.u32 2147483648, %v3669_v32  ;;  %v3827_v40 = vadd.f32 1e-08, %v834_v62  ;;  %v5642_v12 = vmax.f32 %v3808_v35, 0.0 }
  0xec   : > { %v3832_v22 = vsel %vm769_vm0, %v770_v38, %v768_v7  ;;  %v3834_v1 = vadd.f32 1e-08, %v840_v50  ;;  %vm280_vm4 = vcmask 7168   ;;  %v3841_v63 = vsel %vm3762_vm11, 1.0, %v5718_v31 }
  0xed   : > { %vm3845_vm5 = vcmp.gt.f32.partialorder %v5643_v4, 0.0  ;;  %v3849_v62 = vsel %vm762_vm3, %v763_v46, %v761_v3  ;;  %2715 = vrsqrt.f32 %v3793_v48  ;;  %281 = vst.msk [vmem:[#allocation2] sm:$0xff] %vm280_vm4, %v5718_v31  ;;  %282 = vst.msk [vmem:[#allocation2 + $0x8] sm:$0xff] %vm280_vm4, %v5718_v31  ;;  %v5732_v5 = vmax.f32 %v3780_v19, 0.0  ;;  %v843_v4 = vpop.xlane.xlu0 %842 }
  0xee   : > { %283 = vst.msk [vmem:[#allocation2 + $0x10] sm:$0xff] %vm280_vm4, %v5718_v31  ;;  %284 = vst.msk [vmem:[#allocation2 + $0x18] sm:$0xff] %vm280_vm4, %v5718_v31  ;;  %v5733_v51 = vmax.f32 %v3783_v11, 0.0  ;;  %v5734_v38 = vmax.f32 %v3788_v26, 0.0  ;;  %2717 = vrsqrt.f32 %v3827_v40  ;;  %v4012_v50 = vsel %vm3773_vm14, 1.0, %v5718_v31  ;;  %v2771_v26 = vld [vmem:[%s5619_s3] sm:$0xff] }
  0xef   : > { %285 = vst.msk [vmem:[#allocation2 + $0x20] sm:$0xff] %vm280_vm4, %v5718_v31  ;;  %286 = vst.msk [vmem:[#allocation2 + $0x28] sm:$0xff] %vm280_vm4, %v5718_v31  ;;  %vm1295_vm6 = vcmp.gt.f32.partialorder %v5732_v5, 0.0  ;;  %v4017_v3 = vsel %vm3804_vm1, 1.0, %v5718_v31  ;;  %v4022_v46 = vadd.f32 0.2, %v1123_v8  ;;  %v1126_v5 = vsub.f32 %v3832_v22, %v3438_v39 }
  0xf0   : > { %287 = vst.msk [vmem:[#allocation2 + $0x30] sm:$0xff] %vm280_vm4, %v5718_v31  ;;  %288 = vst.msk [vmem:[#allocation2 + $0x38] sm:$0xff] %vm280_vm4, %v5718_v31  ;;  %vm1294_vm7 = vcmp.gt.f32.partialorder %v5733_v51, 0.0  ;;  %vm1297_vm8 = vcmp.gt.f32.partialorder %v5734_v38, 0.0  ;;  %v2712_v7 = vpop.eup %2711  ;;  %v846_v51 = vpop.xlane.xlu1 %845  ;;  %v5735_v38 = vmax.f32 %v3797_v25, 0.0  ;;  %vm1299_vm10 = vcmp.gt.f32.partialorder %v5642_v12, 0.0 }
  0xf1   : > { %289 = vst.msk [vmem:[#allocation2 + $0x40] sm:$0xff] %vm280_vm4, %v5718_v31  ;;  %290 = vst.msk [vmem:[#allocation2 + $0x48] sm:$0xff] %vm280_vm4, %v5718_v31  ;;  %v1125_v56 = vsub.f32 %v3849_v62, %v3446_v53  ;;  %2719 = vrsqrt.f32 %v3834_v1  ;;  %v4036_v61 = vsel %vm3845_vm5, 1.0, %v5718_v31  ;;  %v4039_v20 = vsel %vm1295_vm6, 1.0, %v5718_v31 }
  0xf2   : > { %291 = vst.msk [vmem:[#allocation2 + $0x50] sm:$0xff] %vm280_vm4, %v5718_v31  ;;  %292 = vst.msk [vmem:[#allocation2 + $0x58] sm:$0xff] %vm280_vm4, %v5718_v31  ;;  %vm1296_vm9 = vcmp.gt.f32.partialorder %v5735_v38, 0.0  ;;  %v4042_v22 = vsel %vm1294_vm7, 1.0, %v5718_v31  ;;  %v4045_v8 = vsel %vm1297_vm8, 1.0, %v5718_v31  ;;  %v780_v38 = vmul.f32 %v2712_v7, %v3748_v13 }
  0xf3   : > { %293 = vst.msk [vmem:[#allocation2 + $0x60] sm:$0xff] %vm280_vm4, %v5718_v31  ;;  %294 = vst.msk [vmem:[#allocation2 + $0x68] sm:$0xff] %vm280_vm4, %v5718_v31  ;;  %v4049_v62 = vadd.f32 1e-08, %v3744_v60  ;;  %v4052_v12 = vadd.f32 1e-08, %v3836_v29 }
  0xf4   : > { %295 = vst.msk [vmem:[#allocation2 + $0x70] sm:$0xff] %vm280_vm4, %v5718_v31  ;;  %296 = vst.msk [vmem:[#allocation2 + $0x78] sm:$0xff] %vm280_vm4, %v5718_v31  ;;  %v4054_v32 = vadd.f32 1e-08, %v846_v51  ;;  %v4057_v39 = vsel %vm1296_vm9, 1.0, %v5718_v31  ;;  %v4060_v53 = vsel %vm1299_vm10, 1.0, %v5718_v31  ;;  %v2714_v7 = vpop.eup %2713 }
  0xf5   : > { %297 = vst.msk [vmem:[#allocation2 + $0x80] sm:$0xff] %vm280_vm4, %v5718_v31  ;;  %298 = vst.msk [vmem:[#allocation2 + $0x88] sm:$0xff] %vm280_vm4, %v5718_v31  ;;  %v4063_v37 = vadd.f32 0.2, %v1126_v5  ;;  %v4065_v0 = vadd.f32 0.2, %v1125_v56  ;;  %2721 = vrsqrt.f32 %v4052_v12  ;;  %v773_v49 = vmul.f32 %v2714_v7, %v3791_v30 }
  0xf6   : > { %299 = vst.msk [vmem:[#allocation2 + $0x90] sm:$0xff] %vm280_vm4, %v5718_v31  ;;  %300 = vst.msk [vmem:[#allocation2 + $0x98] sm:$0xff] %vm280_vm4, %v5718_v31  ;;  %vm781_vm11 = vcmp.eq.f32.partialorder %v3748_v13, inf  ;;  %vm783_vm12 = vcmp.eq.f32.partialorder %v3748_v13, 0.0  ;;  %v784_v60 = vand.u32 2147483648, %v3748_v13  ;;  %vm774_vm13 = vcmp.eq.f32.partialorder %v3791_v30, inf }
  0xf7   : > { %301 = vst.msk [vmem:[#allocation2 + $0xa0] sm:$0xff] %vm280_vm4, %v5718_v31  ;;  %302 = vst.msk [vmem:[#allocation2 + $0xa8] sm:$0xff] %vm280_vm4, %v5718_v31  ;;  %2723 = vrsqrt.f32 %v4054_v32  ;;  %v4073_v29 = vadd.f32 1e-08, %v843_v4  ;;  %v782_v5 = vsel %vm781_vm11, %v3748_v13, %v780_v38  ;;  %vm776_vm14 = vcmp.eq.f32.partialorder %v3791_v30, 0.0  ;;  %v2716_v56 = vpop.eup %2715  ;;  %v852_v13 = vpop.xlane.xlu1 %851 }
  0xf8   : > { %303 = vst.msk [vmem:[#allocation2 + $0xb0] sm:$0xff] %vm280_vm4, %v5718_v31  ;;  %304 = vst.msk [vmem:[#allocation2 + $0xb8] sm:$0xff] %vm280_vm4, %v5718_v31  ;;  %2725 = vrsqrt.f32 %v4049_v62  ;;  %v4079_v51 = vadd.f32 1e-08, %v3795_v42  ;;  %v777_v2 = vand.u32 2147483648, %v3791_v30  ;;  %vm795_vm15 = vcmp.eq.f32.partialorder %v3793_v48, inf  ;;  %v2718_v4 = vpop.eup %2717 }
  0xf9   : > { %305 = vst.msk [vmem:[#allocation2 + $0xc0] sm:$0xff] %vm280_vm4, %v5718_v31  ;;  %306 = vst.msk [vmem:[#allocation3] sm:$0xff] %vm280_vm4, %v5718_v31  ;;  %v798_v38 = vand.u32 2147483648, %v3793_v48  ;;  %vm934_vm0 = vcmp.eq.f32.partialorder %v3827_v40, inf  ;;  %v4091_v42 = vsel %vm783_vm12, %v784_v60, %v782_v5  ;;  %vm797_vm1 = vcmp.eq.f32.partialorder %v3793_v48, 0.0  ;;  %v849_v60 = vpop.xlane.xlu0 %848 }
  0xfa   : > { %307 = vst.msk [vmem:[#allocation3 + $0x8] sm:$0xff] %vm280_vm4, %v5718_v31  ;;  %308 = vst.msk [vmem:[#allocation3 + $0x10] sm:$0xff] %vm280_vm4, %v5718_v31  ;;  %v933_v7 = vmul.f32 %v2718_v4, %v3827_v40  ;;  %vm936_vm2 = vcmp.eq.f32.partialorder %v3827_v40, 0.0  ;;  %2727 = vrsqrt.f32 %v4073_v29  ;;  %v937_v58 = vand.u32 2147483648, %v3827_v40 }
  0xfb   : > { %309 = vst.msk [vmem:[#allocation3 + $0x18] sm:$0xff] %vm280_vm4, %v5718_v31  ;;  %310 = vst.msk [vmem:[#allocation3 + $0x20] sm:$0xff] %vm280_vm4, %v5718_v31  ;;  %v2720_v55 = vpop.eup %2719  ;;  %2729 = vrsqrt.f32 %v4079_v51  ;;  %vm948_vm3 = vcmp.eq.f32.partialorder %v3834_v1, inf  ;;  %v775_v5 = vsel %vm774_vm13, %v3791_v30, %v773_v49  ;;  %v794_v4 = vmul.f32 %v2716_v56, %v3793_v48 }
  0xfc   : > { %311 = vst.msk [vmem:[#allocation3 + $0x28] sm:$0xff] %vm280_vm4, %v5718_v31  ;;  %312 = vst.msk [vmem:[#allocation3 + $0x30] sm:$0xff] %vm280_vm4, %v5718_v31  ;;  %v935_v17 = vsel %vm934_vm0, %v3827_v40, %v933_v7  ;;  %vm950_vm5 = vcmp.eq.f32.partialorder %v3834_v1, 0.0  ;;  %v947_v33 = vmul.f32 %v2720_v55, %v3834_v1  ;;  %vm941_vm6 = vcmp.eq.f32.partialorder %v4052_v12, inf }
  0xfd   : > { %313 = vst.msk [vmem:[#allocation3 + $0x38] sm:$0xff] %vm280_vm4, %v5718_v31  ;;  %314 = vst.msk [vmem:[#allocation3 + $0x40] sm:$0xff] %vm280_vm4, %v5718_v31  ;;  %v938_v35 = vsel %vm936_vm2, %v937_v58, %v935_v17  ;;  %v4115_v49 = vadd.f32 1e-08, %v852_v13  ;;  %v4117_v40 = vadd.f32 1e-08, %v849_v60  ;;  %v778_v7 = vsel %vm776_vm14, %v777_v2, %v775_v5 }
  0xfe   : > { %315 = vst.msk [vmem:[#allocation3 + $0x48] sm:$0xff] %vm280_vm4, %v5718_v31  ;;  %316 = vst.msk [vmem:[#allocation3 + $0x50] sm:$0xff] %vm280_vm4, %v5718_v31  ;;  %v949_v58 = vsel %vm948_vm3, %v3834_v1, %v947_v33  ;;  %vm943_vm7 = vcmp.eq.f32.partialorder %v4052_v12, 0.0  ;;  %v944_v17 = vand.u32 2147483648, %v4052_v12  ;;  %vm788_vm8 = vcmp.eq.f32.partialorder %v4049_v62, inf  ;;  %v2772_v33 = vld [vmem:[%s5619_s3 + $0x10] sm:$0xff] }
  0xff   : > { %317 = vst.msk [vmem:[#allocation3 + $0x58] sm:$0xff] %vm280_vm4, %v5718_v31  ;;  %318 = vst.msk [vmem:[#allocation3 + $0x60] sm:$0xff] %vm280_vm4, %v5718_v31  ;;  %v2722_v56 = vpop.eup %2721  ;;  %vm962_vm9 = vcmp.eq.f32.partialorder %v4054_v32, inf  ;;  %vm964_vm10 = vcmp.eq.f32.partialorder %v4054_v32, 0.0  ;;  %v965_v5 = vand.u32 2147483648, %v4054_v32  ;;  %2731 = vrsqrt.f32 %v4115_v49 }
 0x100   : > { %319 = vst.msk [vmem:[#allocation3 + $0x68] sm:$0xff] %vm280_vm4, %v5718_v31  ;;  %320 = vst.msk [vmem:[#allocation3 + $0x70] sm:$0xff] %vm280_vm4, %v5718_v31  ;;  %v940_v2 = vmul.f32 %v2722_v56, %v4052_v12  ;;  %vm790_vm11 = vcmp.eq.f32.partialorder %v4049_v62, 0.0  ;;  %vm955_vm13 = vcmp.eq.f32.partialorder %v4073_v29, inf  ;;  %vm957_vm14 = vcmp.eq.f32.partialorder %v4073_v29, 0.0 }
 0x101   : > { %321 = vst.msk [vmem:[#allocation3 + $0x78] sm:$0xff] %vm280_vm4, %v5718_v31  ;;  %322 = vst.msk [vmem:[#allocation3 + $0x80] sm:$0xff] %vm280_vm4, %v5718_v31  ;;  %v2724_v55 = vpop.eup %2723  ;;  %vm802_vm0 = vcmp.eq.f32.partialorder %v4079_v51, inf  ;;  %2733 = vrsqrt.f32 %v4117_v40  ;;  %vm976_vm3 = vcmp.eq.f32.partialorder %v4115_v49, inf }
 0x102   : > { %323 = vst.msk [vmem:[#allocation3 + $0x88] sm:$0xff] %vm280_vm4, %v5718_v31  ;;  %324 = vst.msk [vmem:[#allocation3 + $0x90] sm:$0xff] %vm280_vm4, %v5718_v31  ;;  %v2726_v13 = vpop.eup %2725 }
 0x103   : > { %325 = vst.msk [vmem:[#allocation3 + $0x98] sm:$0xff] %vm280_vm4, %v5718_v31  ;;  %326 = vst.msk [vmem:[#allocation3 + $0xa0] sm:$0xff] %vm280_vm4, %v5718_v31 }
 0x104   : > { %327 = vst.msk [vmem:[#allocation3 + $0xa8] sm:$0xff] %vm280_vm4, %v5718_v31  ;;  %328 = vst.msk [vmem:[#allocation3 + $0xb0] sm:$0xff] %vm280_vm4, %v5718_v31 }
 0x105   : > { %329 = vst.msk [vmem:[#allocation3 + $0xb8] sm:$0xff] %vm280_vm4, %v5718_v31  ;;  %330 = vst.msk [vmem:[#allocation3 + $0xc0] sm:$0xff] %vm280_vm4, %v5718_v31 }
 0x106   : > { %331 = vst.msk [vmem:[#allocation4] sm:$0xff] %vm280_vm4, %v5718_v31  ;;  %332 = vst.msk [vmem:[#allocation4 + $0x8] sm:$0xff] %vm280_vm4, %v5718_v31 }
 0x107   : > { %333 = vst.msk [vmem:[#allocation4 + $0x10] sm:$0xff] %vm280_vm4, %v5718_v31  ;;  %334 = vst.msk [vmem:[#allocation4 + $0x18] sm:$0xff] %vm280_vm4, %v5718_v31 }
 0x108   : > { %335 = vst.msk [vmem:[#allocation4 + $0x20] sm:$0xff] %vm280_vm4, %v5718_v31  ;;  %336 = vst.msk [vmem:[#allocation4 + $0x28] sm:$0xff] %vm280_vm4, %v5718_v31 }
 0x109   : > { %337 = vst.msk [vmem:[#allocation4 + $0x30] sm:$0xff] %vm280_vm4, %v5718_v31  ;;  %338 = vst.msk [vmem:[#allocation4 + $0x38] sm:$0xff] %vm280_vm4, %v5718_v31 }
 0x10a   : > { %339 = vst.msk [vmem:[#allocation4 + $0x40] sm:$0xff] %vm280_vm4, %v5718_v31  ;;  %340 = vst.msk [vmem:[#allocation4 + $0x48] sm:$0xff] %vm280_vm4, %v5718_v31 }
 0x10b   : > { %341 = vst.msk [vmem:[#allocation4 + $0x50] sm:$0xff] %vm280_vm4, %v5718_v31  ;;  %342 = vst.msk [vmem:[#allocation4 + $0x58] sm:$0xff] %vm280_vm4, %v5718_v31 }
 0x10c   : > { %343 = vst.msk [vmem:[#allocation4 + $0x60] sm:$0xff] %vm280_vm4, %v5718_v31  ;;  %344 = vst.msk [vmem:[#allocation4 + $0x68] sm:$0xff] %vm280_vm4, %v5718_v31 }
 0x10d   : > { %345 = vst.msk [vmem:[#allocation4 + $0x70] sm:$0xff] %vm280_vm4, %v5718_v31  ;;  %346 = vst.msk [vmem:[#allocation4 + $0x78] sm:$0xff] %vm280_vm4, %v5718_v31 }
 0x10e   : > { %347 = vst.msk [vmem:[#allocation4 + $0x80] sm:$0xff] %vm280_vm4, %v5718_v31  ;;  %348 = vst.msk [vmem:[#allocation4 + $0x88] sm:$0xff] %vm280_vm4, %v5718_v31 }
 0x10f   : > { %349 = vst.msk [vmem:[#allocation4 + $0x90] sm:$0xff] %vm280_vm4, %v5718_v31  ;;  %350 = vst.msk [vmem:[#allocation4 + $0x98] sm:$0xff] %vm280_vm4, %v5718_v31 }
 0x110   : > { %351 = vst.msk [vmem:[#allocation4 + $0xa0] sm:$0xff] %vm280_vm4, %v5718_v31  ;;  %352 = vst.msk [vmem:[#allocation4 + $0xa8] sm:$0xff] %vm280_vm4, %v5718_v31 }
 0x111   : > { %353 = vst.msk [vmem:[#allocation4 + $0xb0] sm:$0xff] %vm280_vm4, %v5718_v31  ;;  %354 = vst.msk [vmem:[#allocation4 + $0xb8] sm:$0xff] %vm280_vm4, %v5718_v31 }
 0x112   : > { %355 = vst.msk [vmem:[#allocation4 + $0xc0] sm:$0xff] %vm280_vm4, %v5718_v31  ;;  %5736 = vst [vmem:[#allocation35_spill] sm:$0xff] %v4045_v8  ;;  %v951_v8 = vand.u32 2147483648, %v3834_v1  ;;  %v961_v1 = vmul.f32 %v2724_v55, %v4054_v32  ;;  %v5739_v55 = vmax.f32 %v3525_v16, 0.0 }
 0x113   : > { %5737 = vst [vmem:[#allocation36_spill] sm:$0xff] %v4060_v53  ;;  %5738 = vst [vmem:[#allocation37_spill] sm:$0xff] %v4065_v0  ;;  %v1182_v0 = vsub.f32 %v2771_v26, %v938_v35  ;;  %v796_v26 = vsel %vm795_vm15, %v3793_v48, %v794_v4  ;;  %v2773_v48 = vld [vmem:[%s5619_s3 + $0x8] sm:$0xff] }
 0x114   : > { %v952_v30 = vsel %vm950_vm5, %v951_v8, %v949_v58  ;;  %v1127_v8 = vsub.f32 %v778_v7, %v3462_v10  ;;  %v4147_v56 = vsel %vm797_vm1, %v798_v38, %v796_v26  ;;  %v855_v7 = vpop.xlane.xlu0 %854  ;;  %vm978_vm5 = vcmp.eq.f32.partialorder %v4115_v49, 0.0 }
 0x115   : > { %v1207_v35 = vadd.f32 0.2, %v1182_v0  ;;  %v1184_v60 = vsub.f32 %v2772_v33, %v952_v30  ;;  %v942_v0 = vsel %vm941_vm6, %v4052_v12, %v940_v2  ;;  %v858_v30 = vpop.xlane.xlu1 %857  ;;  %v2728_v33 = vpop.eup %2727  ;;  %v787_v2 = vmul.f32 %v2726_v13, %v4049_v62 }
 0x116   : > { %v2730_v26 = vpop.eup %2729 }
 0x117   : > { %v1232_v4 = vmax.f32 %v1207_v35, 0.0  ;;  %v1209_v58 = vadd.f32 0.2, %v1184_v60  ;;  %v945_v35 = vsel %vm943_vm7, %v944_v17, %v942_v0  ;;  %v963_v17 = vsel %vm962_vm9, %v4054_v32, %v961_v1  ;;  %v2774_v1 = vld [vmem:[%s5619_s3 + $0x20] sm:$0xff] }
 0x118   : > { %v1183_v38 = vsub.f32 %v2773_v48, %v945_v35  ;;  %v5740_v0 = vmax.f32 %v3523_v15, 0.0  ;;  %v789_v15 = vsel %vm788_vm8, %v4049_v62, %v787_v2  ;;  %vm969_vm7 = vcmp.eq.f32.partialorder %v4117_v40, inf }
 0x119   : > { %v4155_v53 = vadd.f32 %v1232_v4, %v5739_v55  ;;  %vm1357_vm12 = vcmp.gt.f32.partialorder %v1232_v4, 0.0  ;;  %v1234_v12 = vmax.f32 %v1209_v58, 0.0  ;;  %v966_v4 = vsel %vm964_vm10, %v965_v5, %v963_v17 }
 0x11a   : > { %v2577_v60 = vsel %vm1357_vm12, 1.0, %v5718_v31  ;;  %v1208_v13 = vadd.f32 0.2, %v1183_v38  ;;  %v1186_v58 = vsub.f32 %v2774_v1, %v966_v4  ;;  %v954_v55 = vmul.f32 %v2728_v33, %v4073_v29  ;;  %v864_v33 = vpop.xlane.xlu1 %863  ;;  %v2775_v1 = vld [vmem:[%s5619_s3 + $0x18] sm:$0xff] }
 0x11b   : > { %v4166_v16 = vadd.f32 %v2577_v60, %v3637_v59  ;;  %v4173_v35 = vadd.f32 %v1234_v12, %v5740_v0  ;;  %vm1359_vm15 = vcmp.gt.f32.partialorder %v1234_v12, 0.0  ;;  %v4179_v59 = vadd.f32 0.2, %v1127_v8 }
 0x11c   : > { %v2579_v48 = vsel %vm1359_vm15, 1.0, %v5718_v31  ;;  %v1233_v32 = vmax.f32 %v1208_v13, 0.0  ;;  %v958_v5 = vand.u32 2147483648, %v4073_v29  ;;  %v1211_v60 = vadd.f32 0.2, %v1186_v58  ;;  %v2732_v58 = vpop.eup %2731 }
 0x11d   : > { %v4187_v38 = vadd.f32 %v2579_v48, %v3630_v27  ;;  %v956_v12 = vsel %vm955_vm13, %v4073_v29, %v954_v55  ;;  %v5742_v8 = vmax.f32 %v3534_v43, 0.0  ;;  %v861_v27 = vpop.xlane.xlu0 %860  ;;  %v5743_v55 = vand.u32 2147483648, %v4049_v62 }
 0x11e   : > { %vm1358_vm1 = vcmp.gt.f32.partialorder %v1233_v32, 0.0  ;;  %v959_v13 = vsel %vm957_vm14, %v958_v5, %v956_v12  ;;  %v1236_v0 = vmax.f32 %v1211_v60, 0.0  ;;  %v801_v48 = vmul.f32 %v2730_v26, %v4079_v51  ;;  %v870_v26 = vpop.xlane.xlu1 %869 }
 0x11f   : > { %5741 = vst [vmem:[#allocation38_spill] sm:$0xff] %v4187_v38  ;;  %v4195_v17 = vadd.f32 %v1233_v32, %v5742_v8  ;;  %v2578_v4 = vsel %vm1358_vm1, 1.0, %v5718_v31  ;;  %v1185_v43 = vsub.f32 %v2775_v1, %v959_v13  ;;  %v4210_v29 = vsel %vm790_vm11, %v5743_v55, %v789_v15 }
 0x120   : > { %v4214_v32 = vadd.f32 %v2578_v4, %v3647_v23  ;;  %v4216_v5 = vadd.f32 1e-08, %v858_v30  ;;  %v5745_v60 = vmax.f32 %v3552_v36, 0.0  ;;  %vm1361_vm2 = vcmp.gt.f32.partialorder %v1236_v0, 0.0 }
 0x121   : > { %v1210_v8 = vadd.f32 0.2, %v1185_v43  ;;  %v975_v13 = vmul.f32 %v2732_v58, %v4115_v49  ;;  %v2581_v1 = vsel %vm1361_vm2, 1.0, %v5718_v31  ;;  %v979_v62 = vand.u32 2147483648, %v4115_v49  ;;  %v867_v58 = vpop.xlane.xlu0 %866 }
 0x122   : > { %5744 = vst [vmem:[#allocation39_spill] sm:$0xff] %v4214_v32  ;;  %v4220_v12 = vadd.f32 %v1236_v0, %v5745_v60  ;;  %2735 = vrsqrt.f32 %v4216_v5  ;;  %v4228_v23 = vadd.f32 %v2581_v1, %v3656_v24  ;;  %v4232_v4 = vadd.f32 1e-08, %v855_v7  ;;  %v4249_v7 = vld [vmem:[%s5619_s3 + $0xb0] sm:$0xff] }
 0x123   : > { %v1235_v30 = vmax.f32 %v1210_v8, 0.0  ;;  %v977_v36 = vsel %vm976_vm3, %v4115_v49, %v975_v13  ;;  %v4234_v0 = vadd.f32 1e-08, %v864_v33  ;;  %v4236_v43 = vadd.f32 1e-08, %v861_v27  ;;  %v2776_v49 = vld [vmem:[%s5619_s3 + $0x30] sm:$0xff] }
 0x124   : > { %5746 = vst [vmem:[#allocation40_spill] sm:$0xff] %v4228_v23  ;;  %v980_v15 = vsel %vm978_vm5, %v979_v62, %v977_v36  ;;  %v5747_v60 = vmax.f32 %v3529_v57, 0.0  ;;  %2737 = vrsqrt.f32 %v4232_v4  ;;  %v4255_v57 = vadd.f32 1e-08, %v870_v26 }
 0x125   : > { %vm1360_vm6 = vcmp.gt.f32.partialorder %v1235_v30, 0.0  ;;  %v1188_v8 = vsub.f32 %v2776_v49, %v980_v15  ;;  %v4260_v13 = vsel %vm802_vm0, %v4079_v51, %v801_v48  ;;  %2739 = vrsqrt.f32 %v4234_v0  ;;  %v873_v49 = vpop.xlane.xlu0 %872 }
 0x126   : > { %v4241_v24 = vadd.f32 %v1235_v30, %v5747_v60  ;;  %v2580_v27 = vsel %vm1360_vm6, 1.0, %v5718_v31  ;;  %v2734_v30 = vpop.eup %2733  ;;  %vm971_vm8 = vcmp.eq.f32.partialorder %v4117_v40, 0.0  ;;  %v972_v36 = vand.u32 2147483648, %v4117_v40 }
 0x127   : > { %v4263_v1 = vadd.f32 %v2580_v27, %v3642_v14  ;;  %v1213_v62 = vadd.f32 0.2, %v1188_v8  ;;  %2741 = vrsqrt.f32 %v4236_v43  ;;  %v968_v15 = vmul.f32 %v2734_v30, %v4117_v40  ;;  %v876_v14 = vpop.xlane.xlu1 %875 }
 0x128   : > { %vm990_vm9 = vcmp.eq.f32.partialorder %v4216_v5, inf  ;;  %vm992_vm10 = vcmp.eq.f32.partialorder %v4216_v5, 0.0  ;;  %v993_v48 = vand.u32 2147483648, %v4216_v5  ;;  %vm983_vm11 = vcmp.eq.f32.partialorder %v4232_v4, inf }
 0x129   : > { %5748 = vst [vmem:[#allocation41_spill] sm:$0xff] %v4263_v1  ;;  %v1238_v26 = vmax.f32 %v1213_v62, 0.0  ;;  %v986_v60 = vand.u32 2147483648, %v4232_v4  ;;  %2743 = vrsqrt.f32 %v4255_v57  ;;  %v5749_v8 = vmax.f32 %v3618_v34, 0.0 }
 0x12a   : > { %v970_v62 = vsel %vm969_vm7, %v4117_v40, %v968_v15  ;;  %vm985_vm13 = vcmp.eq.f32.partialorder %v4232_v4, 0.0  ;;  %vm1004_vm14 = vcmp.eq.f32.partialorder %v4234_v0, inf  ;;  %v1007_v30 = vand.u32 2147483648, %v4234_v0 }
 0x12b   : > { %v4279_v27 = vadd.f32 %v1238_v26, %v5749_v8  ;;  %vm1363_vm12 = vcmp.gt.f32.partialorder %v1238_v26, 0.0  ;;  %v973_v2 = vsel %vm971_vm8, %v972_v36, %v970_v62  ;;  %vm1006_vm15 = vcmp.eq.f32.partialorder %v4234_v0, 0.0  ;;  %v2778_v8 = vld [vmem:[%s5619_s3 + $0x28] sm:$0xff] }
 0x12c   : > { %v2736_v55 = vpop.eup %2735  ;;  %v2583_v33 = vsel %vm1363_vm12, 1.0, %v5718_v31  ;;  %v4291_v34 = vadd.f32 1e-08, %v867_v58  ;;  %v4293_v26 = vadd.f32 1e-08, %v876_v14  ;;  %v1187_v10 = vsub.f32 %v2778_v8, %v973_v2  ;;  %v882_v2 = vpop.xlane.xlu1 %881 }
 0x12d   : > { %v4296_v15 = vadd.f32 %v2583_v33, %v3758_v45  ;;  %v989_v23 = vmul.f32 %v2736_v55, %v4216_v5  ;;  %v4302_v1 = vadd.f32 1e-08, %v873_v49  ;;  %vm997_vm0 = vcmp.eq.f32.partialorder %v4236_v43, inf }
 0x12e   : > { %vm999_vm1 = vcmp.eq.f32.partialorder %v4236_v43, 0.0  ;;  %v1000_v40 = vand.u32 2147483648, %v4236_v43  ;;  %2745 = vrsqrt.f32 %v4291_v34  ;;  %v1212_v58 = vadd.f32 0.2, %v1187_v10  ;;  %v2738_v55 = vpop.eup %2737 }
 0x12f   : > { %5750 = vst [vmem:[#allocation42_spill] sm:$0xff] %v4296_v15  ;;  %v991_v45 = vsel %vm990_vm9, %v4216_v5, %v989_v23  ;;  %vm1018_vm2 = vcmp.eq.f32.partialorder %v4255_v57, inf  ;;  %2747 = vrsqrt.f32 %v4293_v26  ;;  %vm1020_vm3 = vcmp.eq.f32.partialorder %v4255_v57, 0.0  ;;  %v2740_v10 = vpop.eup %2739  ;;  %v2779_v23 = vld [vmem:[%s5619_s3 + $0x40] sm:$0xff] }
 0x130   : > { %v994_v33 = vsel %vm992_vm10, %v993_v48, %v991_v45  ;;  %v1021_v36 = vand.u32 2147483648, %v4255_v57  ;;  %2749 = vrsqrt.f32 %v4302_v1  ;;  %v1237_v14 = vmax.f32 %v1212_v58, 0.0 }
 0x131   : > { %v1190_v49 = vsub.f32 %v2779_v23, %v994_v33  ;;  %v982_v62 = vmul.f32 %v2738_v55, %v4232_v4  ;;  %v1014_v8 = vand.u32 2147483648, %v4291_v34  ;;  %v2742_v15 = vpop.eup %2741  ;;  %v1003_v5 = vmul.f32 %v2740_v10, %v4234_v0 }
 0x132   : > { %vm1011_vm5 = vcmp.eq.f32.partialorder %v4291_v34, inf  ;;  %v1028_v45 = vand.u32 2147483648, %v4302_v1  ;;  %v4327_v38 = vadd.f32 1e-08, %v882_v2  ;;  %v5751_v58 = vmax.f32 %v3548_v9, 0.0 }
 0x133   : > { %vm1362_vm6 = vcmp.gt.f32.partialorder %v1237_v14, 0.0  ;;  %v1215_v33 = vadd.f32 0.2, %v1190_v49  ;;  %v984_v55 = vsel %vm983_vm11, %v4232_v4, %v982_v62  ;;  %v2744_v23 = vpop.eup %2743  ;;  %v1005_v2 = vsel %vm1004_vm14, %v4234_v0, %v1003_v5  ;;  %v2780_v62 = vld [vmem:[%s5619_s3 + $0x38] sm:$0xff] }
 0x134   : > { %v4331_v32 = vadd.f32 %v1237_v14, %v5751_v58  ;;  %v2582_v10 = vsel %vm1362_vm6, 1.0, %v5718_v31  ;;  %v987_v48 = vsel %vm985_vm13, %v986_v60, %v984_v55  ;;  %v996_v9 = vmul.f32 %v2742_v15, %v4236_v43  ;;  %v2781_v60 = vld [vmem:[%s5619_s3 + $0x50] sm:$0xff] }
 0x135   : > { %vm1013_vm7 = vcmp.eq.f32.partialorder %v4291_v34, 0.0  ;;  %v4345_v14 = vadd.f32 %v2582_v10, %v3653_v18  ;;  %v1240_v49 = vmax.f32 %v1215_v33, 0.0  ;;  %v1189_v58 = vsub.f32 %v2780_v62, %v987_v48 }
 0x136   : > { %v1008_v4 = vsel %vm1006_vm15, %v1007_v30, %v1005_v2  ;;  %v998_v15 = vsel %vm997_vm0, %v4236_v43, %v996_v9  ;;  %v1017_v18 = vmul.f32 %v2744_v23, %v4255_v57  ;;  %vm1032_vm8 = vcmp.eq.f32.partialorder %v4293_v26, inf  ;;  %v2782_v2 = vld [vmem:[%s5619_s3 + $0x48] sm:$0xff] }
 0x137   : > { %v1192_v5 = vsub.f32 %v2781_v60, %v1008_v4  ;;  %vm1025_vm9 = vcmp.eq.f32.partialorder %v4302_v1, inf  ;;  %2751 = vrsqrt.f32 %v4327_v38  ;;  %v5752_v0 = vmax.f32 %v3660_v44, 0.0 }
 0x138   : > { %vm1365_vm10 = vcmp.gt.f32.partialorder %v1240_v49, 0.0  ;;  %v1214_v48 = vadd.f32 0.2, %v1189_v58  ;;  %v1001_v33 = vsel %vm999_vm1, %v1000_v40, %v998_v15  ;;  %vm1034_vm11 = vcmp.eq.f32.partialorder %v4293_v26, 0.0  ;;  %v2746_v55 = vpop.eup %2745 }
 0x139   : > { %v4364_v30 = vadd.f32 %v1240_v49, %v5752_v0  ;;  %vm1027_vm12 = vcmp.eq.f32.partialorder %v4302_v1, 0.0  ;;  %v2585_v23 = vsel %vm1365_vm10, 1.0, %v5718_v31  ;;  %v1217_v10 = vadd.f32 0.2, %v1192_v5  ;;  %v4377_v49 = vpop.xlane.xlu0 %878  ;;  %v2748_v43 = vpop.eup %2747  ;;  %v2783_v0 = vld [vmem:[%s5619_s3 + $0x60] sm:$0xff] }
 0x13a   : > { %v1191_v44 = vsub.f32 %v2782_v2, %v1001_v33  ;;  %v1019_v9 = vsel %vm1018_vm2, %v4255_v57, %v1017_v18  ;;  %v4380_v40 = vadd.f32 %v2585_v23, %v4012_v50  ;;  %v1239_v62 = vmax.f32 %v1214_v48, 0.0  ;;  %v2750_v60 = vpop.eup %2749 }
 0x13b   : > { %v1022_v58 = vsel %vm1020_vm3, %v1021_v36, %v1019_v9  ;;  %v1010_v4 = vmul.f32 %v2746_v55, %v4291_v34  ;;  %v1242_v5 = vmax.f32 %v1217_v10, 0.0  ;;  %v1031_v33 = vmul.f32 %v2748_v43, %v4293_v26 }
 0x13c   : > { %v1216_v15 = vadd.f32 0.2, %v1191_v44  ;;  %v1194_v18 = vsub.f32 %v2783_v0, %v1022_v58  ;;  %v5753_v2 = vmax.f32 %v3616_v21, 0.0  ;;  %vm1364_vm13 = vcmp.gt.f32.partialorder %v1239_v62, 0.0 }
 0x13d   : > { %v1012_v57 = vsel %vm1011_vm5, %v4291_v34, %v1010_v4  ;;  %v1024_v36 = vmul.f32 %v2750_v60, %v4302_v1  ;;  %v2584_v48 = vsel %vm1364_vm13, 1.0, %v5718_v31  ;;  %v5754_v55 = vmax.f32 %v3778_v6, 0.0  ;;  %v888_v60 = vpop.xlane.xlu1 %887 }
 0x13e   : > { %v4391_v50 = vadd.f32 %v1239_v62, %v5753_v2  ;;  %vm1367_vm14 = vcmp.gt.f32.partialorder %v1242_v5, 0.0  ;;  %v1241_v10 = vmax.f32 %v1216_v15, 0.0  ;;  %v4403_v44 = vadd.f32 %v2584_v48, %v3753_v54  ;;  %v2784_v54 = vld [vmem:[%s5619_s3 + $0x58] sm:$0xff] }
 0x13f   : > { %v4400_v23 = vadd.f32 %v1242_v5, %v5754_v55  ;;  %v2587_v21 = vsel %vm1367_vm14, 1.0, %v5718_v31  ;;  %v1219_v9 = vadd.f32 0.2, %v1194_v18  ;;  %v1015_v43 = vsel %vm1013_vm7, %v1014_v8, %v1012_v57  ;;  %v885_v5 = vpop.xlane.xlu0 %884  ;;  %v4542_v18 = vld [vmem:[%s5619_s3 + $0xc0] sm:$0xff] }
 0x140   : > { %v4411_v62 = vadd.f32 %v2587_v21, %v4036_v61  ;;  %v5755_v6 = vmax.f32 %v3632_v47, 0.0  ;;  %vm1366_vm15 = vcmp.gt.f32.partialorder %v1241_v10, 0.0  ;;  %v1193_v4 = vsub.f32 %v2784_v54, %v1015_v43 }
 0x141   : > { %v2586_v15 = vsel %vm1366_vm15, 1.0, %v5718_v31  ;;  %v1244_v0 = vmax.f32 %v1219_v9, 0.0  ;;  %v1033_v61 = vsel %vm1032_vm8, %v4293_v26, %v1031_v33  ;;  %v1026_v47 = vsel %vm1025_vm9, %v4302_v1, %v1024_v36  ;;  %v2752_v34 = vpop.eup %2751 }
 0x142   : > { %v4415_v58 = vadd.f32 %v1241_v10, %v5755_v6  ;;  %v5756_v8 = vmax.f32 %v4022_v46, 0.0  ;;  %v5759_v2 = vmax.f32 %v4063_v37, 0.0  ;;  %vm804_vm2 = vcmp.eq.f32.partialorder %v4079_v51, 0.0 }
 0x143   : > { %v4441_v33 = vadd.f32 %v2586_v15, %v3841_v63  ;;  %v1218_v48 = vadd.f32 0.2, %v1193_v4  ;;  %v5762_v36 = vand.u32 2147483648, %v4293_v26  ;;  %v1029_v10 = vsel %vm1027_vm12, %v1028_v45, %v1026_v47  ;;  %v2785_v63 = vld [vmem:[%s5619_s3 + $0x70] sm:$0xff]  ;;  %v2786_v26 = vld [vmem:[%s5619_s3 + $0x68] sm:$0xff] }
 0x144   : > { %vm4429_vm0 = vcmp.gt.f32.partialorder %v5756_v8, 0.0  ;;  %vm4435_vm1 = vcmp.gt.f32.partialorder %v5759_v2, 0.0  ;;  %v5763_v21 = vmax.f32 %v3783_v11, 0.0  ;;  %vm1369_vm3 = vcmp.gt.f32.partialorder %v1244_v0, 0.0  ;;  %v894_v2 = vpop.xlane.xlu1 %893 }
 0x145   : > { %v1036_v55 = vsel %vm1034_vm11, %v5762_v36, %v1033_v61  ;;  %v1195_v6 = vsub.f32 %v2786_v26, %v1029_v10  ;;  %v2589_v54 = vsel %vm1369_vm3, 1.0, %v5718_v31  ;;  %v1243_v4 = vmax.f32 %v1218_v48, 0.0 }
 0x146   : > { %v4453_v9 = vadd.f32 %v1244_v0, %v5763_v21  ;;  %v1196_v43 = vsub.f32 %v2785_v63, %v1036_v55  ;;  %v1045_v1 = vmul.f32 %v2752_v34, %v4327_v38  ;;  %vm1046_vm5 = vcmp.eq.f32.partialorder %v4327_v38, inf  ;;  %v891_v34 = vpop.xlane.xlu0 %890 }
 0x147   : > { %v4465_v11 = vadd.f32 %v2589_v54, %v4042_v22  ;;  %v1220_v15 = vadd.f32 0.2, %v1195_v6  ;;  %vm1048_vm6 = vcmp.eq.f32.partialorder %v4327_v38, 0.0  ;;  %v5765_v0 = vmax.f32 %v3740_v41, 0.0 }
 0x148   : > { %v1221_v45 = vadd.f32 0.2, %v1196_v43  ;;  %vm1368_vm7 = vcmp.gt.f32.partialorder %v1243_v4, 0.0  ;;  %v1047_v47 = vsel %vm1046_vm5, %v4327_v38, %v1045_v1  ;;  %v1049_v8 = vand.u32 2147483648, %v4327_v38 }
 0x149   : > { %5764 = vst [vmem:[#allocation43_spill] sm:$0xff] %v4465_v11  ;;  %v4470_v61 = vadd.f32 %v1243_v4, %v5765_v0  ;;  %v2588_v48 = vsel %vm1368_vm7, 1.0, %v5718_v31  ;;  %v1245_v22 = vmax.f32 %v1220_v15, 0.0  ;;  %v4476_v55 = vadd.f32 1e-08, %v4377_v49  ;;  %v5773_v15 = vld [vmem:[#allocation37_spill] sm:$0xff] }
 0x14a   : > { %v1246_v36 = vmax.f32 %v1221_v45, 0.0  ;;  %v4479_v10 = vadd.f32 %v2588_v48, %v4017_v3  ;;  %v1050_v41 = vsel %vm1048_vm6, %v1049_v8, %v1047_v47  ;;  %v4481_v21 = vadd.f32 1e-08, %v888_v60  ;;  %v2787_v60 = vld [vmem:[%s5619_s3 + $0x80] sm:$0xff]  ;;  %v900_v48 = vpop.xlane.xlu1 %899 }
 0x14b   : > { %v4483_v63 = vadd.f32 1e-08, %v885_v5  ;;  %v5767_v43 = vmax.f32 %v3797_v25, 0.0  ;;  %v5768_v26 = vmax.f32 %v3780_v19, 0.0  ;;  %vm1370_vm9 = vcmp.gt.f32.partialorder %v1245_v22, 0.0 }
 0x14c   : > { %5766 = vst [vmem:[#allocation44_spill] sm:$0xff] %v4479_v10  ;;  %vm1371_vm8 = vcmp.gt.f32.partialorder %v1246_v36, 0.0  ;;  %v2590_v3 = vsel %vm1370_vm9, 1.0, %v5718_v31  ;;  %v1198_v5 = vsub.f32 %v2787_v60, %v1050_v41  ;;  %2753 = vrsqrt.f32 %v4476_v55 }
 0x14d   : > { %v4487_v38 = vadd.f32 %v1246_v36, %v5767_v43  ;;  %v4491_v6 = vadd.f32 %v1245_v22, %v5768_v26  ;;  %v2591_v49 = vsel %vm1371_vm8, 1.0, %v5718_v31  ;;  %v5769_v25 = vsub.f32 %v4091_v42, %v3454_v52 }
 0x14e   : > { %v5770_v19 = vand.u32 2147483648, %v4079_v51  ;;  %v4510_v1 = vadd.f32 %v2591_v49, %v4057_v39  ;;  %v4513_v45 = vadd.f32 %v2590_v3, %v4039_v20  ;;  %v5774_v0 = vmax.f32 %v5773_v15, 0.0  ;;  %v897_v51 = vpop.xlane.xlu0 %896 }
 0x14f   : > { %v4502_v54 = vadd.f32 0.2, %v5769_v25  ;;  %v5775_v42 = vsub.f32 %v4147_v56, %v3468_v28  ;;  %v1223_v8 = vadd.f32 0.2, %v1198_v5  ;;  %2755 = vrsqrt.f32 %v4481_v21  ;;  %v2789_v25 = vld [vmem:[%s5619_s3 + $0x78] sm:$0xff] }
 0x150   : > { %v806_v4 = vsel %vm804_vm2, %v5770_v19, %v4260_v13  ;;  %5771 = vst [vmem:[#allocation45_spill] sm:$0xff] %v4510_v1  ;;  %5772 = vst [vmem:[#allocation46_spill] sm:$0xff] %v4513_v45  ;;  %vm1300_vm10 = vcmp.gt.f32.partialorder %v5774_v0, 0.0  ;;  %v2568_v39 = vsel %vm4429_vm0, 1.0, %v5718_v31  ;;  %v4529_v20 = vsel %vm4435_vm1, 1.0, %v5718_v31 }
 0x151   : > { %v4520_v47 = vadd.f32 0.2, %v5775_v42  ;;  %v5776_v13 = vsub.f32 %v4210_v29, %v4249_v7  ;;  %2757 = vrsqrt.f32 %v4483_v63  ;;  %v5777_v36 = vmax.f32 %v4179_v59, 0.0 }
 0x152   : > { %v1131_v22 = vsub.f32 %v806_v4, %v4542_v18  ;;  %v1248_v57 = vmax.f32 %v1223_v8, 0.0  ;;  %v4545_v41 = vadd.f32 1e-08, %v894_v2  ;;  %v4548_v43 = vsel %vm1300_vm10, 1.0, %v5718_v31  ;;  %v903_v0 = vpop.xlane.xlu0 %902 }
 0x153   : > { %v4534_v56 = vadd.f32 0.2, %v5776_v13  ;;  %vm1302_vm11 = vcmp.gt.f32.partialorder %v5777_v36, 0.0  ;;  %v4551_v26 = vadd.f32 1e-08, %v891_v34  ;;  %v5778_v60 = vmax.f32 %v4022_v46, 0.0  ;;  %v906_v46 = vpop.xlane.xlu1 %905 }
 0x154   : > { %v4553_v49 = vadd.f32 1e-08, %v900_v48  ;;  %vm1373_vm12 = vcmp.gt.f32.partialorder %v1248_v57, 0.0  ;;  %2759 = vrsqrt.f32 %v4545_v41  ;;  %v4562_v2 = vsel %vm1302_vm11, 1.0, %v5718_v31 }
 0x155   : > { %v4558_v5 = vadd.f32 %v1248_v57, %v5778_v60  ;;  %v2593_v19 = vsel %vm1373_vm12, 1.0, %v5718_v31  ;;  %2761 = vrsqrt.f32 %v4551_v26  ;;  %v4567_v34 = vadd.f32 0.2, %v1131_v22 }
 0x156   : > { %v4569_v4 = vadd.f32 %v2593_v19, %v2568_v39  ;;  %vm1039_vm13 = vcmp.eq.f32.partialorder %v4476_v55, inf  ;;  %vm1041_vm14 = vcmp.eq.f32.partialorder %v4476_v55, 0.0  ;;  %v1042_v42 = vand.u32 2147483648, %v4476_v55  ;;  %v2754_v48 = vpop.eup %2753 }
 0x157   : > { %vm1060_vm15 = vcmp.eq.f32.partialorder %v4481_v21, inf  ;;  %2763 = vrsqrt.f32 %v4553_v49  ;;  %v4576_v8 = vadd.f32 1e-08, %v897_v51  ;;  %vm1062_vm0 = vcmp.eq.f32.partialorder %v4481_v21, 0.0 }
 0x158   : > { %5779 = vst [vmem:[#allocation37_spill] sm:$0xff] %v4569_v4  ;;  %v1063_v39 = vand.u32 2147483648, %v4481_v21  ;;  %vm1053_vm1 = vcmp.eq.f32.partialorder %v4483_v63, inf  ;;  %vm1055_vm2 = vcmp.eq.f32.partialorder %v4483_v63, 0.0  ;;  %v1038_v13 = vmul.f32 %v2754_v48, %v4476_v55 }
 0x159   : > { %v1056_v36 = vand.u32 2147483648, %v4483_v63  ;;  %v4584_v22 = vadd.f32 1e-08, %v906_v46  ;;  %v4586_v57 = vadd.f32 1e-08, %v903_v0  ;;  %v2756_v60 = vpop.eup %2755  ;;  %vm1074_vm3 = vcmp.eq.f32.partialorder %v4545_v41, inf }
 0x15a   : > { %vm1076_vm5 = vcmp.eq.f32.partialorder %v4545_v41, 0.0  ;;  %v1077_v51 = vand.u32 2147483648, %v4545_v41  ;;  %vm1067_vm6 = vcmp.eq.f32.partialorder %v4551_v26, inf  ;;  %v1040_v48 = vsel %vm1039_vm13, %v4476_v55, %v1038_v13 }
 0x15b   : > { %v2758_v19 = vpop.eup %2757  ;;  %v1059_v3 = vmul.f32 %v2756_v60, %v4481_v21  ;;  %vm1069_vm7 = vcmp.eq.f32.partialorder %v4551_v26, 0.0  ;;  %2765 = vrsqrt.f32 %v4576_v8  ;;  %v1043_v46 = vsel %vm1041_vm14, %v1042_v42, %v1040_v48 }
 0x15c   : > { %v1052_v0 = vmul.f32 %v2758_v19, %v4483_v63  ;;  %v1070_v29 = vand.u32 2147483648, %v4551_v26  ;;  %2767 = vrsqrt.f32 %v4584_v22  ;;  %v1197_v13 = vsub.f32 %v2789_v25, %v1043_v46 }
 0x15d   : > { %v1061_v60 = vsel %vm1060_vm15, %v4481_v21, %v1059_v3  ;;  %vm1088_vm8 = vcmp.eq.f32.partialorder %v4553_v49, inf  ;;  %2769 = vrsqrt.f32 %v4586_v57  ;;  %vm1090_vm9 = vcmp.eq.f32.partialorder %v4553_v49, 0.0  ;;  %v2790_v3 = vld [vmem:[%s5619_s3 + $0x90] sm:$0xff] }
 0x15e   : > { %v2760_v55 = vpop.eup %2759  ;;  %v1064_v42 = vsel %vm1062_vm0, %v1063_v39, %v1061_v60  ;;  %v1054_v19 = vsel %vm1053_vm1, %v4483_v63, %v1052_v0  ;;  %v1091_v25 = vand.u32 2147483648, %v4553_v49  ;;  %v1222_v46 = vadd.f32 0.2, %v1197_v13  ;;  %v2791_v39 = vld [vmem:[%s5619_s3 + $0x88] sm:$0xff] }
 0x15f   : > { %v2762_v48 = vpop.eup %2761  ;;  %v1200_v28 = vsub.f32 %v2790_v3, %v1064_v42  ;;  %v1057_v52 = vsel %vm1055_vm2, %v1056_v36, %v1054_v19  ;;  %v1073_v21 = vmul.f32 %v2760_v55, %v4545_v41  ;;  %v1084_v4 = vand.u32 2147483648, %v4576_v8 }
 0x160   : > { %v1199_v0 = vsub.f32 %v2791_v39, %v1057_v52  ;;  %v1066_v60 = vmul.f32 %v2762_v48, %v4551_v26  ;;  %v1247_v45 = vmax.f32 %v1222_v46, 0.0  ;;  %vm1081_vm10 = vcmp.eq.f32.partialorder %v4576_v8, inf }
 0x161   : > { %v2764_v1 = vpop.eup %2763  ;;  %v1225_v11 = vadd.f32 0.2, %v1200_v28  ;;  %v1075_v63 = vsel %vm1074_vm3, %v4545_v41, %v1073_v21  ;;  %v1098_v36 = vand.u32 2147483648, %v4586_v57  ;;  %vm1083_vm11 = vcmp.eq.f32.partialorder %v4576_v8, 0.0  ;;  %v5780_v28 = vld [vmem:[#allocation33_spill] sm:$0xff]  ;;  %v2792_v41 = vld [vmem:[%s5619_s3 + $0xa0] sm:$0xff] }
 0x162   : > { %v1224_v55 = vadd.f32 0.2, %v1199_v0  ;;  %v1078_v52 = vsel %vm1076_vm5, %v1077_v51, %v1075_v63  ;;  %v1068_v42 = vsel %vm1067_vm6, %v4551_v26, %v1066_v60  ;;  %v1087_v19 = vmul.f32 %v2764_v1, %v4553_v49  ;;  %v5785_v63 = vld [vmem:[#allocation35_spill] sm:$0xff] }
 0x163   : > { %vm1102_vm12 = vcmp.eq.f32.partialorder %v4584_v22, inf  ;;  %vm1095_vm13 = vcmp.eq.f32.partialorder %v4586_v57, inf  ;;  %v5781_v48 = vmax.f32 %v5780_v28, 0.0  ;;  %vm1372_vm14 = vcmp.gt.f32.partialorder %v1247_v45, 0.0 }
 0x164   : > { %v1250_v3 = vmax.f32 %v1225_v11, 0.0  ;;  %v1202_v51 = vsub.f32 %v2792_v41, %v1078_v52  ;;  %v5782_v21 = vmax.f32 %v4534_v56, 0.0  ;;  %v2592_v39 = vsel %vm1372_vm14, 1.0, %v5718_v31 }
 0x165   : > { %v4646_v46 = vadd.f32 %v1247_v45, %v5781_v48  ;;  %v1249_v0 = vmax.f32 %v1224_v55, 0.0  ;;  %v1071_v60 = vsel %vm1069_vm7, %v1070_v29, %v1068_v42  ;;  %v1089_v11 = vsel %vm1088_vm8, %v4553_v49, %v1087_v19  ;;  %v2766_v45 = vpop.eup %2765  ;;  %v5788_v42 = vld [vmem:[#allocation34_spill] sm:$0xff] }
 0x166   : > { %vm4653_vm15 = vcmp.gt.f32.partialorder %v5782_v21, 0.0  ;;  %vm1104_vm0 = vcmp.eq.f32.partialorder %v4584_v22, 0.0  ;;  %vm1097_vm1 = vcmp.eq.f32.partialorder %v4586_v57, 0.0  ;;  %v4666_v52 = vadd.f32 %v2592_v39, %v5785_v63  ;;  %v2768_v26 = vpop.eup %2767  ;;  %v2793_v21 = vld [vmem:[%s5619_s3 + $0x98] sm:$0xff] }
 0x167   : > { %v5787_v28 = vmax.f32 %v5773_v15, 0.0  ;;  %vm1375_vm2 = vcmp.gt.f32.partialorder %v1250_v3, 0.0  ;;  %v1227_v55 = vadd.f32 0.2, %v1202_v51  ;;  %v5789_v41 = vmax.f32 %v5788_v42, 0.0  ;;  %v2770_v63 = vpop.eup %2769 }
 0x168   : > { %5786 = vst [vmem:[#allocation33_spill] sm:$0xff] %v4666_v52  ;;  %v2595_v29 = vsel %vm1375_vm2, 1.0, %v5718_v31  ;;  %vm1374_vm3 = vcmp.gt.f32.partialorder %v1249_v0, 0.0  ;;  %v1201_v39 = vsub.f32 %v2793_v21, %v1071_v60  ;;  %v5790_v15 = vmax.f32 %v4502_v54, 0.0 }
 0x169   : > { %v4670_v48 = vadd.f32 %v1250_v3, %v5787_v28  ;;  %v4675_v19 = vadd.f32 %v1249_v0, %v5789_v41  ;;  %v4687_v3 = vadd.f32 %v2595_v29, %v4548_v43  ;;  %v2594_v51 = vsel %vm1374_vm3, 1.0, %v5718_v31  ;;  %v5793_v41 = vld [vmem:[#allocation36_spill] sm:$0xff] }
 0x16a   : > { %vm4682_vm5 = vcmp.gt.f32.partialorder %v5790_v15, 0.0  ;;  %v1252_v42 = vmax.f32 %v1227_v55, 0.0  ;;  %v1092_v0 = vsel %vm1090_vm9, %v1091_v25, %v1089_v11  ;;  %v4693_v13 = vadd.f32 %v2594_v51, %v5793_v41 }
 0x16b   : > { %v1226_v60 = vadd.f32 0.2, %v1201_v39  ;;  %v1204_v21 = vsub.f32 %v4249_v7, %v1092_v0  ;;  %v1080_v15 = vmul.f32 %v2766_v45, %v4576_v8  ;;  %v5794_v52 = vmax.f32 %v4179_v59, 0.0 }
 0x16c   : > { %vm1377_vm6 = vcmp.gt.f32.partialorder %v1252_v42, 0.0  ;;  %v1101_v43 = vmul.f32 %v2768_v26, %v4584_v22  ;;  %v1094_v55 = vmul.f32 %v2770_v63, %v4586_v57  ;;  %v5795_v26 = vmax.f32 %v4063_v37, 0.0 }
 0x16d   : > { %v4699_v10 = vadd.f32 %v1252_v42, %v5794_v52  ;;  %v2597_v49 = vsel %vm1377_vm6, 1.0, %v5718_v31  ;;  %v1251_v25 = vmax.f32 %v1226_v60, 0.0  ;;  %v1229_v11 = vadd.f32 0.2, %v1204_v21 }
 0x16e   : > { %v1082_v29 = vsel %vm1081_vm10, %v4576_v8, %v1080_v15  ;;  %v4708_v7 = vadd.f32 %v2597_v49, %v4562_v2  ;;  %v1103_v45 = vsel %vm1102_vm12, %v4584_v22, %v1101_v43  ;;  %v1096_v52 = vsel %vm1095_vm13, %v4586_v57, %v1094_v55  ;;  %v2794_v2 = vld [vmem:[%s5619_s3 + $0xa8] sm:$0xff]  ;;  %v2795_v57 = vld [vmem:[%s5619_s3 + $0xb8] sm:$0xff] }
 0x16f   : > { %v1085_v59 = vsel %vm1083_vm11, %v1084_v4, %v1082_v29  ;;  %v4720_v39 = vadd.f32 %v1251_v25, %v5795_v26  ;;  %vm1376_vm7 = vcmp.gt.f32.partialorder %v1251_v25, 0.0  ;;  %v1254_v63 = vmax.f32 %v1229_v11, 0.0 }
 0x170   : > { %v1203_v8 = vsub.f32 %v2794_v2, %v1085_v59  ;;  %v1181_v4 = vmax.f32 %v4567_v34, 0.0  ;;  %v2596_v51 = vsel %vm1376_vm7, 1.0, %v5718_v31  ;;  %v5796_v42 = vand.u32 2147483648, %v4584_v22 }
 0x171   : > { %v1099_v37 = vsel %vm1097_vm1, %v1098_v36, %v1096_v52  ;;  %v4734_v41 = vadd.f32 %v2596_v51, %v4529_v20  ;;  %v5797_v60 = vmax.f32 %v4534_v56, 0.0  ;;  %vm1379_vm8 = vcmp.gt.f32.partialorder %v1254_v63, 0.0 }
 0x172   : > { %v1106_v0 = vsel %vm1104_vm0, %v5796_v42, %v1103_v45  ;;  %v1228_v15 = vadd.f32 0.2, %v1203_v8  ;;  %v2574_v34 = vsel %vm4653_vm15, 1.0, %v5718_v31  ;;  %v2599_v43 = vsel %vm1379_vm8, 1.0, %v5718_v31 }
 0x173   : > { %v4738_v21 = vadd.f32 %v1254_v63, %v5797_v60  ;;  %v1206_v22 = vsub.f32 %v4542_v18, %v1106_v0  ;;  %v1205_v20 = vsub.f32 %v2795_v57, %v1099_v37  ;;  %v4748_v36 = vadd.f32 %v2599_v43, %v2574_v34  ;;  %v1493_v37 = vld [vmem:[#allocation2 + $0x10] sm:$0xff] (%p3728_p11)  ;;  %v1494_v43 = vld [vmem:[#allocation2 + $0x18] sm:$0xff] (%p3728_p11) }
 0x174   : > { %v1253_v56 = vmax.f32 %v1228_v15, 0.0  ;;  %v2573_v25 = vsel %vm4682_vm5, 1.0, %v5718_v31  ;;  %v5798_v1 = vmax.f32 %v4520_v47, 0.0  ;;  %v5799_v11 = vmax.f32 %v4502_v54, 0.0  ;;  %v1491_v47 = vld [vmem:[#allocation2] sm:$0xff] (%p3728_p11) }
 0x175   : > { %v1231_v55 = vadd.f32 0.2, %v1206_v22  ;;  %v1230_v49 = vadd.f32 0.2, %v1205_v20  ;;  %vm1306_vm11 = vcmp.gt.f32.partialorder %v1181_v4, 0.0  ;;  %1490 = sbr.rel (!%p3728_p11) target bundleno = 431 (0x1af), region = 44  ;;  %v1516_v60 = vadd.f32 (%p3728_p11), %v1491_v47, %v4155_v53 }
 0x176   : > { %vm1305_vm9 = vcmp.gt.f32.partialorder %v5798_v1, 0.0  ;;  %v4757_v18 = vadd.f32 %v1253_v56, %v5799_v11  ;;  %vm1378_vm10 = vcmp.gt.f32.partialorder %v1253_v56, 0.0  ;;  %v5800_v28 = vmov %v5798_v1  ;;  %v1495_v22 = vld [vmem:[#allocation2 + $0x20] sm:$0xff] (%p3728_p11)  ;;  %v1504_v47 = vld [vmem:[#allocation2 + $0x68] sm:$0xff] (%p3728_p11) }
 0x177   : > { %v2598_v29 = vsel %vm1378_vm10, 1.0, %v5718_v31  ;;  %v1256_v59 = vmax.f32 %v1231_v55, 0.0  ;;  %v1255_v45 = vmax.f32 %v1230_v49, 0.0  ;;  %v2575_v54 = vsel %vm1305_vm9, 1.0, %v5718_v31  ;;  %v1497_v55 = vld [vmem:[#allocation2 + $0x30] sm:$0xff] (%p3728_p11)  ;;  %v1498_v49 = vld [vmem:[#allocation2 + $0x38] sm:$0xff] (%p3728_p11) }
 0x178   : > { %v4760_v52 = vadd.f32 %v2598_v29, %v2573_v25  ;;  %v2576_v2 = vsel %vm1306_vm11, 1.0, %v5718_v31  ;;  %v1518_v34 = vadd.f32 (%p3728_p11), %v1493_v37, %v4173_v35  ;;  %v1519_v57 = vadd.f32 (%p3728_p11), %v1494_v43, %v4241_v24  ;;  %v1499_v25 = vld [vmem:[#allocation2 + $0x40] sm:$0xff] (%p3728_p11)  ;;  %1542 = vst.msk [vmem:[#allocation2] sm:$0xff] (%p3728_p11), %vm280_vm4, %v1516_v60 }
 0x179   : > { %v4762_v26 = vadd.f32 %v1256_v59, %v1181_v4  ;;  %vm1381_vm12 = vcmp.gt.f32.partialorder %v1256_v59, 0.0  ;;  %v4766_v63 = vadd.f32 %v1255_v45, %v5800_v28  ;;  %vm1380_vm13 = vcmp.gt.f32.partialorder %v1255_v45, 0.0  ;;  %v1492_v4 = vld [vmem:[#allocation2 + $0x8] sm:$0xff] (%p3728_p11)  ;;  %v1501_v45 = vld [vmem:[#allocation2 + $0x50] sm:$0xff] (%p3728_p11)  ;;  %v1502_v28 = vld [vmem:[#allocation2 + $0x58] sm:$0xff] (%p3728_p11) }
 0x17a   : > { %v2601_v8 = vsel %vm1381_vm12, 1.0, %v5718_v31  ;;  %v2600_v51 = vsel %vm1380_vm13, 1.0, %v5718_v31  ;;  %v1517_v15 = vadd.f32 (%p3728_p11), %v1492_v4, %v4195_v17  ;;  %v1496_v31 = vld [vmem:[#allocation2 + $0x28] sm:$0xff] (%p3728_p11)  ;;  %v1520_v20 = vadd.f32 (%p3728_p11), %v1495_v22, %v4220_v12  ;;  %1544 = vst.msk [vmem:[#allocation2 + $0x10] sm:$0xff] (%p3728_p11), %vm280_vm4, %v1518_v34  ;;  %1545 = vst.msk [vmem:[#allocation2 + $0x18] sm:$0xff] (%p3728_p11), %vm280_vm4, %v1519_v57  ;;  %v1505_v4 = vld [vmem:[#allocation2 + $0x70] sm:$0xff] (%p3728_p11) }
 0x17b   : > { %v4772_v42 = vadd.f32 %v2601_v8, %v2576_v2  ;;  %v4774_v0 = vadd.f32 %v2600_v51, %v2575_v54  ;;  %v1521_v56 = vadd.f32 (%p3728_p11), %v1496_v31, %v4331_v32  ;;  %v1522_v1 = vadd.f32 (%p3728_p11), %v1497_v55, %v4279_v27  ;;  %v1500_v59 = vld [vmem:[#allocation2 + $0x48] sm:$0xff] (%p3728_p11)  ;;  %v1503_v51 = vld [vmem:[#allocation2 + $0x60] sm:$0xff] (%p3728_p11)  ;;  %v1506_v34 = vld [vmem:[#allocation2 + $0x78] sm:$0xff] (%p3728_p11) }
 0x17c   : > { %1543 = vst.msk [vmem:[#allocation2 + $0x8] sm:$0xff] %vm280_vm4, %v1517_v15  ;;  %v1523_v11 = vadd.f32 %v1498_v49, %v4391_v50  ;;  %v1524_v29 = vadd.f32 %v1499_v25, %v4364_v30  ;;  %1546 = vst.msk [vmem:[#allocation2 + $0x20] sm:$0xff] %vm280_vm4, %v1520_v20  ;;  %v1525_v54 = vadd.f32 %v1500_v59, %v4415_v58  ;;  %v1507_v43 = vld [vmem:[#allocation2 + $0x80] sm:$0xff]  ;;  %v1508_v22 = vld [vmem:[#allocation2 + $0x88] sm:$0xff] }
 0x17d   : > { %1547 = vst.msk [vmem:[#allocation2 + $0x28] sm:$0xff] %vm280_vm4, %v1521_v56  ;;  %v1526_v2 = vadd.f32 %v1501_v45, %v4400_v23  ;;  %v1527_v8 = vadd.f32 %v1502_v28, %v4470_v61  ;;  %1548 = vst.msk [vmem:[#allocation2 + $0x30] sm:$0xff] %vm280_vm4, %v1522_v1  ;;  %v1528_v37 = vadd.f32 %v1503_v51, %v4453_v9  ;;  %v1509_v56 = vld [vmem:[#allocation2 + $0x90] sm:$0xff]  ;;  %v1510_v55 = vld [vmem:[#allocation2 + $0x98] sm:$0xff] }
 0x17e   : > { %1549 = vst.msk [vmem:[#allocation2 + $0x38] sm:$0xff] %vm280_vm4, %v1523_v11  ;;  %1550 = vst.msk [vmem:[#allocation2 + $0x40] sm:$0xff] %vm280_vm4, %v1524_v29  ;;  %v1529_v60 = vadd.f32 %v1504_v47, %v4491_v6  ;;  %v1530_v15 = vadd.f32 %v1505_v4, %v4487_v38  ;;  %v1531_v31 = vadd.f32 %v1506_v34, %v4646_v46  ;;  %v1511_v49 = vld [vmem:[#allocation2 + $0xa0] sm:$0xff]  ;;  %v1512_v29 = vld [vmem:[#allocation2 + $0xa8] sm:$0xff] }
 0x17f   : > { %1551 = vst.msk [vmem:[#allocation2 + $0x48] sm:$0xff] %vm280_vm4, %v1525_v54  ;;  %1552 = vst.msk [vmem:[#allocation2 + $0x50] sm:$0xff] %vm280_vm4, %v1526_v2  ;;  %v1532_v57 = vadd.f32 %v1507_v43, %v4558_v5  ;;  %v1533_v20 = vadd.f32 %v1508_v22, %v4675_v19  ;;  %v1534_v25 = vadd.f32 %v1509_v56, %v4670_v48  ;;  %v1513_v59 = vld [vmem:[#allocation2 + $0xb0] sm:$0xff]  ;;  %v1514_v45 = vld [vmem:[#allocation2 + $0xb8] sm:$0xff] }
 0x180   : > { %1553 = vst.msk [vmem:[#allocation2 + $0x58] sm:$0xff] %vm280_vm4, %v1527_v8  ;;  %1554 = vst.msk [vmem:[#allocation2 + $0x60] sm:$0xff] %vm280_vm4, %v1528_v37  ;;  %v1535_v1 = vadd.f32 %v1510_v55, %v4720_v39  ;;  %v1536_v11 = vadd.f32 %v1511_v49, %v4699_v10  ;;  %v1537_v28 = vadd.f32 %v1512_v29, %v4757_v18  ;;  %v1515_v8 = vld [vmem:[#allocation2 + $0xc0] sm:$0xff]  ;;  %v1567_v51 = vld [vmem:[#allocation3] sm:$0xff] }
 0x181   : > { %1555 = vst.msk [vmem:[#allocation2 + $0x68] sm:$0xff] %vm280_vm4, %v1529_v60  ;;  %1556 = vst.msk [vmem:[#allocation2 + $0x70] sm:$0xff] %vm280_vm4, %v1530_v15  ;;  %v1538_v54 = vadd.f32 %v1513_v59, %v4738_v21  ;;  %v1539_v2 = vadd.f32 %v1514_v45, %v4766_v63  ;;  %v1568_v47 = vld [vmem:[#allocation3 + $0x8] sm:$0xff]  ;;  %v1540_v4 = vadd.f32 %v1515_v8, %v4762_v26  ;;  %v5801_v60 = vld [vmem:[#allocation39_spill] sm:$0xff] }
 0x182   : > { %1557 = vst.msk [vmem:[#allocation2 + $0x78] sm:$0xff] %vm280_vm4, %v1531_v31  ;;  %1558 = vst.msk [vmem:[#allocation2 + $0x80] sm:$0xff] %vm280_vm4, %v1532_v57  ;;  %v1592_v37 = vadd.f32 %v1567_v51, %v4166_v16  ;;  %v1593_v15 = vadd.f32 %v1568_v47, %v5801_v60  ;;  %v1569_v34 = vld [vmem:[#allocation3 + $0x10] sm:$0xff]  ;;  %v1570_v43 = vld [vmem:[#allocation3 + $0x18] sm:$0xff] }
 0x183   : > { %1559 = vst.msk [vmem:[#allocation2 + $0x88] sm:$0xff] %vm280_vm4, %v1533_v20  ;;  %1560 = vst.msk [vmem:[#allocation2 + $0x90] sm:$0xff] %vm280_vm4, %v1534_v25  ;;  %v1571_v22 = vld [vmem:[#allocation3 + $0x20] sm:$0xff]  ;;  %v5802_v31 = vld [vmem:[#allocation38_spill] sm:$0xff] }
 0x184   : > { %1561 = vst.msk [vmem:[#allocation2 + $0x98] sm:$0xff] %vm280_vm4, %v1535_v1  ;;  %1562 = vst.msk [vmem:[#allocation2 + $0xa0] sm:$0xff] %vm280_vm4, %v1536_v11  ;;  %v1594_v57 = vadd.f32 %v1569_v34, %v5802_v31  ;;  %v5803_v20 = vld [vmem:[#allocation41_spill] sm:$0xff]  ;;  %v5804_v55 = vld [vmem:[#allocation40_spill] sm:$0xff] }
 0x185   : > { %1563 = vst.msk [vmem:[#allocation2 + $0xa8] sm:$0xff] %vm280_vm4, %v1537_v28  ;;  %1564 = vst.msk [vmem:[#allocation2 + $0xb0] sm:$0xff] %vm280_vm4, %v1538_v54  ;;  %v1595_v56 = vadd.f32 %v1570_v43, %v5803_v20  ;;  %v1596_v49 = vadd.f32 %v1571_v22, %v5804_v55  ;;  %v1572_v25 = vld [vmem:[#allocation3 + $0x28] sm:$0xff]  ;;  %v1573_v1 = vld [vmem:[#allocation3 + $0x30] sm:$0xff] }
 0x186   : > { %1565 = vst.msk [vmem:[#allocation2 + $0xb8] sm:$0xff] %vm280_vm4, %v1539_v2  ;;  %v1574_v11 = vld [vmem:[#allocation3 + $0x38] sm:$0xff]  ;;  %1566 = vst.msk [vmem:[#allocation2 + $0xc0] sm:$0xff] %vm280_vm4, %v1540_v4  ;;  %v1597_v29 = vadd.f32 %v1572_v25, %v4345_v14  ;;  %v5805_v59 = vld [vmem:[#allocation42_spill] sm:$0xff] }
 0x187   : > { %1617 = vst.msk [vmem:[#allocation3] sm:$0xff] %vm280_vm4, %v1592_v37  ;;  %1618 = vst.msk [vmem:[#allocation3 + $0x8] sm:$0xff] %vm280_vm4, %v1593_v15  ;;  %v1598_v45 = vadd.f32 %v1573_v1, %v5805_v59  ;;  %v1599_v28 = vadd.f32 %v1574_v11, %v4403_v44  ;;  %v1575_v54 = vld [vmem:[#allocation3 + $0x40] sm:$0xff]  ;;  %v1576_v2 = vld [vmem:[#allocation3 + $0x48] sm:$0xff] }
 0x188   : > { %v1577_v8 = vld [vmem:[#allocation3 + $0x50] sm:$0xff]  ;;  %1619 = vst.msk [vmem:[#allocation3 + $0x10] sm:$0xff] %vm280_vm4, %v1594_v57  ;;  %1620 = vst.msk [vmem:[#allocation3 + $0x18] sm:$0xff] %vm280_vm4, %v1595_v56  ;;  %v1600_v51 = vadd.f32 %v1575_v54, %v4380_v40  ;;  %v1601_v47 = vadd.f32 %v1576_v2, %v4441_v33  ;;  %v1578_v37 = vld [vmem:[#allocation3 + $0x58] sm:$0xff] }
 0x189   : > { %1621 = vst.msk [vmem:[#allocation3 + $0x20] sm:$0xff] %vm280_vm4, %v1596_v49  ;;  %v1602_v4 = vadd.f32 %v1577_v8, %v4411_v62  ;;  %v1579_v60 = vld [vmem:[#allocation3 + $0x60] sm:$0xff]  ;;  %v1580_v15 = vld [vmem:[#allocation3 + $0x68] sm:$0xff]  ;;  %1622 = vst.msk [vmem:[#allocation3 + $0x28] sm:$0xff] %vm280_vm4, %v1597_v29 }
 0x18a   : > { %1623 = vst.msk [vmem:[#allocation3 + $0x30] sm:$0xff] %vm280_vm4, %v1598_v45  ;;  %1624 = vst.msk [vmem:[#allocation3 + $0x38] sm:$0xff] %vm280_vm4, %v1599_v28  ;;  %v5806_v34 = vld [vmem:[#allocation44_spill] sm:$0xff]  ;;  %v5807_v22 = vld [vmem:[#allocation43_spill] sm:$0xff] }
 0x18b   : > { %v1603_v43 = vadd.f32 %v1578_v37, %v5806_v34  ;;  %v1604_v31 = vadd.f32 %v1579_v60, %v5807_v22  ;;  %v5808_v57 = vld [vmem:[#allocation46_spill] sm:$0xff]  ;;  %v1582_v55 = vld [vmem:[#allocation3 + $0x78] sm:$0xff]  ;;  %v1583_v49 = vld [vmem:[#allocation3 + $0x80] sm:$0xff]  ;;  %1625 = vst.msk [vmem:[#allocation3 + $0x40] sm:$0xff] %vm280_vm4, %v1600_v51 }
 0x18c   : > { %v1605_v20 = vadd.f32 %v1580_v15, %v5808_v57  ;;  %v1581_v56 = vld [vmem:[#allocation3 + $0x70] sm:$0xff]  ;;  %1626 = vst.msk [vmem:[#allocation3 + $0x48] sm:$0xff] %vm280_vm4, %v1601_v47  ;;  %1627 = vst.msk [vmem:[#allocation3 + $0x50] sm:$0xff] %vm280_vm4, %v1602_v4  ;;  %v5809_v25 = vld [vmem:[#allocation45_spill] sm:$0xff] }
 0x18d   : > { %v1606_v1 = vadd.f32 %v1581_v56, %v5809_v25  ;;  %v5810_v11 = vld [vmem:[#allocation33_spill] sm:$0xff]  ;;  %v1585_v54 = vld [vmem:[#allocation3 + $0x90] sm:$0xff]  ;;  %v1586_v2 = vld [vmem:[#allocation3 + $0x98] sm:$0xff]  ;;  %1628 = vst.msk [vmem:[#allocation3 + $0x58] sm:$0xff] %vm280_vm4, %v1603_v43 }
 0x18e   : > { %v1607_v29 = vadd.f32 %v1582_v55, %v5810_v11  ;;  %v5811_v59 = vld [vmem:[#allocation37_spill] sm:$0xff]  ;;  %1629 = vst.msk [vmem:[#allocation3 + $0x60] sm:$0xff] %vm280_vm4, %v1604_v31  ;;  %1630 = vst.msk [vmem:[#allocation3 + $0x68] sm:$0xff] %vm280_vm4, %v1605_v20  ;;  %v1610_v51 = vadd.f32 %v1585_v54, %v4687_v3  ;;  %v1611_v47 = vadd.f32 %v1586_v2, %v4734_v41  ;;  %v1587_v4 = vld [vmem:[#allocation3 + $0xa0] sm:$0xff] }
 0x18f   : > { %v1608_v45 = vadd.f32 %v1583_v49, %v5811_v59  ;;  %v1584_v28 = vld [vmem:[#allocation3 + $0x88] sm:$0xff]  ;;  %v1589_v60 = vld [vmem:[#allocation3 + $0xb0] sm:$0xff]  ;;  %1631 = vst.msk [vmem:[#allocation3 + $0x70] sm:$0xff] %vm280_vm4, %v1606_v1  ;;  %v1612_v15 = vadd.f32 %v1587_v4, %v4708_v7  ;;  %v1590_v22 = vld [vmem:[#allocation3 + $0xb8] sm:$0xff] }
 0x190   : > { %v1609_v8 = vadd.f32 %v1584_v28, %v4693_v13  ;;  %v1588_v37 = vld [vmem:[#allocation3 + $0xa8] sm:$0xff]  ;;  %1632 = vst.msk [vmem:[#allocation3 + $0x78] sm:$0xff] %vm280_vm4, %v1607_v29  ;;  %v1614_v43 = vadd.f32 %v1589_v60, %v4748_v36  ;;  %v1591_v31 = vld [vmem:[#allocation3 + $0xc0] sm:$0xff]  ;;  %1635 = vst.msk [vmem:[#allocation3 + $0x90] sm:$0xff] %vm280_vm4, %v1610_v51  ;;  %v1615_v20 = vadd.f32 %v1590_v22, %v4774_v0 }
 0x191   : > { %1633 = vst.msk [vmem:[#allocation3 + $0x80] sm:$0xff] %vm280_vm4, %v1608_v45  ;;  %v1613_v34 = vadd.f32 %v1588_v37, %v4760_v52  ;;  %v1642_v57 = vld [vmem:[#allocation4] sm:$0xff]  ;;  %1636 = vst.msk [vmem:[#allocation3 + $0x98] sm:$0xff] %vm280_vm4, %v1611_v47  ;;  %v1616_v56 = vadd.f32 %v1591_v31, %v4772_v42  ;;  %v1643_v1 = vld [vmem:[#allocation4 + $0x8] sm:$0xff] }
 0x192   : > { %1634 = vst.msk [vmem:[#allocation3 + $0x88] sm:$0xff] %vm280_vm4, %v1609_v8  ;;  %v5812_v55 = vld [vmem:[#allocation9_spill] sm:$0xff]  ;;  %v1644_v11 = vld [vmem:[#allocation4 + $0x10] sm:$0xff]  ;;  %v1645_v29 = vld [vmem:[#allocation4 + $0x18] sm:$0xff] }
 0x193   : > { %v5813_v49 = vand.u32 2147483647, %v5812_v55  ;;  %1637 = vst.msk [vmem:[#allocation3 + $0xa0] sm:$0xff] %vm280_vm4, %v1612_v15  ;;  %1638 = vst.msk [vmem:[#allocation3 + $0xa8] sm:$0xff] %vm280_vm4, %v1613_v34  ;;  %v5814_v59 = vld [vmem:[#allocation11_spill] sm:$0xff]  ;;  %v5816_v54 = vld [vmem:[#allocation8_spill] sm:$0xff] }
 0x194   : > { %1639 = vst.msk [vmem:[#allocation3 + $0xb0] sm:$0xff] %vm280_vm4, %v1614_v43  ;;  %v5815_v45 = vand.u32 2147483647, %v5814_v59  ;;  %v5817_v2 = vand.u32 2147483647, %v5816_v54  ;;  %v5818_v51 = vld [vmem:[#allocation10_spill] sm:$0xff] }
 0x195   : > { %v1667_v25 = vadd.f32 %v1642_v57, %v5813_v49  ;;  %v5819_v47 = vand.u32 2147483647, %v5818_v51  ;;  %v1646_v37 = vld [vmem:[#allocation4 + $0x20] sm:$0xff]  ;;  %v1647_v60 = vld [vmem:[#allocation4 + $0x28] sm:$0xff]  ;;  %v1648_v22 = vld [vmem:[#allocation4 + $0x30] sm:$0xff]  ;;  %1640 = vst.msk [vmem:[#allocation3 + $0xb8] sm:$0xff] %vm280_vm4, %v1615_v20 }
 0x196   : > { %v1668_v28 = vadd.f32 %v1643_v1, %v5815_v45  ;;  %v1669_v8 = vadd.f32 %v1644_v11, %v5817_v2  ;;  %1641 = vst.msk [vmem:[#allocation3 + $0xc0] sm:$0xff] %vm280_vm4, %v1616_v56  ;;  %v5820_v15 = vld [vmem:[#allocation13_spill] sm:$0xff]  ;;  %v5822_v31 = vld [vmem:[#allocation12_spill] sm:$0xff]  ;;  %v5824_v49 = vld [vmem:[#allocation15_spill] sm:$0xff] }
 0x197   : > { %v1670_v4 = vadd.f32 %v1645_v29, %v5819_v47  ;;  %1692 = vst.msk [vmem:[#allocation4] sm:$0xff] %vm280_vm4, %v1667_v25  ;;  %v5821_v34 = vand.u32 2147483647, %v5820_v15  ;;  %v5823_v57 = vand.u32 2147483647, %v5822_v31  ;;  %v1649_v59 = vld [vmem:[#allocation4 + $0x38] sm:$0xff] }
 0x198   : > { %v5825_v1 = vand.u32 2147483647, %v5824_v49  ;;  %v1650_v29 = vld [vmem:[#allocation4 + $0x40] sm:$0xff]  ;;  %v1651_v45 = vld [vmem:[#allocation4 + $0x48] sm:$0xff]  ;;  %1693 = vst.msk [vmem:[#allocation4 + $0x8] sm:$0xff] %vm280_vm4, %v1668_v28  ;;  %1694 = vst.msk [vmem:[#allocation4 + $0x10] sm:$0xff] %vm280_vm4, %v1669_v8 }
 0x199   : > { %v1671_v43 = vadd.f32 %v1646_v37, %v5821_v34  ;;  %v1672_v55 = vadd.f32 %v1647_v60, %v5823_v57  ;;  %1695 = vst.msk [vmem:[#allocation4 + $0x18] sm:$0xff] %vm280_vm4, %v1670_v4  ;;  %v5826_v20 = vld [vmem:[#allocation14_spill] sm:$0xff]  ;;  %v5828_v54 = vld [vmem:[#allocation17_spill] sm:$0xff]  ;;  %v5830_v47 = vld [vmem:[#allocation16_spill] sm:$0xff] }
 0x19a   : > { %v1673_v11 = vadd.f32 %v1648_v22, %v5825_v1  ;;  %v5827_v56 = vand.u32 2147483647, %v5826_v20  ;;  %v5829_v2 = vand.u32 2147483647, %v5828_v54  ;;  %v5831_v37 = vand.u32 2147483647, %v5830_v47 }
 0x19b   : > { %v1652_v15 = vld [vmem:[#allocation4 + $0x50] sm:$0xff]  ;;  %v1653_v22 = vld [vmem:[#allocation4 + $0x58] sm:$0xff]  ;;  %v1654_v34 = vld [vmem:[#allocation4 + $0x60] sm:$0xff]  ;;  %1696 = vst.msk [vmem:[#allocation4 + $0x20] sm:$0xff] %vm280_vm4, %v1671_v43 }
 0x19c   : > { %v1674_v25 = vadd.f32 %v1649_v59, %v5827_v56  ;;  %v1675_v51 = vadd.f32 %v1650_v29, %v5829_v2  ;;  %v1676_v60 = vadd.f32 %v1651_v45, %v5831_v37  ;;  %1697 = vst.msk [vmem:[#allocation4 + $0x28] sm:$0xff] %vm280_vm4, %v1672_v55  ;;  %1698 = vst.msk [vmem:[#allocation4 + $0x30] sm:$0xff] %vm280_vm4, %v1673_v11  ;;  %v5832_v28 = vld [vmem:[#allocation19_spill] sm:$0xff]  ;;  %v5834_v31 = vld [vmem:[#allocation18_spill] sm:$0xff] }
 0x19d   : > { %v5833_v8 = vand.u32 2147483647, %v5832_v28  ;;  %v5835_v57 = vand.u32 2147483647, %v5834_v31  ;;  %v5836_v1 = vld [vmem:[#allocation21_spill] sm:$0xff]  ;;  %v1655_v20 = vld [vmem:[#allocation4 + $0x68] sm:$0xff] }
 0x19e   : > { %v5837_v59 = vand.u32 2147483647, %v5836_v1  ;;  %v1656_v45 = vld [vmem:[#allocation4 + $0x70] sm:$0xff]  ;;  %v1657_v56 = vld [vmem:[#allocation4 + $0x78] sm:$0xff]  ;;  %1699 = vst.msk [vmem:[#allocation4 + $0x38] sm:$0xff] %vm280_vm4, %v1674_v25  ;;  %1700 = vst.msk [vmem:[#allocation4 + $0x40] sm:$0xff] %vm280_vm4, %v1675_v51 }
 0x19f   : > { %v1677_v4 = vadd.f32 %v1652_v15, %v5833_v8  ;;  %v1678_v49 = vadd.f32 %v1653_v22, %v5835_v57  ;;  %1701 = vst.msk [vmem:[#allocation4 + $0x48] sm:$0xff] %vm280_vm4, %v1676_v60  ;;  %v5838_v43 = vld [vmem:[#allocation20_spill] sm:$0xff]  ;;  %v5840_v54 = vld [vmem:[#allocation23_spill] sm:$0xff]  ;;  %v5842_v37 = vld [vmem:[#allocation22_spill] sm:$0xff] }
 0x1a0   : > { %v1679_v29 = vadd.f32 %v1654_v34, %v5837_v59  ;;  %v5839_v55 = vand.u32 2147483647, %v5838_v43  ;;  %v5841_v2 = vand.u32 2147483647, %v5840_v54  ;;  %v5843_v15 = vand.u32 2147483647, %v5842_v37 }
 0x1a1   : > { %v1658_v28 = vld [vmem:[#allocation4 + $0x80] sm:$0xff]  ;;  %v1659_v34 = vld [vmem:[#allocation4 + $0x88] sm:$0xff]  ;;  %v1660_v8 = vld [vmem:[#allocation4 + $0x90] sm:$0xff]  ;;  %1702 = vst.msk [vmem:[#allocation4 + $0x50] sm:$0xff] %vm280_vm4, %v1677_v4 }
 0x1a2   : > { %v1680_v11 = vadd.f32 %v1655_v20, %v5839_v55  ;;  %v1681_v47 = vadd.f32 %v1656_v45, %v5841_v2  ;;  %v1682_v22 = vadd.f32 %v1657_v56, %v5843_v15  ;;  %1703 = vst.msk [vmem:[#allocation4 + $0x58] sm:$0xff] %vm280_vm4, %v1678_v49  ;;  %1704 = vst.msk [vmem:[#allocation4 + $0x60] sm:$0xff] %vm280_vm4, %v1679_v29  ;;  %v5844_v25 = vld [vmem:[#allocation25_spill] sm:$0xff]  ;;  %v5846_v31 = vld [vmem:[#allocation24_spill] sm:$0xff] }
 0x1a3   : > { %v5845_v51 = vand.u32 2147483647, %v5844_v25  ;;  %v5847_v57 = vand.u32 2147483647, %v5846_v31  ;;  %v5848_v59 = vld [vmem:[#allocation27_spill] sm:$0xff]  ;;  %v1661_v43 = vld [vmem:[#allocation4 + $0x98] sm:$0xff] }
 0x1a4   : > { %v5849_v20 = vand.u32 2147483647, %v5848_v59  ;;  %v1662_v56 = vld [vmem:[#allocation4 + $0xa0] sm:$0xff]  ;;  %v1663_v55 = vld [vmem:[#allocation4 + $0xa8] sm:$0xff]  ;;  %1705 = vst.msk [vmem:[#allocation4 + $0x68] sm:$0xff] %vm280_vm4, %v1680_v11  ;;  %1706 = vst.msk [vmem:[#allocation4 + $0x70] sm:$0xff] %vm280_vm4, %v1681_v47 }
 0x1a5   : > { %v1683_v60 = vadd.f32 %v1658_v28, %v5845_v51  ;;  %v1684_v1 = vadd.f32 %v1659_v34, %v5847_v57  ;;  %1707 = vst.msk [vmem:[#allocation4 + $0x78] sm:$0xff] %vm280_vm4, %v1682_v22  ;;  %v5850_v4 = vld [vmem:[#allocation26_spill] sm:$0xff]  ;;  %v5852_v54 = vld [vmem:[#allocation29_spill] sm:$0xff]  ;;  %v5854_v15 = vld [vmem:[#allocation28_spill] sm:$0xff] }
 0x1a6   : > { %v1685_v45 = vadd.f32 %v1660_v8, %v5849_v20  ;;  %v5851_v49 = vand.u32 2147483647, %v5850_v4  ;;  %v5853_v2 = vand.u32 2147483647, %v5852_v54  ;;  %v5855_v28 = vand.u32 2147483647, %v5854_v15 }
 0x1a7   : > { %v1664_v25 = vld [vmem:[#allocation4 + $0xb0] sm:$0xff]  ;;  %v1665_v8 = vld [vmem:[#allocation4 + $0xb8] sm:$0xff]  ;;  %v1666_v51 = vld [vmem:[#allocation4 + $0xc0] sm:$0xff]  ;;  %1708 = vst.msk [vmem:[#allocation4 + $0x80] sm:$0xff] %vm280_vm4, %v1683_v60 }
 0x1a8   : > { %v1686_v29 = vadd.f32 %v1661_v43, %v5851_v49  ;;  %v1687_v37 = vadd.f32 %v1662_v56, %v5853_v2  ;;  %v1688_v34 = vadd.f32 %v1663_v55, %v5855_v28  ;;  %1709 = vst.msk [vmem:[#allocation4 + $0x88] sm:$0xff] %vm280_vm4, %v1684_v1  ;;  %1710 = vst.msk [vmem:[#allocation4 + $0x90] sm:$0xff] %vm280_vm4, %v1685_v45  ;;  %v5856_v11 = vld [vmem:[#allocation31_spill] sm:$0xff]  ;;  %v5858_v31 = vld [vmem:[#allocation30_spill] sm:$0xff] }
 0x1a9   : > { %v5857_v47 = vand.u32 2147483647, %v5856_v11  ;;  %v5859_v57 = vand.u32 2147483647, %v5858_v31  ;;  %v5860_v20 = vld [vmem:[#allocation32_spill] sm:$0xff] }
 0x1aa   : > { %v5861_v43 = vand.u32 2147483647, %v5860_v20  ;;  %1711 = vst.msk [vmem:[#allocation4 + $0x98] sm:$0xff] %vm280_vm4, %v1686_v29  ;;  %1712 = vst.msk [vmem:[#allocation4 + $0xa0] sm:$0xff] %vm280_vm4, %v1687_v37 }
 0x1ab   : > { %v1689_v22 = vadd.f32 %v1664_v25, %v5857_v47  ;;  %v1690_v59 = vadd.f32 %v1665_v8, %v5859_v57  ;;  %1713 = vst.msk [vmem:[#allocation4 + $0xa8] sm:$0xff] %vm280_vm4, %v1688_v34 }
 0x1ac   : > { %v1691_v56 = vadd.f32 %v1666_v51, %v5861_v43 }
 0x1ad   : > { %1714 = vst.msk [vmem:[#allocation4 + $0xb0] sm:$0xff] %vm280_vm4, %v1689_v22  ;;  %1715 = vst.msk [vmem:[#allocation4 + $0xb8] sm:$0xff] %vm280_vm4, %v1690_v59 }
 0x1ae   : > { %1716 = vst.msk [vmem:[#allocation4 + $0xc0] sm:$0xff] %vm280_vm4, %v1691_v56 }
 0x1af PF: > { %1719 = sbr.rel (%p3728_p11) target bundleno = 504 (0x1f8), region = 48  ;;  %v1720_v60 = vlaneseq (!%p3728_p11)  ;;  %v4958_v1 = vstv (!%p3728_p11), %s1483_s12  ;;  %v1853_v59 = vld [vmem:[#allocation2 + $0x28] sm:$0xff] (!%p3728_p11)  ;;  %v1855_v56 = vld [vmem:[#allocation2 + $0x38] sm:$0xff] (!%p3728_p11) }
 0x1b1   : > { %v4960_v45 = vshrl.u32 (!%p3728_p11), %v1720_v60, 7 }
 0x1b2   : > { %v1848_v55 = vld [vmem:[#allocation2] sm:$0xff] (!%p3728_p11) }
 0x1b3   : > { %vm1773_vm14 = vcmp.ge.s32.totalorder (!%p3728_p11), %v4960_v45, %v4958_v1  ;;  %v4965_v4 = vadd.s32 (!%p3728_p11), 8, %v4960_v45  ;;  %v4968_v29 = vadd.s32 (!%p3728_p11), 16, %v4960_v45  ;;  %v4971_v54 = vadd.s32 (!%p3728_p11), 24, %v4960_v45 }
 0x1b4   : > { %v1873_v2 = vsel (!%p3728_p11), %vm1773_vm14, %v4155_v53, 0.0  ;;  %v1850_v37 = vld [vmem:[#allocation2 + $0x10] sm:$0xff] (!%p3728_p11)  ;;  %v1851_v15 = vld [vmem:[#allocation2 + $0x18] sm:$0xff] (!%p3728_p11)  ;;  %v4978_v28 = vadd.s32 (!%p3728_p11), 32, %v4960_v45  ;;  %v4981_v34 = vadd.s32 (!%p3728_p11), 40, %v4960_v45  ;;  %v4984_v25 = vadd.s32 (!%p3728_p11), 48, %v4960_v45 }
 0x1b5   : > { %v1898_v8 = vadd.f32 (!%p3728_p11), %v1873_v2, %v1848_v55  ;;  %vm1774_vm15 = vcmp.ge.s32.totalorder (!%p3728_p11), %v4965_v4, %v4958_v1  ;;  %vm1775_vm0 = vcmp.ge.s32.totalorder (!%p3728_p11), %v4968_v29, %v4958_v1  ;;  %vm1776_vm1 = vcmp.ge.s32.totalorder (!%p3728_p11), %v4971_v54, %v4958_v1  ;;  %v1852_v53 = vld [vmem:[#allocation2 + $0x20] sm:$0xff] (!%p3728_p11)  ;;  %v5893_v54 = vld [vmem:[#allocation12_spill] sm:$0xff] (!%p3728_p11) }
 0x1b6   : > { %v1849_v49 = vld [vmem:[#allocation2 + $0x8] sm:$0xff]  ;;  %v1874_v51 = vsel %vm1774_vm15, %v4195_v17, 0.0  ;;  %v1875_v11 = vsel %vm1775_vm0, %v4173_v35, 0.0  ;;  %v1876_v47 = vsel %vm1776_vm1, %v4241_v24, 0.0  ;;  %vm1777_vm2 = vcmp.ge.s32.totalorder %v4978_v28, %v4958_v1  ;;  %v1854_v35 = vld [vmem:[#allocation2 + $0x30] sm:$0xff]  ;;  %v2058_v28 = vld [vmem:[#allocation4 + $0x48] sm:$0xff] }
 0x1b7   : > { %1924 = vst.msk [vmem:[#allocation2] sm:$0xff] %vm280_vm4, %v1898_v8  ;;  %v1899_v22 = vadd.f32 %v1874_v51, %v1849_v49  ;;  %v1900_v31 = vadd.f32 %v1875_v11, %v1850_v37  ;;  %v1901_v57 = vadd.f32 %v1876_v47, %v1851_v15  ;;  %v1877_v17 = vsel %vm1777_vm2, %v4220_v12, 0.0  ;;  %v1857_v37 = vld [vmem:[#allocation2 + $0x48] sm:$0xff]  ;;  %v1858_v8 = vld [vmem:[#allocation2 + $0x50] sm:$0xff]  ;;  %v1859_v47 = vld [vmem:[#allocation2 + $0x58] sm:$0xff] }
 0x1b8   : > { %v1902_v20 = vadd.f32 %v1877_v17, %v1852_v53  ;;  %vm1778_vm3 = vcmp.ge.s32.totalorder %v4981_v34, %v4958_v1  ;;  %vm1779_vm5 = vcmp.ge.s32.totalorder %v4984_v25, %v4958_v1  ;;  %v5016_v24 = vadd.s32 56, %v4960_v45 }
 0x1b9   : > { %1925 = vst.msk [vmem:[#allocation2 + $0x8] sm:$0xff] %vm280_vm4, %v1899_v22  ;;  %1926 = vst.msk [vmem:[#allocation2 + $0x10] sm:$0xff] %vm280_vm4, %v1900_v31  ;;  %v1878_v12 = vsel %vm1778_vm3, %v4331_v32, 0.0  ;;  %v1879_v43 = vsel %vm1779_vm5, %v4279_v27, 0.0  ;;  %v5030_v60 = vadd.s32 64, %v4960_v45  ;;  %v5033_v55 = vadd.s32 72, %v4960_v45 }
 0x1ba   : > { %1927 = vst.msk [vmem:[#allocation2 + $0x18] sm:$0xff] %vm280_vm4, %v1901_v57  ;;  %1928 = vst.msk [vmem:[#allocation2 + $0x20] sm:$0xff] %vm280_vm4, %v1902_v20  ;;  %v1903_v49 = vadd.f32 %v1878_v12, %v1853_v59  ;;  %v1904_v2 = vadd.f32 %v1879_v43, %v1854_v35  ;;  %vm5673_vm6 = vcmp.ge.s32.totalorder %v5016_v24, %v4958_v1  ;;  %v1856_v32 = vld [vmem:[#allocation2 + $0x40] sm:$0xff]  ;;  %v5039_v15 = vadd.s32 80, %v4960_v45  ;;  %v1861_v20 = vld [vmem:[#allocation2 + $0x68] sm:$0xff] }
 0x1bb   : > { %v1880_v27 = vsel %vm5673_vm6, %v4391_v50, 0.0  ;;  %vm5672_vm7 = vcmp.ge.s32.totalorder %v5030_v60, %v4958_v1  ;;  %vm5671_vm8 = vcmp.ge.s32.totalorder %v5033_v55, %v4958_v1  ;;  %v5050_v53 = vadd.s32 88, %v4960_v45  ;;  %v1860_v35 = vld [vmem:[#allocation2 + $0x60] sm:$0xff] }
 0x1bc   : > { %1929 = vst.msk [vmem:[#allocation2 + $0x28] sm:$0xff] %vm280_vm4, %v1903_v49  ;;  %1930 = vst.msk [vmem:[#allocation2 + $0x30] sm:$0xff] %vm280_vm4, %v1904_v2  ;;  %v1905_v51 = vadd.f32 %v1880_v27, %v1855_v56  ;;  %v1881_v50 = vsel %vm5672_vm7, %v4364_v30, 0.0  ;;  %v1882_v11 = vsel %vm5671_vm8, %v4415_v58, 0.0  ;;  %vm1783_vm9 = vcmp.ge.s32.totalorder %v5039_v15, %v4958_v1  ;;  %v1862_v56 = vld [vmem:[#allocation2 + $0x70] sm:$0xff]  ;;  %v1863_v49 = vld [vmem:[#allocation2 + $0x78] sm:$0xff] }
 0x1bd   : > { %v1906_v22 = vadd.f32 %v1881_v50, %v1856_v32  ;;  %v1907_v31 = vadd.f32 %v1882_v11, %v1857_v37  ;;  %v1883_v57 = vsel %vm1783_vm9, %v4400_v23, 0.0  ;;  %vm5661_vm10 = vcmp.ge.s32.totalorder %v5050_v53, %v4958_v1  ;;  %v1864_v11 = vld [vmem:[#allocation2 + $0x80] sm:$0xff] }
 0x1be   : > { %1931 = vst.msk [vmem:[#allocation2 + $0x38] sm:$0xff] %vm280_vm4, %v1905_v51  ;;  %v1908_v30 = vadd.f32 %v1883_v57, %v1858_v8  ;;  %v1884_v58 = vsel %vm5661_vm10, %v4470_v61, 0.0  ;;  %v5076_v17 = vadd.s32 96, %v4960_v45  ;;  %v5079_v59 = vadd.s32 104, %v4960_v45 }
 0x1bf   : > { %1932 = vst.msk [vmem:[#allocation2 + $0x40] sm:$0xff] %vm280_vm4, %v1906_v22  ;;  %1933 = vst.msk [vmem:[#allocation2 + $0x48] sm:$0xff] %vm280_vm4, %v1907_v31  ;;  %v1909_v23 = vadd.f32 %v1884_v58, %v1859_v47  ;;  %v5084_v12 = vadd.s32 112, %v4960_v45  ;;  %v5087_v43 = vadd.s32 120, %v4960_v45  ;;  %v5090_v61 = vadd.s32 128, %v4960_v45  ;;  %v1866_v31 = vld [vmem:[#allocation2 + $0x90] sm:$0xff] }
 0x1c0   : > { %1934 = vst.msk [vmem:[#allocation2 + $0x50] sm:$0xff] %vm280_vm4, %v1908_v30  ;;  %vm5663_vm11 = vcmp.ge.s32.totalorder %v5076_v17, %v4958_v1  ;;  %vm5662_vm12 = vcmp.ge.s32.totalorder %v5079_v59, %v4958_v1  ;;  %v5098_v2 = vadd.s32 136, %v4960_v45  ;;  %v5101_v32 = vadd.s32 144, %v4960_v45 }
 0x1c1   : > { %1935 = vst.msk [vmem:[#allocation2 + $0x58] sm:$0xff] %vm280_vm4, %v1909_v23  ;;  %v1885_v37 = vsel %vm5663_vm11, %v4453_v9, 0.0  ;;  %v1886_v27 = vsel %vm5662_vm12, %v4491_v6, 0.0  ;;  %vm5674_vm13 = vcmp.ge.s32.totalorder %v5084_v12, %v4958_v1  ;;  %vm5664_vm10 = vcmp.ge.s32.totalorder %v5087_v43, %v4958_v1  ;;  %v1865_v6 = vld [vmem:[#allocation2 + $0x88] sm:$0xff]  ;;  %v1867_v23 = vld [vmem:[#allocation2 + $0x98] sm:$0xff] }
 0x1c2   : > { %v1910_v8 = vadd.f32 %v1885_v37, %v1860_v35  ;;  %v1911_v51 = vadd.f32 %v1886_v27, %v1861_v20  ;;  %v1887_v50 = vsel %vm5674_vm13, %v4487_v38, 0.0  ;;  %v1888_v9 = vsel %vm5664_vm10, %v4646_v46, 0.0  ;;  %v1868_v20 = vld [vmem:[#allocation2 + $0xa0] sm:$0xff]  ;;  %v1869_v37 = vld [vmem:[#allocation2 + $0xa8] sm:$0xff]  ;;  %v1870_v27 = vld [vmem:[#allocation2 + $0xb0] sm:$0xff] }
 0x1c3   : > { %v1912_v47 = vadd.f32 %v1887_v50, %v1862_v56  ;;  %v1913_v22 = vadd.f32 %v1888_v9, %v1863_v49  ;;  %vm5668_vm12 = vcmp.ge.s32.totalorder %v5090_v61, %v4958_v1  ;;  %vm5665_vm11 = vcmp.ge.s32.totalorder %v5098_v2, %v4958_v1 }
 0x1c4   : > { %1936 = vst.msk [vmem:[#allocation2 + $0x60] sm:$0xff] %vm280_vm4, %v1910_v8  ;;  %1937 = vst.msk [vmem:[#allocation2 + $0x68] sm:$0xff] %vm280_vm4, %v1911_v51  ;;  %v1889_v38 = vsel %vm5668_vm12, %v4558_v5, 0.0  ;;  %v1890_v46 = vsel %vm5665_vm11, %v4675_v19, 0.0  ;;  %vm5666_vm10 = vcmp.ge.s32.totalorder %v5101_v32, %v4958_v1  ;;  %v5141_v57 = vadd.s32 152, %v4960_v45 }
 0x1c5   : > { %1938 = vst.msk [vmem:[#allocation2 + $0x70] sm:$0xff] %vm280_vm4, %v1912_v47  ;;  %1939 = vst.msk [vmem:[#allocation2 + $0x78] sm:$0xff] %vm280_vm4, %v1913_v22  ;;  %v1914_v30 = vadd.f32 %v1889_v38, %v1864_v11  ;;  %v1915_v58 = vadd.f32 %v1890_v46, %v1865_v6  ;;  %v1891_v5 = vsel %vm5666_vm10, %v4670_v48, 0.0  ;;  %v5150_v19 = vadd.s32 160, %v4960_v45  ;;  %v1949_v22 = vld [vmem:[#allocation3] sm:$0xff] }
 0x1c6   : > { %v1916_v35 = vadd.f32 %v1891_v5, %v1866_v31  ;;  %vm5667_vm11 = vcmp.ge.s32.totalorder %v5141_v57, %v4958_v1  ;;  %v5155_v56 = vadd.s32 168, %v4960_v45  ;;  %v5158_v49 = vadd.s32 176, %v4960_v45  ;;  %v1950_v31 = vld [vmem:[#allocation3 + $0x8] sm:$0xff] }
 0x1c7   : > { %1940 = vst.msk [vmem:[#allocation2 + $0x80] sm:$0xff] %vm280_vm4, %v1914_v30  ;;  %1941 = vst.msk [vmem:[#allocation2 + $0x88] sm:$0xff] %vm280_vm4, %v1915_v58  ;;  %v1892_v48 = vsel %vm5667_vm11, %v4720_v39, 0.0  ;;  %vm5669_vm10 = vcmp.ge.s32.totalorder %v5150_v19, %v4958_v1  ;;  %v5169_v8 = vadd.s32 184, %v4960_v45  ;;  %v5172_v51 = vadd.s32 192, %v4960_v45  ;;  %v1871_v39 = vld [vmem:[#allocation2 + $0xb8] sm:$0xff] }
 0x1c8   : > { %1942 = vst.msk [vmem:[#allocation2 + $0x90] sm:$0xff] %vm280_vm4, %v1916_v35  ;;  %v1917_v50 = vadd.f32 %v1892_v48, %v1867_v23  ;;  %v1893_v9 = vsel %vm5669_vm10, %v4699_v10, 0.0  ;;  %vm5670_vm11 = vcmp.ge.s32.totalorder %v5155_v56, %v4958_v1  ;;  %vm1795_vm12 = vcmp.ge.s32.totalorder %v5158_v49, %v4958_v1  ;;  %v1872_v10 = vld [vmem:[#allocation2 + $0xc0] sm:$0xff]  ;;  %v1951_v30 = vld [vmem:[#allocation3 + $0x10] sm:$0xff]  ;;  %v1954_v48 = vld [vmem:[#allocation3 + $0x28] sm:$0xff] }
 0x1c9   : > { %v1918_v11 = vadd.f32 %v1893_v9, %v1868_v20  ;;  %v1894_v6 = vsel %vm5670_vm11, %v4757_v18, 0.0  ;;  %v1895_v47 = vsel %vm1795_vm12, %v4738_v21, 0.0  ;;  %vm1796_vm10 = vcmp.ge.s32.totalorder %v5169_v8, %v4958_v1  ;;  %v5862_v23 = vld [vmem:[#allocation39_spill] sm:$0xff]  ;;  %v1953_v20 = vld [vmem:[#allocation3 + $0x20] sm:$0xff]  ;;  %v1955_v9 = vld [vmem:[#allocation3 + $0x30] sm:$0xff] }
 0x1ca   : > { %1943 = vst.msk [vmem:[#allocation2 + $0x98] sm:$0xff] %vm280_vm4, %v1917_v50  ;;  %v1919_v38 = vadd.f32 %v1894_v6, %v1869_v37  ;;  %v1920_v46 = vadd.f32 %v1895_v47, %v1870_v27  ;;  %v1896_v18 = vsel %vm1796_vm10, %v4766_v63, 0.0  ;;  %vm1797_vm11 = vcmp.ge.s32.totalorder %v5172_v51, %v4958_v1  ;;  %v1952_v35 = vld [vmem:[#allocation3 + $0x18] sm:$0xff]  ;;  %v5863_v50 = vld [vmem:[#allocation38_spill] sm:$0xff]  ;;  %v5865_v47 = vld [vmem:[#allocation40_spill] sm:$0xff] }
 0x1cb   : > { %1944 = vst.msk [vmem:[#allocation2 + $0xa0] sm:$0xff] %vm280_vm4, %v1918_v11  ;;  %v1921_v21 = vadd.f32 %v1896_v18, %v1871_v39  ;;  %v1897_v58 = vsel %vm1797_vm11, %v4762_v26, 0.0  ;;  %v1974_v5 = vsel %vm1773_vm14, %v4166_v16, 0.0  ;;  %v1975_v63 = vsel %vm1774_vm15, %v5862_v23, 0.0  ;;  %v5864_v11 = vld [vmem:[#allocation41_spill] sm:$0xff]  ;;  %v1959_v23 = vld [vmem:[#allocation3 + $0x50] sm:$0xff] }
 0x1cc   : > { %1945 = vst.msk [vmem:[#allocation2 + $0xa8] sm:$0xff] %vm280_vm4, %v1919_v38  ;;  %1946 = vst.msk [vmem:[#allocation2 + $0xb0] sm:$0xff] %vm280_vm4, %v1920_v46  ;;  %v1922_v37 = vadd.f32 %v1897_v58, %v1872_v10  ;;  %v1999_v27 = vadd.f32 %v1974_v5, %v1949_v22  ;;  %v2000_v26 = vadd.f32 %v1975_v63, %v1950_v31  ;;  %v1976_v16 = vsel %vm1775_vm0, %v5863_v50, 0.0  ;;  %v1956_v31 = vld [vmem:[#allocation3 + $0x38] sm:$0xff]  ;;  %v1957_v38 = vld [vmem:[#allocation3 + $0x40] sm:$0xff] }
 0x1cd   : > { %1947 = vst.msk [vmem:[#allocation2 + $0xb8] sm:$0xff] %vm280_vm4, %v1921_v21  ;;  %v2001_v39 = vadd.f32 %v1976_v16, %v1951_v30  ;;  %v1977_v6 = vsel %vm1776_vm1, %v5864_v11, 0.0  ;;  %v1978_v10 = vsel %vm1777_vm2, %v5865_v47, 0.0  ;;  %v1979_v22 = vsel %vm1778_vm3, %v4345_v14, 0.0  ;;  %v1958_v46 = vld [vmem:[#allocation3 + $0x48] sm:$0xff]  ;;  %v5866_v58 = vld [vmem:[#allocation42_spill] sm:$0xff] }
 0x1ce   : > { %1948 = vst.msk [vmem:[#allocation2 + $0xc0] sm:$0xff] %vm280_vm4, %v1922_v37  ;;  %2024 = vst.msk [vmem:[#allocation3] sm:$0xff] %vm280_vm4, %v1999_v27  ;;  %v2002_v18 = vadd.f32 %v1977_v6, %v1952_v35  ;;  %v2003_v30 = vadd.f32 %v1978_v10, %v1953_v20  ;;  %v2004_v21 = vadd.f32 %v1979_v22, %v1954_v48  ;;  %v1980_v5 = vsel %vm1779_vm5, %v5866_v58, 0.0  ;;  %v1960_v48 = vld [vmem:[#allocation3 + $0x58] sm:$0xff]  ;;  %v1961_v37 = vld [vmem:[#allocation3 + $0x60] sm:$0xff] }
 0x1cf   : > { %2025 = vst.msk [vmem:[#allocation3 + $0x8] sm:$0xff] %vm280_vm4, %v2000_v26  ;;  %2026 = vst.msk [vmem:[#allocation3 + $0x10] sm:$0xff] %vm280_vm4, %v2001_v39  ;;  %v2005_v14 = vadd.f32 %v1980_v5, %v1955_v9  ;;  %v1981_v63 = vsel %vm5673_vm6, %v4403_v44, 0.0  ;;  %v1982_v35 = vsel %vm5672_vm7, %v4380_v40, 0.0  ;;  %v1983_v20 = vsel %vm5671_vm8, %v4441_v33, 0.0  ;;  %v1962_v27 = vld [vmem:[#allocation3 + $0x68] sm:$0xff] }
 0x1d0   : > { %2027 = vst.msk [vmem:[#allocation3 + $0x18] sm:$0xff] %vm280_vm4, %v2002_v18  ;;  %2028 = vst.msk [vmem:[#allocation3 + $0x20] sm:$0xff] %vm280_vm4, %v2003_v30  ;;  %v2006_v44 = vadd.f32 %v1981_v63, %v1956_v31  ;;  %v2007_v26 = vadd.f32 %v1982_v35, %v1957_v38  ;;  %v2008_v50 = vadd.f32 %v1983_v20, %v1958_v46  ;;  %v1984_v40 = vsel %vm1783_vm9, %v4411_v62, 0.0  ;;  %v1963_v16 = vld [vmem:[#allocation3 + $0x70] sm:$0xff]  ;;  %v5867_v9 = vld [vmem:[#allocation44_spill] sm:$0xff] }
 0x1d1   : > { %2029 = vst.msk [vmem:[#allocation3 + $0x28] sm:$0xff] %vm280_vm4, %v2004_v21  ;;  %2030 = vst.msk [vmem:[#allocation3 + $0x30] sm:$0xff] %vm280_vm4, %v2005_v14  ;;  %v2009_v33 = vadd.f32 %v1984_v40, %v1959_v23  ;;  %vm5868_vm8 = vcmp.ge.s32.totalorder %v5050_v53, %v4958_v1  ;;  %v5869_v11 = vld [vmem:[#allocation43_spill] sm:$0xff]  ;;  %vm5870_vm7 = vcmp.ge.s32.totalorder %v5076_v17, %v4958_v1  ;;  %v5871_v47 = vld [vmem:[#allocation46_spill] sm:$0xff] }
 0x1d2   : > { %v1985_v39 = vsel %vm5868_vm8, %v5867_v9, 0.0  ;;  %v1986_v6 = vsel %vm5870_vm7, %v5869_v11, 0.0  ;;  %vm5872_vm6 = vcmp.ge.s32.totalorder %v5079_v59, %v4958_v1  ;;  %v1964_v62 = vld [vmem:[#allocation3 + $0x78] sm:$0xff]  ;;  %v1965_v22 = vld [vmem:[#allocation3 + $0x80] sm:$0xff]  ;;  %v1966_v31 = vld [vmem:[#allocation3 + $0x88] sm:$0xff]  ;;  %2031 = vst.msk [vmem:[#allocation3 + $0x38] sm:$0xff] %vm280_vm4, %v2006_v44  ;;  %vm5877_vm7 = vcmp.ge.s32.totalorder %v5090_v61, %v4958_v1 }
 0x1d3   : > { %v1987_v10 = vsel %vm5872_vm6, %v5871_v47, 0.0  ;;  %2032 = vst.msk [vmem:[#allocation3 + $0x40] sm:$0xff] %vm280_vm4, %v2007_v26  ;;  %2033 = vst.msk [vmem:[#allocation3 + $0x48] sm:$0xff] %vm280_vm4, %v2008_v50  ;;  %v2010_v38 = vadd.f32 %v1985_v39, %v1960_v48  ;;  %v2011_v46 = vadd.f32 %v1986_v6, %v1961_v37  ;;  %v5873_v30 = vld [vmem:[#allocation45_spill] sm:$0xff]  ;;  %v1967_v58 = vld [vmem:[#allocation3 + $0x90] sm:$0xff]  ;;  %vm5875_vm6 = vcmp.ge.s32.totalorder %v5087_v43, %v4958_v1 }
 0x1d4   : > { %v2012_v18 = vadd.f32 %v1987_v10, %v1962_v27  ;;  %v1988_v21 = vsel %vm5674_vm13, %v5873_v30, 0.0  ;;  %2034 = vst.msk [vmem:[#allocation3 + $0x50] sm:$0xff] %vm280_vm4, %v2009_v33  ;;  %v5874_v23 = vld [vmem:[#allocation33_spill] sm:$0xff]  ;;  %vm5878_vm8 = vcmp.ge.s32.totalorder %v5098_v2, %v4958_v1  ;;  %v1968_v48 = vld [vmem:[#allocation3 + $0x98] sm:$0xff]  ;;  %v1969_v37 = vld [vmem:[#allocation3 + $0xa0] sm:$0xff]  ;;  %vm5882_vm13 = vcmp.ge.s32.totalorder %v5155_v56, %v4958_v1 }
 0x1d5   : > { %v2013_v5 = vadd.f32 %v1988_v21, %v1963_v16  ;;  %v1989_v14 = vsel %vm5875_vm6, %v5874_v23, 0.0  ;;  %v5876_v63 = vld [vmem:[#allocation37_spill] sm:$0xff]  ;;  %v1991_v20 = vsel %vm5878_vm8, %v4693_v13, 0.0  ;;  %2035 = vst.msk [vmem:[#allocation3 + $0x58] sm:$0xff] %vm280_vm4, %v2010_v38  ;;  %2036 = vst.msk [vmem:[#allocation3 + $0x60] sm:$0xff] %vm280_vm4, %v2011_v46  ;;  %vm5879_vm6 = vcmp.ge.s32.totalorder %v5101_v32, %v4958_v1  ;;  %v1971_v16 = vld [vmem:[#allocation3 + $0xb0] sm:$0xff] }
 0x1d6   : > { %v1990_v35 = vsel %vm5877_vm7, %v5876_v63, 0.0  ;;  %v1970_v27 = vld [vmem:[#allocation3 + $0xa8] sm:$0xff]  ;;  %2037 = vst.msk [vmem:[#allocation3 + $0x68] sm:$0xff] %vm280_vm4, %v2012_v18  ;;  %v2014_v44 = vadd.f32 %v1989_v14, %v1964_v62  ;;  %v2016_v50 = vadd.f32 %v1991_v20, %v1966_v31  ;;  %v1992_v40 = vsel %vm5879_vm6, %v4687_v3, 0.0  ;;  %v1972_v3 = vld [vmem:[#allocation3 + $0xb8] sm:$0xff]  ;;  %v1973_v11 = vld [vmem:[#allocation3 + $0xc0] sm:$0xff] }
 0x1d7   : > { %v2015_v26 = vadd.f32 %v1990_v35, %v1965_v22  ;;  %2038 = vst.msk [vmem:[#allocation3 + $0x70] sm:$0xff] %vm280_vm4, %v2013_v5  ;;  %v2017_v13 = vadd.f32 %v1992_v40, %v1967_v58  ;;  %vm5880_vm7 = vcmp.ge.s32.totalorder %v5141_v57, %v4958_v1  ;;  %vm5881_vm8 = vcmp.ge.s32.totalorder %v5150_v19, %v4958_v1  ;;  %v2049_v6 = vld [vmem:[#allocation4] sm:$0xff]  ;;  %v2050_v62 = vld [vmem:[#allocation4 + $0x8] sm:$0xff]  ;;  %v2051_v18 = vld [vmem:[#allocation4 + $0x10] sm:$0xff] }
 0x1d8   : > { %v1993_v33 = vsel %vm5880_vm7, %v4734_v41, 0.0  ;;  %v1994_v9 = vsel %vm5881_vm8, %v4708_v7, 0.0  ;;  %v1995_v39 = vsel %vm5882_vm13, %v4760_v52, 0.0  ;;  %2039 = vst.msk [vmem:[#allocation3 + $0x78] sm:$0xff] %vm280_vm4, %v2014_v44  ;;  %2041 = vst.msk [vmem:[#allocation3 + $0x88] sm:$0xff] %vm280_vm4, %v2016_v50  ;;  %v1996_v7 = vsel %vm1795_vm12, %v4748_v36, 0.0 }
 0x1d9   : > { %2040 = vst.msk [vmem:[#allocation3 + $0x80] sm:$0xff] %vm280_vm4, %v2015_v26  ;;  %v2018_v41 = vadd.f32 %v1993_v33, %v1968_v48  ;;  %v2019_v47 = vadd.f32 %v1994_v9, %v1969_v37  ;;  %v2020_v10 = vadd.f32 %v1995_v39, %v1970_v27  ;;  %2042 = vst.msk [vmem:[#allocation3 + $0x90] sm:$0xff] %vm280_vm4, %v2017_v13  ;;  %v1997_v22 = vsel %vm1796_vm10, %v4774_v0, 0.0  ;;  %v5883_v38 = vld [vmem:[#allocation9_spill] sm:$0xff]  ;;  %v2052_v30 = vld [vmem:[#allocation4 + $0x18] sm:$0xff] }
 0x1da   : > { %v2021_v52 = vadd.f32 %v1996_v7, %v1971_v16  ;;  %v1998_v31 = vsel %vm1797_vm11, %v4772_v42, 0.0  ;;  %v5884_v46 = vand.u32 2147483647, %v5883_v38  ;;  %v2053_v21 = vld [vmem:[#allocation4 + $0x20] sm:$0xff]  ;;  %v2022_v0 = vadd.f32 %v1997_v22, %v1972_v3  ;;  %v5885_v23 = vld [vmem:[#allocation11_spill] sm:$0xff]  ;;  %v2054_v45 = vld [vmem:[#allocation4 + $0x28] sm:$0xff] }
 0x1db   : > { %2043 = vst.msk [vmem:[#allocation3 + $0x98] sm:$0xff] %vm280_vm4, %v2018_v41  ;;  %2044 = vst.msk [vmem:[#allocation3 + $0xa0] sm:$0xff] %vm280_vm4, %v2019_v47  ;;  %v2023_v58 = vadd.f32 %v1998_v31, %v1973_v11  ;;  %v5886_v42 = vand.u32 2147483647, %v5885_v23  ;;  %v5887_v35 = vld [vmem:[#allocation8_spill] sm:$0xff]  ;;  %v5889_v37 = vld [vmem:[#allocation10_spill] sm:$0xff]  ;;  %vm5925_vm13 = vcmp.ge.s32.totalorder %v5090_v61, %v4958_v1  ;;  %vm5928_vm6 = vcmp.ge.s32.totalorder %v5098_v2, %v4958_v1 }
 0x1dc   : > { %v2074_v36 = vsel %vm1773_vm14, %v5884_v46, 0.0  ;;  %2045 = vst.msk [vmem:[#allocation3 + $0xa8] sm:$0xff] %vm280_vm4, %v2020_v10  ;;  %2046 = vst.msk [vmem:[#allocation3 + $0xb0] sm:$0xff] %vm280_vm4, %v2021_v52  ;;  %v5888_v20 = vand.u32 2147483647, %v5887_v35  ;;  %v5891_v26 = vld [vmem:[#allocation13_spill] sm:$0xff]  ;;  %vm5899_vm14 = vcmp.ge.s32.totalorder %v5016_v24, %v4958_v1  ;;  %vm5931_vm7 = vcmp.ge.s32.totalorder %v5101_v32, %v4958_v1 }
 0x1dd   : > { %v2099_v5 = vadd.f32 %v2074_v36, %v2049_v6  ;;  %v2075_v14 = vsel %vm1774_vm15, %v5886_v42, 0.0  ;;  %v5890_v27 = vand.u32 2147483647, %v5889_v37  ;;  %v5892_v50 = vand.u32 2147483647, %v5891_v26  ;;  %v2055_v40 = vld [vmem:[#allocation4 + $0x30] sm:$0xff] }
 0x1de   : > { %v2100_v63 = vadd.f32 %v2075_v14, %v2050_v62  ;;  %v2076_v48 = vsel %vm1775_vm0, %v5888_v20, 0.0  ;;  %v2056_v16 = vld [vmem:[#allocation4 + $0x38] sm:$0xff]  ;;  %v2057_v13 = vld [vmem:[#allocation4 + $0x40] sm:$0xff]  ;;  %2047 = vst.msk [vmem:[#allocation3 + $0xb8] sm:$0xff] %vm280_vm4, %v2022_v0  ;;  %2048 = vst.msk [vmem:[#allocation3 + $0xc0] sm:$0xff] %vm280_vm4, %v2023_v58  ;;  %vm5902_vm15 = vcmp.ge.s32.totalorder %v5030_v60, %v4958_v1  ;;  %vm5905_vm0 = vcmp.ge.s32.totalorder %v5033_v55, %v4958_v1 }
 0x1df   : > { %v2077_v44 = vsel %vm1776_vm1, %v5890_v27, 0.0  ;;  %v2078_v4 = vsel %vm1777_vm2, %v5892_v50, 0.0  ;;  %2124 = vst.msk [vmem:[#allocation4] sm:$0xff] %vm280_vm4, %v2099_v5  ;;  %v2101_v29 = vadd.f32 %v2076_v48, %v2051_v18  ;;  %v5894_v39 = vand.u32 2147483647, %v5893_v54  ;;  %v5895_v6 = vld [vmem:[#allocation15_spill] sm:$0xff] }
 0x1e0   : > { %v2102_v33 = vadd.f32 %v2077_v44, %v2052_v30  ;;  %v2103_v9 = vadd.f32 %v2078_v4, %v2053_v21  ;;  %2125 = vst.msk [vmem:[#allocation4 + $0x8] sm:$0xff] %vm280_vm4, %v2100_v63  ;;  %v5896_v41 = vand.u32 2147483647, %v5895_v6  ;;  %v5897_v10 = vld [vmem:[#allocation14_spill] sm:$0xff]  ;;  %v5900_v52 = vld [vmem:[#allocation17_spill] sm:$0xff]  ;;  %v2059_v31 = vld [vmem:[#allocation4 + $0x50] sm:$0xff]  ;;  %vm5910_vm1 = vcmp.ge.s32.totalorder %v5050_v53, %v4958_v1 }
 0x1e1   : > { %v2079_v3 = vsel %vm1778_vm3, %v5894_v39, 0.0  ;;  %v5898_v7 = vand.u32 2147483647, %v5897_v10  ;;  %v5901_v22 = vand.u32 2147483647, %v5900_v52  ;;  %v2060_v38 = vld [vmem:[#allocation4 + $0x58] sm:$0xff]  ;;  %vm5913_vm2 = vcmp.ge.s32.totalorder %v5076_v17, %v4958_v1 }
 0x1e2   : > { %v2104_v11 = vadd.f32 %v2079_v3, %v2054_v45  ;;  %v2080_v47 = vsel %vm1779_vm5, %v5896_v41, 0.0  ;;  %v2061_v46 = vld [vmem:[#allocation4 + $0x60] sm:$0xff]  ;;  %2126 = vst.msk [vmem:[#allocation4 + $0x10] sm:$0xff] %vm280_vm4, %v2101_v29  ;;  %2127 = vst.msk [vmem:[#allocation4 + $0x18] sm:$0xff] %vm280_vm4, %v2102_v33  ;;  %v5903_v24 = vld [vmem:[#allocation16_spill] sm:$0xff]  ;;  %vm5916_vm3 = vcmp.ge.s32.totalorder %v5079_v59, %v4958_v1  ;;  %vm5919_vm5 = vcmp.ge.s32.totalorder %v5084_v12, %v4958_v1 }
 0x1e3   : > { %v2081_v62 = vsel %vm5899_vm14, %v5898_v7, 0.0  ;;  %v2082_v34 = vsel %vm5902_vm15, %v5901_v22, 0.0  ;;  %2128 = vst.msk [vmem:[#allocation4 + $0x20] sm:$0xff] %vm280_vm4, %v2103_v9  ;;  %v2105_v25 = vadd.f32 %v2080_v47, %v2055_v40  ;;  %v5904_v30 = vand.u32 2147483647, %v5903_v24  ;;  %v2062_v60 = vld [vmem:[#allocation4 + $0x68] sm:$0xff] }
 0x1e4   : > { %v2106_v36 = vadd.f32 %v2081_v62, %v2056_v16  ;;  %v2107_v18 = vadd.f32 %v2082_v34, %v2057_v13  ;;  %2129 = vst.msk [vmem:[#allocation4 + $0x28] sm:$0xff] %vm280_vm4, %v2104_v11  ;;  %v5906_v58 = vld [vmem:[#allocation19_spill] sm:$0xff]  ;;  %v5908_v42 = vld [vmem:[#allocation18_spill] sm:$0xff]  ;;  %v5911_v63 = vld [vmem:[#allocation21_spill] sm:$0xff]  ;;  %vm5934_vm8 = vcmp.ge.s32.totalorder %v5141_v57, %v4958_v1  ;;  %vm5937_vm14 = vcmp.ge.s32.totalorder %v5150_v19, %v4958_v1 }
 0x1e5   : > { %v2083_v21 = vsel %vm5905_vm0, %v5904_v30, 0.0  ;;  %v5907_v5 = vand.u32 2147483647, %v5906_v58  ;;  %v5909_v14 = vand.u32 2147483647, %v5908_v42  ;;  %v2063_v20 = vld [vmem:[#allocation4 + $0x70] sm:$0xff]  ;;  %vm5940_vm15 = vcmp.ge.s32.totalorder %v5155_v56, %v4958_v1 }
 0x1e6   : > { %v2108_v0 = vadd.f32 %v2083_v21, %v2058_v28  ;;  %v5912_v35 = vand.u32 2147483647, %v5911_v63  ;;  %v2064_v48 = vld [vmem:[#allocation4 + $0x78] sm:$0xff]  ;;  %v2065_v37 = vld [vmem:[#allocation4 + $0x80] sm:$0xff]  ;;  %2130 = vst.msk [vmem:[#allocation4 + $0x30] sm:$0xff] %vm280_vm4, %v2105_v25  ;;  %2131 = vst.msk [vmem:[#allocation4 + $0x38] sm:$0xff] %vm280_vm4, %v2106_v36 }
 0x1e7   : > { %v2084_v23 = vsel %vm1783_vm9, %v5907_v5, 0.0  ;;  %v2085_v45 = vsel %vm5910_vm1, %v5909_v14, 0.0  ;;  %2132 = vst.msk [vmem:[#allocation4 + $0x40] sm:$0xff] %vm280_vm4, %v2107_v18  ;;  %v5914_v53 = vld [vmem:[#allocation20_spill] sm:$0xff]  ;;  %v2066_v17 = vld [vmem:[#allocation4 + $0x88] sm:$0xff]  ;;  %v5917_v40 = vld [vmem:[#allocation23_spill] sm:$0xff]  ;;  %vm5922_vm9 = vcmp.ge.s32.totalorder %v5087_v43, %v4958_v1 }
 0x1e8   : > { %v2086_v55 = vsel %vm5913_vm2, %v5912_v35, 0.0  ;;  %v2109_v15 = vadd.f32 %v2084_v23, %v2059_v31  ;;  %v2110_v27 = vadd.f32 %v2085_v45, %v2060_v38  ;;  %v5915_v26 = vand.u32 2147483647, %v5914_v53  ;;  %2133 = vst.msk [vmem:[#allocation4 + $0x48] sm:$0xff] %vm280_vm4, %v2108_v0  ;;  %v5920_v29 = vld [vmem:[#allocation22_spill] sm:$0xff]  ;;  %v5923_v54 = vld [vmem:[#allocation25_spill] sm:$0xff] }
 0x1e9   : > { %v2111_v44 = vadd.f32 %v2086_v55, %v2061_v46  ;;  %v5918_v16 = vand.u32 2147483647, %v5917_v40  ;;  %v5921_v33 = vand.u32 2147483647, %v5920_v29  ;;  %v5924_v39 = vand.u32 2147483647, %v5923_v54 }
 0x1ea   : > { %v2087_v50 = vsel %vm5916_vm3, %v5915_v26, 0.0  ;;  %v2067_v3 = vld [vmem:[#allocation4 + $0x90] sm:$0xff]  ;;  %v2068_v28 = vld [vmem:[#allocation4 + $0x98] sm:$0xff]  ;;  %v2069_v11 = vld [vmem:[#allocation4 + $0xa0] sm:$0xff]  ;;  %2134 = vst.msk [vmem:[#allocation4 + $0x50] sm:$0xff] %vm280_vm4, %v2109_v15 }
 0x1eb   : > { %v2112_v4 = vadd.f32 %v2087_v50, %v2062_v60  ;;  %v2088_v13 = vsel %vm5919_vm5, %v5918_v16, 0.0  ;;  %v2089_v9 = vsel %vm5922_vm9, %v5921_v33, 0.0  ;;  %v2090_v59 = vsel %vm5925_vm13, %v5924_v39, 0.0  ;;  %2135 = vst.msk [vmem:[#allocation4 + $0x58] sm:$0xff] %vm280_vm4, %v2110_v27  ;;  %2136 = vst.msk [vmem:[#allocation4 + $0x60] sm:$0xff] %vm280_vm4, %v2111_v44  ;;  %v5926_v43 = vld [vmem:[#allocation24_spill] sm:$0xff] }
 0x1ec   : > { %v2113_v12 = vadd.f32 %v2088_v13, %v2063_v20  ;;  %v2114_v6 = vadd.f32 %v2089_v9, %v2064_v48  ;;  %v2115_v41 = vadd.f32 %v2090_v59, %v2065_v37  ;;  %v5927_v47 = vand.u32 2147483647, %v5926_v43  ;;  %v2070_v61 = vld [vmem:[#allocation4 + $0xa8] sm:$0xff]  ;;  %v5929_v62 = vld [vmem:[#allocation27_spill] sm:$0xff]  ;;  %v5935_v46 = vld [vmem:[#allocation29_spill] sm:$0xff] }
 0x1ed   : > { %2137 = vst.msk [vmem:[#allocation4 + $0x68] sm:$0xff] %vm280_vm4, %v2112_v4  ;;  %v5930_v52 = vand.u32 2147483647, %v5929_v62  ;;  %v5932_v34 = vld [vmem:[#allocation26_spill] sm:$0xff]  ;;  %v5936_v25 = vand.u32 2147483647, %v5935_v46 }
 0x1ee   : > { %v2091_v10 = vsel %vm5928_vm6, %v5927_v47, 0.0  ;;  %v5933_v31 = vand.u32 2147483647, %v5932_v34  ;;  %v2071_v36 = vld [vmem:[#allocation4 + $0xb0] sm:$0xff]  ;;  %v2072_v18 = vld [vmem:[#allocation4 + $0xb8] sm:$0xff]  ;;  %v2073_v24 = vld [vmem:[#allocation4 + $0xc0] sm:$0xff] }
 0x1ef   : > { %v2116_v7 = vadd.f32 %v2091_v10, %v2066_v17  ;;  %v2092_v22 = vsel %vm5931_vm7, %v5930_v52, 0.0  ;;  %v2094_v2 = vsel %vm5937_vm14, %v5936_v25, 0.0  ;;  %2138 = vst.msk [vmem:[#allocation4 + $0x70] sm:$0xff] %vm280_vm4, %v2113_v12  ;;  %2139 = vst.msk [vmem:[#allocation4 + $0x78] sm:$0xff] %vm280_vm4, %v2114_v6  ;;  %v5938_v57 = vld [vmem:[#allocation28_spill] sm:$0xff]  ;;  %v5941_v58 = vld [vmem:[#allocation31_spill] sm:$0xff] }
 0x1f0   : > { %v2093_v38 = vsel %vm5934_vm8, %v5933_v31, 0.0  ;;  %2140 = vst.msk [vmem:[#allocation4 + $0x80] sm:$0xff] %vm280_vm4, %v2115_v41  ;;  %v2117_v32 = vadd.f32 %v2092_v22, %v2067_v3  ;;  %v2119_v21 = vadd.f32 %v2094_v2, %v2069_v11  ;;  %v5939_v60 = vand.u32 2147483647, %v5938_v57  ;;  %v5943_v42 = vld [vmem:[#allocation30_spill] sm:$0xff]  ;;  %v5945_v63 = vld [vmem:[#allocation32_spill] sm:$0xff] }
 0x1f1   : > { %v2118_v30 = vadd.f32 %v2093_v38, %v2068_v28  ;;  %2141 = vst.msk [vmem:[#allocation4 + $0x88] sm:$0xff] %vm280_vm4, %v2116_v7  ;;  %v5942_v5 = vand.u32 2147483647, %v5941_v58  ;;  %v5944_v14 = vand.u32 2147483647, %v5943_v42 }
 0x1f2   : > { %v2095_v0 = vsel %vm5940_vm15, %v5939_v60, 0.0  ;;  %v5946_v35 = vand.u32 2147483647, %v5945_v63  ;;  %2142 = vst.msk [vmem:[#allocation4 + $0x90] sm:$0xff] %vm280_vm4, %v2117_v32  ;;  %2144 = vst.msk [vmem:[#allocation4 + $0xa0] sm:$0xff] %vm280_vm4, %v2119_v21 }
 0x1f3   : > { %v2120_v19 = vadd.f32 %v2095_v0, %v2070_v61  ;;  %v2096_v23 = vsel %vm1795_vm12, %v5942_v5, 0.0  ;;  %v2097_v45 = vsel %vm1796_vm10, %v5944_v14, 0.0  ;;  %2143 = vst.msk [vmem:[#allocation4 + $0x98] sm:$0xff] %vm280_vm4, %v2118_v30 }
 0x1f4   : > { %v2098_v56 = vsel %vm1797_vm11, %v5946_v35, 0.0  ;;  %v2121_v49 = vadd.f32 %v2096_v23, %v2071_v36  ;;  %v2122_v55 = vadd.f32 %v2097_v45, %v2072_v18 }
 0x1f5   : > { %v2123_v20 = vadd.f32 %v2098_v56, %v2073_v24  ;;  %2145 = vst.msk [vmem:[#allocation4 + $0xa8] sm:$0xff] %vm280_vm4, %v2120_v19 }
 0x1f6   : > { %2146 = vst.msk [vmem:[#allocation4 + $0xb0] sm:$0xff] %vm280_vm4, %v2121_v49  ;;  %2147 = vst.msk [vmem:[#allocation4 + $0xb8] sm:$0xff] %vm280_vm4, %v2122_v55 }
 0x1f7   : > { %2148 = vst.msk [vmem:[#allocation4 + $0xc0] sm:$0xff] %vm280_vm4, %v2123_v20 }
 0x1f8 PF: > { %v2319_v1 = vld [vmem:[#allocation4] sm:$0xff]  ;;  %v2320_v8 = vld [vmem:[#allocation4 + $0x8] sm:$0xff]  ;;  %v2321_v51 = vld [vmem:[#allocation4 + $0x10] sm:$0xff]  ;;  %s2605_s26 = sshll.u32 %s2866_s18, 7  ;;  %s2428_s30 = sshll.u32 %s251_s24, 4  ;;  %s5567_s30 = int_to_ptr.vmem [resolvable:$true] %s2428_s30 }
 0x1f9   : > { %v2322_v48 = vld [vmem:[#allocation4 + $0x18] sm:$0xff]  ;;  %v2344_v37 = vsel %vm280_vm4, %v2319_v1, 0.0  ;;  %v2345_v15 = vsel %vm280_vm4, %v2320_v8, 0.0  ;;  %v2347_v27 = vsel %vm280_vm4, %v2321_v51, 0.0  ;;  %v2323_v44 = vld [vmem:[#allocation4 + $0x20] sm:$0xff]  ;;  %v2324_v50 = vld [vmem:[#allocation4 + $0x28] sm:$0xff]  ;;  %s5565_s7 = scalar_lea.hbm %s5620_s4, %s2605_s26 }
 0x1fa   : > { %v2346_v53 = vadd.f32 %v2345_v15, %v2344_v37  ;;  %v2349_v26 = vsel %vm280_vm4, %v2322_v48, 0.0  ;;  %v2351_v4 = vsel %vm280_vm4, %v2323_v44, 0.0  ;;  %v2325_v40 = vld [vmem:[#allocation4 + $0x30] sm:$0xff]  ;;  %v2353_v13 = vsel %vm280_vm4, %v2324_v50, 0.0  ;;  %v2326_v29 = vld [vmem:[#allocation4 + $0x38] sm:$0xff]  ;;  %v2154_v59 = vld [vmem:[#allocation2 + $0x10] sm:$0xff] }
 0x1fb   : > { %v2152_v9 = vld [vmem:[#allocation2] sm:$0xff]  ;;  %v2153_v54 = vld [vmem:[#allocation2 + $0x8] sm:$0xff]  ;;  %v2355_v39 = vsel %vm280_vm4, %v2325_v40, 0.0  ;;  %v2155_v3 = vld [vmem:[#allocation2 + $0x18] sm:$0xff]  ;;  %v2181_v47 = vsel %vm280_vm4, %v2154_v59, 0.0  ;;  %v2357_v10 = vsel %vm280_vm4, %v2326_v29, 0.0 }
 0x1fc   : > { %v2348_v17 = vadd.f32 %v2347_v27, %v2346_v53  ;;  %v2178_v28 = vsel %vm280_vm4, %v2152_v9, 0.0  ;;  %v2179_v11 = vsel %vm280_vm4, %v2153_v54, 0.0  ;;  %v2327_v12 = vld [vmem:[#allocation4 + $0x40] sm:$0xff]  ;;  %v2156_v41 = vld [vmem:[#allocation2 + $0x20] sm:$0xff]  ;;  %v2183_v61 = vsel %vm280_vm4, %v2155_v3, 0.0  ;;  %v2328_v7 = vld [vmem:[#allocation4 + $0x48] sm:$0xff] }
 0x1fd   : > { %v2180_v43 = vadd.f32 %v2179_v11, %v2178_v28  ;;  %v2157_v52 = vld [vmem:[#allocation2 + $0x28] sm:$0xff]  ;;  %v2359_v34 = vsel %vm280_vm4, %v2327_v12, 0.0  ;;  %v2185_v31 = vsel %vm280_vm4, %v2156_v41, 0.0  ;;  %v2329_v38 = vld [vmem:[#allocation4 + $0x50] sm:$0xff]  ;;  %v2158_v25 = vld [vmem:[#allocation2 + $0x30] sm:$0xff]  ;;  %v2361_v18 = vsel %vm280_vm4, %v2328_v7, 0.0 }
 0x1fe   : > { %v2350_v16 = vadd.f32 %v2349_v26, %v2348_v17  ;;  %v2330_v36 = vld [vmem:[#allocation4 + $0x58] sm:$0xff]  ;;  %v2187_v24 = vsel %vm280_vm4, %v2157_v52, 0.0  ;;  %v2159_v30 = vld [vmem:[#allocation2 + $0x38] sm:$0xff]  ;;  %v2363_v60 = vsel %vm280_vm4, %v2329_v38, 0.0  ;;  %v2189_v0 = vsel %vm280_vm4, %v2158_v25, 0.0  ;;  %v2237_v19 = vld [vmem:[#allocation3 + $0x8] sm:$0xff] }
 0x1ff   : > { %v2182_v22 = vadd.f32 %v2181_v47, %v2180_v43  ;;  %v2236_v57 = vld [vmem:[#allocation3] sm:$0xff]  ;;  %v2238_v58 = vld [vmem:[#allocation3 + $0x10] sm:$0xff]  ;;  %v2331_v5 = vld [vmem:[#allocation4 + $0x60] sm:$0xff]  ;;  %v2365_v42 = vsel %vm280_vm4, %v2330_v36, 0.0  ;;  %v2191_v35 = vsel %vm280_vm4, %v2159_v30, 0.0  ;;  %v2262_v49 = vsel %vm280_vm4, %v2237_v19, 0.0 }
 0x200   : > { %v2352_v33 = vadd.f32 %v2351_v4, %v2350_v16  ;;  %v2160_v14 = vld [vmem:[#allocation2 + $0x40] sm:$0xff]  ;;  %v2261_v56 = vsel %vm280_vm4, %v2236_v57, 0.0  ;;  %v2264_v55 = vsel %vm280_vm4, %v2238_v58, 0.0  ;;  %v2332_v20 = vld [vmem:[#allocation4 + $0x68] sm:$0xff]  ;;  %v2161_v8 = vld [vmem:[#allocation2 + $0x48] sm:$0xff]  ;;  %v2367_v15 = vsel %vm280_vm4, %v2331_v5, 0.0 }
 0x201   : > { %v2184_v2 = vadd.f32 %v2183_v61, %v2182_v22  ;;  %v2239_v63 = vld [vmem:[#allocation3 + $0x18] sm:$0xff]  ;;  %v2240_v48 = vld [vmem:[#allocation3 + $0x20] sm:$0xff]  ;;  %v2263_v37 = vadd.f32 %v2262_v49, %v2261_v56  ;;  %v2193_v27 = vsel %vm280_vm4, %v2160_v14, 0.0  ;;  %v2162_v50 = vld [vmem:[#allocation2 + $0x50] sm:$0xff]  ;;  %v2369_v16 = vsel %vm280_vm4, %v2332_v20, 0.0  ;;  %s2415_s18 = scalar_lea.sflag [#allocation6], %s249_s11 }
 0x202   : > { %v2354_v6 = vadd.f32 %v2353_v13, %v2352_v33  ;;  %v2266_v44 = vsel %vm280_vm4, %v2239_v63, 0.0  ;;  %v2333_v53 = vld [vmem:[#allocation4 + $0x70] sm:$0xff]  ;;  %v2241_v4 = vld [vmem:[#allocation3 + $0x28] sm:$0xff]  ;;  %v2195_v13 = vsel %vm280_vm4, %v2161_v8, 0.0  ;;  %v2268_v29 = vsel %vm280_vm4, %v2240_v48, 0.0  ;;  %v2334_v33 = vld [vmem:[#allocation4 + $0x78] sm:$0xff] }
 0x203   : > { %v2186_v21 = vadd.f32 %v2185_v31, %v2184_v2  ;;  %v2265_v40 = vadd.f32 %v2264_v55, %v2263_v37  ;;  %v2163_v54 = vld [vmem:[#allocation2 + $0x58] sm:$0xff]  ;;  %v2371_v28 = vsel %vm280_vm4, %v2333_v53, 0.0  ;;  %v2197_v11 = vsel %vm280_vm4, %v2162_v50, 0.0  ;;  %v2164_v43 = vld [vmem:[#allocation2 + $0x60] sm:$0xff]  ;;  %v2165_v31 = vld [vmem:[#allocation2 + $0x68] sm:$0xff]  ;;  %s2796_s8 = scalar_lea.vmem %s5567_s30, 128 }
 0x204   : > { %v2356_v62 = vadd.f32 %v2355_v39, %v2354_v6  ;;  %v2242_v59 = vld [vmem:[#allocation3 + $0x30] sm:$0xff]  ;;  %v2270_v12 = vsel %vm280_vm4, %v2241_v4, 0.0  ;;  %v2335_v6 = vld [vmem:[#allocation4 + $0x80] sm:$0xff]  ;;  %v2373_v7 = vsel %vm280_vm4, %v2334_v33, 0.0  ;;  %v2201_v36 = vsel %vm280_vm4, %v2164_v43, 0.0  ;;  %v2338_v5 = vld [vmem:[#allocation4 + $0x98] sm:$0xff]  ;;  %p2797_p12 = scmp.ne.s32.totalorder %s5567_s30, %s2796_s8 }
 0x205   : > { %v2188_v45 = vadd.f32 %v2187_v24, %v2186_v21  ;;  %v2267_v3 = vadd.f32 %v2266_v44, %v2265_v40  ;;  %v2272_v52 = vsel %vm280_vm4, %v2242_v59, 0.0  ;;  %v2336_v22 = vld [vmem:[#allocation4 + $0x88] sm:$0xff]  ;;  %v2375_v2 = vsel %vm280_vm4, %v2335_v6, 0.0  ;;  %v2337_v24 = vld [vmem:[#allocation4 + $0x90] sm:$0xff]  ;;  %v2166_v30 = vld [vmem:[#allocation2 + $0x70] sm:$0xff]  ;;  %s2877_s9 = smov [#allocation5]  }
 0x206   : > { %v2358_v46 = vadd.f32 %v2357_v10, %v2356_v62  ;;  %v2243_v10 = vld [vmem:[#allocation3 + $0x38] sm:$0xff]  ;;  %v2199_v62 = vsel %vm280_vm4, %v2163_v54, 0.0  ;;  %v2245_v57 = vld [vmem:[#allocation3 + $0x48] sm:$0xff]  ;;  %v2203_v19 = vsel %vm280_vm4, %v2165_v31, 0.0  ;;  %v2205_v56 = vsel %vm280_vm4, %v2166_v30, 0.0  ;;  %v2340_v44 = vld [vmem:[#allocation4 + $0xa8] sm:$0xff]  ;;  %p2798_p13 = pnand %p2797_p12, %p2943_p4 }
 0x207   : > { %v2190_v51 = vadd.f32 %v2189_v0, %v2188_v45  ;;  %v2269_v61 = vadd.f32 %v2268_v29, %v2267_v3  ;;  %v2377_v0 = vsel %vm280_vm4, %v2336_v22, 0.0  ;;  %v2246_v45 = vld [vmem:[#allocation3 + $0x50] sm:$0xff]  ;;  %v2278_v49 = vsel %vm280_vm4, %v2245_v57, 0.0  ;;  %v2339_v55 = vld [vmem:[#allocation4 + $0xa0] sm:$0xff]  ;;  %v2341_v29 = vld [vmem:[#allocation4 + $0xb0] sm:$0xff]  ;;  %s2800_s10 = sshll.u32 %s2877_s9, 4  ;;  %s2801_s10 = int_to_ptr.vmem [resolvable:$false] %s2800_s10 }
 0x208   : > { %v2360_v32 = vadd.f32 %v2359_v34, %v2358_v46  ;;  %v2244_v46 = vld [vmem:[#allocation3 + $0x40] sm:$0xff]  ;;  %v2381_v37 = vsel %vm280_vm4, %v2338_v5, 0.0  ;;  %v2383_v40 = vsel %vm280_vm4, %v2339_v55, 0.0  ;;  %v2385_v3 = vsel %vm280_vm4, %v2340_v44, 0.0  ;;  %p2799_p0 = pneg %p2798_p13  ;;  %s2802_s21 = scalar_lea.vmem %s2801_s10, 256 }
 0x209   : > { %v2192_v17 = vadd.f32 %v2191_v35, %v2190_v51  ;;  %v2271_v25 = vadd.f32 %v2270_v12, %v2269_v61  ;;  %v2276_v58 = vsel %vm280_vm4, %v2244_v46, 0.0  ;;  %v2379_v35 = vsel %vm280_vm4, %v2337_v24, 0.0  ;;  %v2247_v51 = vld [vmem:[#allocation3 + $0x58] sm:$0xff]  ;;  %v2342_v12 = vld [vmem:[#allocation4 + $0xb8] sm:$0xff]  ;;  %p2803_p1 = scmp.lt.s32.totalorder %s5567_s30, %s2801_s10  ;;  %p2804_p2 = scmp.lt.s32.totalorder %s2802_s21, %s2796_s8 }
 0x20a   : > { %v2362_v23 = vadd.f32 %v2361_v18, %v2360_v32  ;;  %v2274_v18 = vsel %vm280_vm4, %v2243_v10, 0.0  ;;  %v2387_v61 = vsel %vm280_vm4, %v2341_v29, 0.0  ;;  %v2173_v24 = vld [vmem:[#allocation2 + $0xa8] sm:$0xff] }
 0x20b   : > { %v2194_v39 = vadd.f32 %v2193_v27, %v2192_v17  ;;  %v2280_v27 = vsel %vm280_vm4, %v2246_v45, 0.0  ;;  %v2248_v17 = vld [vmem:[#allocation3 + $0x60] sm:$0xff]  ;;  %p2805_p3 = por %p2804_p2, %p2803_p1 }
 0x20c   : > { %v2364_v1 = vadd.f32 %v2363_v60, %v2362_v23  ;;  %v2273_v60 = vadd.f32 %v2272_v52, %v2271_v25  ;;  %v2343_v52 = vld [vmem:[#allocation4 + $0xc0] sm:$0xff]  ;;  %v2389_v25 = vsel %vm280_vm4, %v2342_v12, 0.0  ;;  %v2252_v30 = vld [vmem:[#allocation3 + $0x80] sm:$0xff] }
 0x20d   : > { %v2196_v47 = vadd.f32 %v2195_v13, %v2194_v39  ;;  %v2282_v13 = vsel %vm280_vm4, %v2247_v51, 0.0  ;;  %v2249_v39 = vld [vmem:[#allocation3 + $0x68] sm:$0xff]  ;;  %v2391_v57 = vsel %vm280_vm4, %v2343_v52, 0.0  ;;  %v2292_v45 = vsel %vm280_vm4, %v2252_v30, 0.0  ;;  %p2806_p5 = pnand %p2805_p3, %p2799_p0 }
 0x20e   : > { %v2366_v26 = vadd.f32 %v2365_v42, %v2364_v1  ;;  %v2167_v42 = vld [vmem:[#allocation2 + $0x78] sm:$0xff]  ;;  %v2275_v63 = vadd.f32 %v2274_v18, %v2273_v60  ;;  %v2168_v1 = vld [vmem:[#allocation2 + $0x80] sm:$0xff] }
 0x20f   : > { %v2198_v38 = vadd.f32 %v2197_v11, %v2196_v47  ;;  %v2284_v11 = vsel %vm280_vm4, %v2248_v17, 0.0  ;;  %v2250_v47 = vld [vmem:[#allocation3 + $0x70] sm:$0xff] }
 0x210   : > { %v2368_v9 = vadd.f32 %v2367_v15, %v2366_v26  ;;  %v2277_v48 = vadd.f32 %v2276_v58, %v2275_v63  ;;  %v2207_v15 = vsel %vm280_vm4, %v2167_v42, 0.0  ;;  %v2169_v26 = vld [vmem:[#allocation2 + $0x88] sm:$0xff]  ;;  %v2174_v58 = vld [vmem:[#allocation2 + $0xb0] sm:$0xff] }
 0x211   : > { %v2200_v21 = vadd.f32 %v2199_v62, %v2198_v38  ;;  %v2286_v62 = vsel %vm280_vm4, %v2249_v39, 0.0  ;;  %v2251_v38 = vld [vmem:[#allocation3 + $0x78] sm:$0xff] }
 0x212   : > { %v2370_v41 = vadd.f32 %v2369_v16, %v2368_v9  ;;  %v2279_v4 = vadd.f32 %v2278_v49, %v2277_v48  ;;  %v2209_v16 = vsel %vm280_vm4, %v2168_v1, 0.0  ;;  %v2170_v9 = vld [vmem:[#allocation2 + $0x90] sm:$0xff]  ;;  %v2254_v49 = vld [vmem:[#allocation3 + $0x90] sm:$0xff]  ;;  %v2255_v48 = vld [vmem:[#allocation3 + $0x98] sm:$0xff] }
 0x213   : > { %v2202_v14 = vadd.f32 %v2201_v36, %v2200_v21  ;;  %v2288_v36 = vsel %vm280_vm4, %v2250_v47, 0.0  ;;  %v2298_v17 = vsel %vm280_vm4, %v2255_v48, 0.0  ;;  %v2259_v39 = vld [vmem:[#allocation3 + $0xb8] sm:$0xff] }
 0x214   : > { %v2372_v34 = vadd.f32 %v2371_v28, %v2370_v41  ;;  %v2281_v59 = vadd.f32 %v2280_v27, %v2279_v4  ;;  %v2211_v28 = vsel %vm280_vm4, %v2169_v26, 0.0  ;;  %v2171_v41 = vld [vmem:[#allocation2 + $0x98] sm:$0xff]  ;;  %v2296_v27 = vsel %vm280_vm4, %v2254_v49, 0.0 }
 0x215   : > { %v2204_v8 = vadd.f32 %v2203_v19, %v2202_v14  ;;  %v2219_v14 = vsel %vm280_vm4, %v2173_v24, 0.0  ;;  %v2306_v12 = vsel %vm280_vm4, %v2259_v39, 0.0 }
 0x216   : > { %v2374_v32 = vadd.f32 %v2373_v7, %v2372_v34  ;;  %v2283_v10 = vadd.f32 %v2282_v13, %v2281_v59  ;;  %v2213_v7 = vsel %vm280_vm4, %v2170_v9, 0.0  ;;  %v2172_v34 = vld [vmem:[#allocation2 + $0xa0] sm:$0xff] }
 0x217   : > { %v2206_v50 = vadd.f32 %v2205_v56, %v2204_v8  ;;  %v2217_v60 = vsel %vm280_vm4, %v2172_v34, 0.0  ;;  %v2176_v8 = vld [vmem:[#allocation2 + $0xc0] sm:$0xff] }
 0x218   : > { %v2376_v23 = vadd.f32 %v2375_v2, %v2374_v32  ;;  %v2285_v46 = vadd.f32 %v2284_v11, %v2283_v10  ;;  %v2215_v2 = vsel %vm280_vm4, %v2171_v41, 0.0 }
 0x219   : > { %v2208_v54 = vadd.f32 %v2207_v15, %v2206_v50  ;;  %v2225_v50 = vsel %vm280_vm4, %v2176_v8, 0.0 }
 0x21a   : > { %v2378_v20 = vadd.f32 %v2377_v0, %v2376_v23  ;;  %v2287_v21 = vadd.f32 %v2286_v62, %v2285_v46  ;;  %v2290_v0 = vsel %vm280_vm4, %v2251_v38, 0.0  ;;  %v2253_v23 = vld [vmem:[#allocation3 + $0x88] sm:$0xff] }
 0x21b   : > { %v2210_v43 = vadd.f32 %v2209_v16, %v2208_v54  ;;  %v2294_v1 = vsel %vm280_vm4, %v2253_v23, 0.0 }
 0x21c   : > { %v2380_v53 = vadd.f32 %v2379_v35, %v2378_v20  ;;  %v2289_v42 = vadd.f32 %v2288_v36, %v2287_v21  ;;  %v2175_v35 = vld [vmem:[#allocation2 + $0xb8] sm:$0xff]  ;;  %v2221_v20 = vsel %vm280_vm4, %v2174_v58, 0.0 }
 0x21d   : > { %v2212_v31 = vadd.f32 %v2211_v28, %v2210_v43  ;;  %v2223_v15 = vsel %vm280_vm4, %v2175_v35, 0.0  ;;  %v2260_v28 = vld [vmem:[#allocation3 + $0xc0] sm:$0xff] }
 0x21e   : > { %v2382_v33 = vadd.f32 %v2381_v37, %v2380_v53  ;;  %v2291_v55 = vadd.f32 %v2290_v0, %v2289_v42  ;;  %v2256_v53 = vld [vmem:[#allocation3 + $0xa0] sm:$0xff]  ;;  %v2308_v41 = vsel %vm280_vm4, %v2260_v28, 0.0 }
 0x21f   : > { %v2214_v32 = vadd.f32 %v2213_v7, %v2212_v31  ;;  %v2300_v13 = vsel %vm280_vm4, %v2256_v53, 0.0 }
 0x220   : > { %v2384_v6 = vadd.f32 %v2383_v40, %v2382_v33  ;;  %v2293_v37 = vadd.f32 %v2292_v45, %v2291_v55  ;;  %v2257_v40 = vld [vmem:[#allocation3 + $0xa8] sm:$0xff]  ;;  %v2258_v33 = vld [vmem:[#allocation3 + $0xb0] sm:$0xff] }
 0x221   : > { %v2216_v5 = vadd.f32 %v2215_v2, %v2214_v32  ;;  %v2302_v54 = vsel %vm280_vm4, %v2257_v40, 0.0 }
 0x222   : > { %v2386_v22 = vadd.f32 %v2385_v3, %v2384_v6  ;;  %v2295_v26 = vadd.f32 %v2294_v1, %v2293_v37  ;;  %v2304_v3 = vsel %vm280_vm4, %v2258_v33, 0.0 }
 0x223   : > { %v2218_v56 = vadd.f32 %v2217_v60, %v2216_v5 }
 0x224   : > { %v2388_v18 = vadd.f32 %v2387_v61, %v2386_v22  ;;  %v2297_v16 = vadd.f32 %v2296_v27, %v2295_v26 }
 0x225   : > { %v2220_v51 = vadd.f32 %v2219_v14, %v2218_v56 }
 0x226   : > { %v2390_v19 = vadd.f32 %v2389_v25, %v2388_v18  ;;  %v2299_v9 = vadd.f32 %v2298_v17, %v2297_v16 }
 0x227   : > { %v2222_v44 = vadd.f32 %v2221_v20, %v2220_v51 }
 0x228   : > { %v2392_v63 = vadd.f32 %v2391_v57, %v2390_v19  ;;  %v2301_v59 = vadd.f32 %v2300_v13, %v2299_v9  ;;  %v2402_v19 = vlaneseq }
 0x229   : > { %v2224_v4 = vadd.f32 %v2223_v15, %v2222_v44 }
 0x22a   : > { %2393 = vadd.xlane.f32.xlu1 %v2392_v63  ;;  %v2303_v11 = vadd.f32 %v2302_v54, %v2301_v59  ;;  %v2403_v58 = vshrl.u32 %v2402_v19, 7 }
 0x22b   : > { %v2226_v29 = vadd.f32 %v2225_v50, %v2224_v4 }
 0x22c   : > { %v2305_v6 = vadd.f32 %v2304_v3, %v2303_v11  ;;  %vm2406_vm4 = vcmp.eq.s32.totalorder %v2403_v58, 2  ;;  %vm2405_vm10 = vcmp.eq.s32.totalorder %v2403_v58, 1  ;;  %vm2404_vm11 = vcmp.eq.s32.totalorder %v2403_v58, 0 }
 0x22d   : > { %2227 = vadd.xlane.f32.xlu0 %v2226_v29 }
 0x22e   : > { %v2307_v43 = vadd.f32 %v2306_v12, %v2305_v6 }
 0x230   : > { %v2309_v47 = vadd.f32 %v2308_v41, %v2307_v43 }
 0x232   : > { %2310 = vadd.xlane.f32.xlu0 %v2309_v47 }
 0x2b7   : > { %v2394_v10 = vpop.xlane.xlu1 %2393 }
 0x2b8   : > { %v2395_v62 = vrot.slane %v2394_v10, 4 }
 0x2ba   : > { %v2228_v61 = vpop.xlane.xlu0 %2227  ;;  %v2396_v34 = vadd.f32 %v2395_v62, %v2394_v10 }
 0x2bb   : > { %v2229_v7 = vrot.slane %v2228_v61, 4 }
 0x2bc   : > { %v2397_v46 = vrot.slane %v2396_v34, 2 }
 0x2bd   : > { %v2230_v52 = vadd.f32 %v2229_v7, %v2228_v61 }
 0x2be   : > { %v2398_v24 = vadd.f32 %v2397_v46, %v2396_v34 }
 0x2bf   : > { %v2231_v22 = vrot.slane %v2230_v52, 2  ;;  %v2311_v25 = vpop.xlane.xlu0 %2310 }
 0x2c0   : > { %v2312_v2 = vrot.slane %v2311_v25, 4  ;;  %v2399_v21 = vrot.slane %v2398_v24, 1 }
 0x2c1   : > { %v2232_v31 = vadd.f32 %v2231_v22, %v2230_v52 }
 0x2c2   : > { %v2313_v18 = vadd.f32 %v2312_v2, %v2311_v25  ;;  %v2400_v0 = vadd.f32 %v2399_v21, %v2398_v24 }
 0x2c3   : > { %v2233_v38 = vrot.slane %v2232_v31, 1 }
 0x2c4   : > { %v2314_v32 = vrot.slane %v2313_v18, 2 }
 0x2c5   : > { %v2234_v36 = vadd.f32 %v2233_v38, %v2232_v31 }
 0x2c6   : > { %v2315_v30 = vadd.f32 %v2314_v32, %v2313_v18 }
 0x2c7   : > { %2609 = vpush %v2234_v36 }
 0x2c8   : > { %v2316_v57 = vrot.slane %v2315_v30, 1 }
 0x2ca   : > { %v2317_v60 = vadd.f32 %v2316_v57, %v2315_v30 }
 0x2cc   : > { %2611 = vpush %v2317_v60 }
 0x2cd   : > { %2613 = vpush %v2400_v0 }
 0x2f8   : > { %s2610_s12 = spop %2609 }
 0x2f9   : > { %v2411_v14 = vstv %s2610_s12 }
 0x2fd   : > { %s2612_s14 = spop %2611 }
 0x2fe   : > { %v2409_v5 = vstv %s2612_s14  ;;  %s2614_s29 = spop %2613 }
 0x2ff   : > { %v2407_v23 = vstv %s2614_s29 }
 0x300   : > { %v2408_v42 = vsel %vm2406_vm4, %v2407_v23, 0.0 }
 0x301   : > { %v2410_v45 = vsel %vm2405_vm10, %v2409_v5, %v2408_v42 }
 0x302   : > { %v2412_v63 = vsel %vm2404_vm11, %v2411_v14, %v2410_v45 }
 0x303   : > { %2413 = vst [vmem:[%s251_s24] sm:$0xff] %v2412_v63 }
 0x304   : > { %2809 = shalt.err (!%p2806_p5)
}
 0x305   : > { %s2810_s11 = scalar_lea.hbm %s5565_s7, 128  ;;  %s2814_s24 = scalar_lea.hbm %s5620_s4, 256 }
 0x306   : > { %p2811_p6 = scmp.ne.s32.totalorder %s5565_s7, %s2810_s11  ;;  %p2815_p10 = scmp.lt.u32.totalorder %s5565_s7, %s5620_s4 }
 0x307   : > { %p2816_p11 = scmp.lt.u32.totalorder %s2814_s24, %s2810_s11  ;;  %p2818_p13 = scmp.lt.u32.totalorder %s2810_s11, %s5565_s7 }
 0x308   : > { %p2812_p7 = pnand %p2811_p6, %p2943_p4 }
 0x309   : > { %p2817_p12 = por %p2816_p11, %p2815_p10 }
 0x30a   : > { %p2813_p9 = pneg %p2812_p7 }
 0x30b   : > { %p2819_p0 = por %p2818_p13, %p2817_p12 }
 0x30d   : > { %p2820_p1 = pnand %p2819_p0, %p2813_p9 }
 0x30f   : > { %2823 = shalt.err (!%p2820_p1)
}
 0x310   : > { %2615 = dma.vmem_to_hbm [thread:$0]  (%p2943_p4), %s5567_s30, 128, %s5565_s7, %s2415_s18  }
 0x311 PF: > { %p2621_p2 = scmp.ge.s32.totalorder %s2874_s20, 2  ;;  %s2440_s26 = sand.u32 1, %s2854_s15  }
 0x312   : > { %s2441_s29 = scalar_lea.sflag [#allocation6], %s2440_s26 }
 0x313   : > { %p2618_p3 = pnand %p2621_p2, %p2950_p8 }
 0x315   : > { %2849 = dma.done.wait (!%p2618_p3), %s2441_s29, 128  }
 0x316   : > { %2851 = vsyncadd (!%p2618_p3), %s2441_s29, 4294967168  ;;  %s17_s20 = sadd.s32 1, %s2874_s20   ;;  %s5947_s15 = smov %s2858_s16 }
 0x317   : > { %p14_p5 = scmp.ge.s32.totalorder %s17_s20, 4   ;;  %s5948_s16 = smov %s2862_s17 }
 0x318   : > { %s5949_s17 = smov %s2956_s28  ;;  %s5950_s18 = smov %s2870_s19 }
 0x319   : > { %s5951_s19 = smov %s5953_s23  ;;  %16 = sbr.rel (!%p14_p5) target bundleno = 4 (0x4), region = 96 }
 0x320   :  { %2446 = vsyncpa [#allocation6], 1 }
 0x321   :  { %2448 = vsyncpa [#allocation6 + $0x1], 1 }

</bundles_post_ra>
